<compile_context>
chip_gen: v6e
topology: v6e:2x2x1
jax: 0.10.0
libtpu: 0.0.40
codegen_flags: <defaults>
</compile_context>

<pallas_src>
import functools

import jax
import jax.numpy as jnp
from jax.experimental import pallas as pl
from jax.experimental.pallas import tpu as pltpu

VMEM = pl.BlockSpec(memory_space=pltpu.MemorySpace.VMEM)


def _round_up(x, m):
    return (x + m - 1) // m * m


def _choose_tile(dim, target):
    """Pick a block size for `dim`: full dim if small, else `target` (+pad)."""
    if dim <= target:
        return dim, dim
    if dim % target == 0:
        return target, dim
    return target, _round_up(dim, target)


# --------------------------------------------------------------------------
# Tiled matmul with fused bias / quick-GELU / residual epilogue
# --------------------------------------------------------------------------
def _linear_kernel(x_ref, w_ref, b_ref, *rest, activation, has_residual):
    if has_residual:
        r_ref, o_ref, acc_ref = rest
    else:
        o_ref, acc_ref = rest

    @pl.when(pl.program_id(2) == 0)
    def _():
        acc_ref[...] = jnp.zeros_like(acc_ref)

    acc_ref[...] += jnp.dot(
        x_ref[...].astype(jnp.bfloat16),
        w_ref[...].astype(jnp.bfloat16),
        preferred_element_type=jnp.float32)

    @pl.when(pl.program_id(2) == pl.num_programs(2) - 1)
    def _():
        out = acc_ref[...] + b_ref[...].astype(jnp.float32)
        if activation == "quick_gelu":
            out = out * jax.nn.sigmoid(1.702 * out)
        if has_residual:
            out = out + r_ref[...].astype(jnp.float32)
        o_ref[...] = out.astype(o_ref.dtype)


def pallas_linear(x, w, b=None, *, activation=None, residual=None,
                  out_dtype=jnp.bfloat16, tm=256, tn=256, tk=1024):
    """out = act(x @ w + b) (+ residual), bf16 MXU inputs / f32 accumulation."""
    M, K = x.shape
    N = w.shape[1]
    if b is None:
        b = jnp.zeros((N,), jnp.float32)
    b = b.reshape(1, N)

    tm, Mp = _choose_tile(M, tm)
    tn, Np = _choose_tile(N, tn)
    tk, Kp = _choose_tile(K, tk)

    if (Mp, Kp) != (M, K):
        x = jnp.pad(x, ((0, Mp - M), (0, Kp - K)))
    if (Kp, Np) != (K, N):
        w = jnp.pad(w, ((0, Kp - K), (0, Np - N)))
    if Np != N:
        b = jnp.pad(b, ((0, 0), (0, Np - N)))

    in_specs = [
        pl.BlockSpec((tm, tk), lambda i, j, k: (i, k)),
        pl.BlockSpec((tk, tn), lambda i, j, k: (k, j)),
        pl.BlockSpec((1, tn), lambda i, j, k: (0, j)),
    ]
    args = [x, w, b]
    if residual is not None:
        r = residual
        if (Mp, Np) != (M, N):
            r = jnp.pad(r, ((0, Mp - M), (0, Np - N)))
        in_specs.append(pl.BlockSpec((tm, tn), lambda i, j, k: (i, j)))
        args.append(r)

    kern = functools.partial(_linear_kernel, activation=activation,
                             has_residual=residual is not None)
    out = pl.pallas_call(
        kern,
        out_shape=jax.ShapeDtypeStruct((Mp, Np), out_dtype),
        grid=(Mp // tm, Np // tn, Kp // tk),
        in_specs=in_specs,
        out_specs=pl.BlockSpec((tm, tn), lambda i, j, k: (i, j)),
        scratch_shapes=[pltpu.VMEM((tm, tn), jnp.float32)],
        compiler_params=pltpu.CompilerParams(
            dimension_semantics=("parallel", "parallel", "arbitrary")),
    )(*args)
    if (Mp, Np) != (M, N):
        out = out[:M, :N]
    return out


# --------------------------------------------------------------------------
# Row-tiled LayerNorm (2D) and fused add + LayerNorm (3D, per-batch blocks)
# --------------------------------------------------------------------------
def _layernorm_kernel(x_ref, g_ref, b_ref, o_ref):
    x = x_ref[...].astype(jnp.float32)
    mean = jnp.mean(x, axis=-1, keepdims=True)
    var = jnp.mean(jnp.square(x - mean), axis=-1, keepdims=True)
    y = (x - mean) * jax.lax.rsqrt(var + 1e-5)
    o_ref[...] = (y * g_ref[...] + b_ref[...]).astype(o_ref.dtype)


def pallas_layernorm(x, g, b, out_dtype=jnp.bfloat16, tm=256):
    M, D = x.shape
    tm, Mp = _choose_tile(M, tm)
    xp = jnp.pad(x, ((0, Mp - M), (0, 0))) if Mp != M else x
    out = pl.pallas_call(
        _layernorm_kernel,
        out_shape=jax.ShapeDtypeStruct((Mp, D), out_dtype),
        grid=(Mp // tm,),
        in_specs=[pl.BlockSpec((tm, D), lambda i: (i, 0)),
                  pl.BlockSpec((1, D), lambda i: (0, 0)),
                  pl.BlockSpec((1, D), lambda i: (0, 0))],
        out_specs=pl.BlockSpec((tm, D), lambda i: (i, 0)),
        compiler_params=pltpu.CompilerParams(dimension_semantics=("parallel",)),
    )(xp, g.reshape(1, D).astype(jnp.float32), b.reshape(1, D).astype(jnp.float32))
    return out[:M] if Mp != M else out


def _add_layernorm_kernel(x_ref, a_ref, g_ref, b_ref, o_ref):
    x = x_ref[...].astype(jnp.float32) + a_ref[...].astype(jnp.float32)
    mean = jnp.mean(x, axis=-1, keepdims=True)
    var = jnp.mean(jnp.square(x - mean), axis=-1, keepdims=True)
    y = (x - mean) * jax.lax.rsqrt(var + 1e-5)
    o_ref[...] = (y * g_ref[...] + b_ref[...]).astype(o_ref.dtype)


def pallas_add_layernorm(x, add, g, b, out_dtype=jnp.bfloat16):
    """LayerNorm(x + add), x: [M, S, D], add: [S, D] broadcast over batch."""
    M, S, D = x.shape
    return pl.pallas_call(
        _add_layernorm_kernel,
        out_shape=jax.ShapeDtypeStruct((M, S, D), out_dtype),
        grid=(M,),
        in_specs=[pl.BlockSpec((1, S, D), lambda i: (i, 0, 0)),
                  pl.BlockSpec((1, S, D), lambda i: (0, 0, 0)),
                  pl.BlockSpec((1, 1, D), lambda i: (0, 0, 0)),
                  pl.BlockSpec((1, 1, D), lambda i: (0, 0, 0))],
        out_specs=pl.BlockSpec((1, S, D), lambda i: (i, 0, 0)),
        compiler_params=pltpu.CompilerParams(dimension_semantics=("parallel",)),
    )(x, add.reshape(1, S, D),
      g.reshape(1, 1, D).astype(jnp.float32),
      b.reshape(1, 1, D).astype(jnp.float32))


# --------------------------------------------------------------------------
# Multi-head attention: one batch element (all heads) per grid step
# --------------------------------------------------------------------------
def _attn_kernel(*refs, scale, has_mask):
    if has_mask:
        q_ref, k_ref, v_ref, m_ref, o_ref = refs
    else:
        q_ref, k_ref, v_ref, o_ref = refs
    # Fold the softmax scale into Q (H*S*Dh multiplies instead of H*S*S).
    q = q_ref[...] * jnp.asarray(scale, q_ref.dtype)   # [H, S, Dh] bf16
    k = k_ref[...]
    v = v_ref[...]
    s = jnp.einsum("hqd,hkd->hqk", q, k, preferred_element_type=jnp.float32)
    if has_mask:
        s = s + m_ref[...]                              # [1, S, S] broadcasts over heads
    s = s - jnp.max(s, axis=-1, keepdims=True)
    p = jnp.exp(s)
    p = p * pl.reciprocal(jnp.sum(p, axis=-1, keepdims=True), approx=True)
    o = jnp.einsum("hqk,hkd->hqd", p.astype(v.dtype), v,
                   preferred_element_type=jnp.float32)
    o_ref[...] = o.astype(o_ref.dtype)


def pallas_attention(q, k, v, num_heads, scale, mask=None):
    """q,k,v: [B*H, S, Dh] head-major; mask: [B, S, S] additive or None."""
    BH, S, Dh = q.shape
    B = BH // num_heads
    qspec = pl.BlockSpec((num_heads, S, Dh), lambda b: (b, 0, 0))
    in_specs = [qspec, qspec, qspec]
    args = [q, k, v]
    if mask is not None:
        in_specs.append(pl.BlockSpec((1, S, S), lambda b: (b, 0, 0)))
        args.append(mask)
    kern = functools.partial(_attn_kernel, scale=scale, has_mask=mask is not None)
    return pl.pallas_call(
        kern,
        out_shape=jax.ShapeDtypeStruct((BH, S, Dh), q.dtype),
        grid=(B,),
        in_specs=in_specs,
        out_specs=qspec,
        compiler_params=pltpu.CompilerParams(dimension_semantics=("parallel",)),
    )(*args)


# --------------------------------------------------------------------------
# Feature normalization kernels (small slabs)
# --------------------------------------------------------------------------
def _l2norm_kernel(x_ref, o_ref):
    x = x_ref[...].astype(jnp.float32)
    inv = jax.lax.rsqrt(jnp.sum(x * x, axis=-1, keepdims=True) + 1e-12)
    o_ref[...] = x * inv


def pallas_l2norm(x):
    return pl.pallas_call(
        _l2norm_kernel,
        out_shape=jax.ShapeDtypeStruct(x.shape, jnp.float32),
        in_specs=[VMEM],
        out_specs=VMEM,
    )(x)


def _frame_mean_norm_kernel(x_ref, o_ref):
    x = x_ref[...].astype(jnp.float32)          # [B, N, D]
    m = jnp.mean(x, axis=1)                     # mean over frames
    inv = jax.lax.rsqrt(jnp.sum(m * m, axis=-1, keepdims=True) + 1e-12)
    o_ref[...] = m * inv


def pallas_frame_mean_norm(x):
    B, N, D = x.shape
    return pl.pallas_call(
        _frame_mean_norm_kernel,
        out_shape=jax.ShapeDtypeStruct((B, D), jnp.float32),
        in_specs=[VMEM],
        out_specs=VMEM,
    )(x)


# --------------------------------------------------------------------------
# CLIP-style transformer built on the Pallas kernels
# --------------------------------------------------------------------------
def transformer_layer(x, p, mask, num_heads):
    """x:[M,S,D]; mask: [M,S,S] additive or None (vision)."""
    M, S, D = x.shape
    Dh = D // num_heads

    # --- self attention block (QKV fused, residual fused into out-proj) ---
    res = x.reshape(M * S, D)
    xf = pallas_layernorm(res, p["ln1_g"], p["ln1_b"])
    qkv = pallas_linear(xf, p["wqkv"], p["bqkv"])                 # [M*S, 3D] bf16
    qkv = qkv.reshape(M, S, 3, num_heads, Dh).transpose(2, 0, 3, 1, 4)
    qkv = qkv.reshape(3, M * num_heads, S, Dh)
    attn = pallas_attention(qkv[0], qkv[1], qkv[2], num_heads, Dh ** -0.5, mask)
    attn = attn.reshape(M, num_heads, S, Dh).transpose(0, 2, 1, 3).reshape(M * S, D)
    x = pallas_linear(attn, p["wo"], p["bo"], residual=res)       # + residual fused

    # --- MLP block (GELU fused into fc1, residual fused into fc2) ---
    res2 = x
    xf = pallas_layernorm(x, p["ln2_g"], p["ln2_b"])
    h1 = pallas_linear(xf, p["w1"], p["b1"], activation="quick_gelu")
    x = pallas_linear(h1, p["w2"], p["b2"], residual=res2)
    return x.reshape(M, S, D)


def vidclip_forward(params, video, text_input_ids, text_input_mask, cfg):
    """Non-ViP path of VidCLIP.forward (no `image`/caption inputs)."""
    B, N, C, H, W = video.shape
    p_sz = cfg["patch"]
    D = cfg["hidden"]
    heads = cfg["heads"]

    # ---------------- vision tower ----------------
    M = B * N
    frames = video.reshape(M, C, H, W)
    gh, gw = H // p_sz, W // p_sz
    P = gh * gw
    # unfold patches: [M*P, C*p*p]  (glue); patch-embed conv as Pallas matmul
    patches = frames.reshape(M, C, gh, p_sz, gw, p_sz)
    patches = patches.transpose(0, 2, 4, 1, 3, 5).reshape(M * P, C * p_sz * p_sz)
    patch_emb = pallas_linear(patches, params["vis"]["patch_w"],
                              out_dtype=jnp.float32).reshape(M, P, D)

    cls = jnp.broadcast_to(params["vis"]["class_emb"].reshape(1, 1, D), (M, 1, D))
    x = jnp.concatenate([cls, patch_emb], axis=1)                  # [M, P+1, D]
    S_v = P + 1
    # positional-embedding add fused with the pre-LayerNorm
    x = pallas_add_layernorm(x, params["vis"]["pos_emb"],
                             params["vis"]["pre_g"], params["vis"]["pre_b"])

    for lp in params["vis"]["layers"]:
        x = transformer_layer(x, lp, None, heads)                  # no mask (all zeros)

    pooled = x[:, 0]                                               # CLS token
    pooled = pallas_layernorm(pooled, params["vis"]["post_g"], params["vis"]["post_b"])
    vis_feat = pallas_linear(pooled, params["vis"]["proj"], out_dtype=jnp.float32)
    vis_feat = pallas_l2norm(vis_feat)                             # per-frame normalize
    vis_feat = vis_feat.reshape(B, N, -1)
    vis_feat = pallas_frame_mean_norm(vis_feat)                    # mean over frames + renorm

    # ---------------- text tower ----------------
    L = text_input_ids.shape[1]
    tok = params["txt"]["token_emb"][text_input_ids]               # gather (glue)
    t = tok + params["txt"]["pos_emb"].reshape(1, L, D)

    neg = jnp.float32(-1e9)
    idx = jnp.arange(L)
    causal = jnp.where(idx[None, :] <= idx[:, None], 0.0, neg)     # [L, L]
    pad = jnp.where(text_input_mask[:, None, :] > 0, 0.0, neg)     # [B, 1, L]
    txt_mask = causal[None] + pad                                  # [B, L, L]  (no head repeat)

    for lp in params["txt"]["layers"]:
        t = transformer_layer(t, lp, txt_mask, heads)

    # pooled text state: last non-padded token; LayerNorm only the pooled rows
    # (identical result — the final LN is per-token and only the pooled token
    #  feeds the text projection in this forward).
    # TODO(synk): HF CLIP pools at argmax of the EOS token id; sum(mask)-1 is a stand-in.
    eos_idx = jnp.sum(text_input_mask, axis=-1).astype(jnp.int32) - 1
    pooled_t = t[jnp.arange(B), eos_idx]                           # [B, D]
    pooled_t = pallas_layernorm(pooled_t, params["txt"]["fin_g"], params["txt"]["fin_b"])
    txt_feat = pallas_linear(pooled_t, params["txt"]["proj"], out_dtype=jnp.float32)
    txt_feat = pallas_l2norm(txt_feat)

    return {"text_features": txt_feat, "vis_features": vis_feat}


# --------------------------------------------------------------------------
# Deterministic parameter init (synthetic, not a checkpoint)
# --------------------------------------------------------------------------
def init_params(key, cfg):
    D, F, proj = cfg["hidden"], cfg["mlp"], cfg["proj"]
    C, p_sz = cfg["channels"], cfg["patch"]
    P = (cfg["img"] // p_sz) ** 2
    V, L = cfg["vocab"], cfg["seq_len"]
    keys = iter(jax.random.split(key, 256))

    def nrm(shape, s=0.02, dtype=jnp.bfloat16):
        return (jax.random.normal(next(keys), shape) * s).astype(dtype)

    def layer():
        return dict(
            ln1_g=jnp.ones((D,), jnp.float32), ln1_b=jnp.zeros((D,), jnp.float32),
            wqkv=nrm((D, 3 * D)), bqkv=jnp.zeros((3 * D,), jnp.float32),
            wo=nrm((D, D)), bo=jnp.zeros((D,), jnp.float32),
            ln2_g=jnp.ones((D,), jnp.float32), ln2_b=jnp.zeros((D,), jnp.float32),
            w1=nrm((D, F)), b1=jnp.zeros((F,), jnp.float32),
            w2=nrm((F, D)), b2=jnp.zeros((D,), jnp.float32),
        )

    vis = dict(
        patch_w=nrm((C * p_sz * p_sz, D)),
        class_emb=nrm((D,), dtype=jnp.float32),
        pos_emb=nrm((P + 1, D), dtype=jnp.float32),
        pre_g=jnp.ones((D,), jnp.float32), pre_b=jnp.zeros((D,), jnp.float32),
        layers=[layer() for _ in range(cfg["layers"])],
        post_g=jnp.ones((D,), jnp.float32), post_b=jnp.zeros((D,), jnp.float32),
        proj=nrm((D, proj)),
    )
    txt = dict(
        token_emb=nrm((V, D), dtype=jnp.float32),
        pos_emb=nrm((L, D), dtype=jnp.float32),
        layers=[layer() for _ in range(cfg["layers"])],
        fin_g=jnp.ones((D,), jnp.float32), fin_b=jnp.zeros((D,), jnp.float32),
        proj=nrm((D, proj)),
    )
    return dict(vis=vis, txt=txt)


# --------------------------------------------------------------------------
if __name__ == "__main__":
    cfg = dict(channels=3, img=16, patch=8, hidden=32, heads=2, mlp=64,
               layers=2, proj=16, vocab=64, seq_len=8)

    key = jax.random.PRNGKey(0)
    k_par, k_vid, k_txt = jax.random.split(key, 3)

    params = init_params(k_par, cfg)

    B, Nf = 2, 2
    video = jax.random.normal(
        k_vid, (B, Nf, cfg["channels"], cfg["img"], cfg["img"]), jnp.float32)
    text_input_ids = jax.random.randint(k_txt, (B, cfg["seq_len"]), 0, cfg["vocab"])
    text_input_mask = jnp.array([[1, 1, 1, 1, 1, 1, 0, 0],
                                 [1, 1, 1, 1, 0, 0, 0, 0]], jnp.int32)

    # TODO(synk): ViP branch, logit_scale/similarity head and the optional
    # image/caption path depend on external config/pretrained weights; only the
    # default (non-ViP) video+text forward is implemented here.
    fwd = jax.jit(lambda p, v, ids, m: vidclip_forward(p, v, ids, m, cfg))
    out = fwd(params, video, text_input_ids, text_input_mask)
    jax.block_until_ready(out)

    assert out["text_features"].shape == (B, cfg["proj"])
    assert out["vis_features"].shape == (B, cfg["proj"])
    print("KERNEL_OK")
</pallas_src>

<mosaic_0001>
module attributes {stable_mosaic.version = 11 : i64} {
  func.func @_layernorm_kernel(%arg0: i32, %arg1: memref<16x32xf32, #tpu.memory_space<vmem>>, %arg2: memref<1x32xf32, #tpu.memory_space<vmem>>, %arg3: memref<1x32xf32, #tpu.memory_space<vmem>>, %arg4: memref<16x32xbf16, #tpu.memory_space<vmem>>) attributes {dimension_semantics = [#tpu.dimension_semantics<parallel>], iteration_bounds = array<i64: 1>, scalar_prefetch = 0 : i64, scratch_operands = 0 : i64, tpu.core_type = #tpu.core_type<tc>, window_params = [{transform_indices = @transform_0, window_bounds = array<i64: 16, 32>}, {pipeline_mode = #tpu.pipeline_mode<synchronous>, transform_indices = @transform_1, window_bounds = array<i64: 1, 32>}, {pipeline_mode = #tpu.pipeline_mode<synchronous>, transform_indices = @transform_2, window_bounds = array<i64: 1, 32>}, {transform_indices = @transform_3, window_bounds = array<i64: 16, 32>}]} {
    %c0 = arith.constant 0 : index
    %c0_0 = arith.constant 0 : index
    %0 = vector.load %arg1[%c0, %c0_0] : memref<16x32xf32, #tpu.memory_space<vmem>>, vector<16x32xf32>
    %cst = arith.constant dense<0.000000e+00> : vector<16xf32>
    %1 = vector.multi_reduction <add>, %0, %cst [1] : vector<16x32xf32> to vector<16xf32>
    %2 = vector.shape_cast %1 : vector<16xf32> to vector<16x1xf32>
    %cst_1 = arith.constant 3.200000e+01 : f32
    %3 = vector.broadcast %cst_1 : f32 to vector<16x1xf32>
    %4 = arith.divf %2, %3 : vector<16x1xf32>
    %5 = vector.broadcast %4 : vector<16x1xf32> to vector<16x32xf32>
    %6 = arith.subf %0, %5 : vector<16x32xf32>
    %7 = arith.mulf %6, %6 : vector<16x32xf32>
    %cst_2 = arith.constant dense<0.000000e+00> : vector<16xf32>
    %8 = vector.multi_reduction <add>, %7, %cst_2 [1] : vector<16x32xf32> to vector<16xf32>
    %9 = vector.shape_cast %8 : vector<16xf32> to vector<16x1xf32>
    %cst_3 = arith.constant 3.200000e+01 : f32
    %10 = vector.broadcast %cst_3 : f32 to vector<16x1xf32>
    %11 = arith.divf %9, %10 : vector<16x1xf32>
    %12 = vector.broadcast %4 : vector<16x1xf32> to vector<16x32xf32>
    %13 = arith.subf %0, %12 : vector<16x32xf32>
    %cst_4 = arith.constant 9.99999974E-6 : f32
    %14 = vector.broadcast %cst_4 : f32 to vector<16x1xf32>
    %15 = arith.addf %11, %14 : vector<16x1xf32>
    %16 = math.rsqrt %15 : vector<16x1xf32>
    %17 = vector.broadcast %16 : vector<16x1xf32> to vector<16x32xf32>
    %18 = arith.mulf %13, %17 : vector<16x32xf32>
    %c0_5 = arith.constant 0 : index
    %c0_6 = arith.constant 0 : index
    %19 = vector.load %arg2[%c0_5, %c0_6] : memref<1x32xf32, #tpu.memory_space<vmem>>, vector<1x32xf32>
    %20 = vector.broadcast %19 : vector<1x32xf32> to vector<16x32xf32>
    %21 = arith.mulf %18, %20 : vector<16x32xf32>
    %c0_7 = arith.constant 0 : index
    %c0_8 = arith.constant 0 : index
    %22 = vector.load %arg3[%c0_7, %c0_8] : memref<1x32xf32, #tpu.memory_space<vmem>>, vector<1x32xf32>
    %23 = vector.broadcast %22 : vector<1x32xf32> to vector<16x32xf32>
    %24 = arith.addf %21, %23 : vector<16x32xf32>
    %25 = arith.truncf %24 : vector<16x32xf32> to vector<16x32xbf16>
    %c0_9 = arith.constant 0 : index
    %c0_10 = arith.constant 0 : index
    %26 = vector.load %arg4[%c0_9, %c0_10] : memref<16x32xbf16, #tpu.memory_space<vmem>>, vector<16x32xbf16>
    tpu.vector_store %arg4[%c0_9, %c0_10], %25 {strides = array<i32>} : memref<16x32xbf16, #tpu.memory_space<vmem>>, vector<16x32xbf16>,
    return
  }
  func.func @transform_0(%arg0: i32) -> (i32, i32) {
    %c0_i32 = arith.constant 0 : i32
    %c0_i32_0 = arith.constant 0 : i32
    return %arg0, %c0_i32 : i32, i32
  }
  func.func @transform_1(%arg0: i32) -> (i32, i32) {
    %c0_i32 = arith.constant 0 : i32
    %c0_i32_0 = arith.constant 0 : i32
    %c0_i32_1 = arith.constant 0 : i32
    return %c0_i32, %c0_i32_0 : i32, i32
  }
  func.func @transform_2(%arg0: i32) -> (i32, i32) {
    %c0_i32 = arith.constant 0 : i32
    %c0_i32_0 = arith.constant 0 : i32
    %c0_i32_1 = arith.constant 0 : i32
    return %c0_i32, %c0_i32_0 : i32, i32
  }
  func.func @transform_3(%arg0: i32) -> (i32, i32) {
    %c0_i32 = arith.constant 0 : i32
    %c0_i32_0 = arith.constant 0 : i32
    return %arg0, %c0_i32 : i32, i32
  }
}

module attributes {stable_mosaic.version = 11 : i64} {
  func.func @_linear_kernel(%arg0: i32, %arg1: i32, %arg2: i32, %arg3: memref<16x32xbf16, #tpu.memory_space<vmem>>, %arg4: memref<32x96xbf16, #tpu.memory_space<vmem>>, %arg5: memref<1x96xf32, #tpu.memory_space<vmem>>, %arg6: memref<16x96xbf16, #tpu.memory_space<vmem>>, %arg7: memref<16x96xf32, #tpu.memory_space<vmem>>) attributes {dimension_semantics = [#tpu.dimension_semantics<parallel>, #tpu.dimension_semantics<parallel>, #tpu.dimension_semantics<arbitrary>], iteration_bounds = array<i64: 1, 1, 1>, scalar_prefetch = 0 : i64, scratch_operands = 1 : i64, tpu.core_type = #tpu.core_type<tc>, window_params = [{transform_indices = @transform_0, window_bounds = array<i64: 16, 32>}, {transform_indices = @transform_1, window_bounds = array<i64: 32, 96>}, {transform_indices = @transform_2, window_bounds = array<i64: 1, 96>}, {transform_indices = @transform_3, window_bounds = array<i64: 16, 96>}]} {
    %c0_i32 = arith.constant 0 : i32
    %0 = arith.cmpi eq, %arg2, %c0_i32 : i32
    %1 = arith.extui %0 : i1 to i32
    %c0_i32_0 = arith.constant 0 : i32
    %2 = arith.cmpi ne, %1, %c0_i32_0 : i32
    scf.if %2 {
      %cst_10 = arith.constant 0.000000e+00 : f32
      %12 = vector.broadcast %cst_10 : f32 to vector<16x96xf32>
      %c0_11 = arith.constant 0 : index
      %c0_12 = arith.constant 0 : index
      %13 = vector.load %arg7[%c0_11, %c0_12] : memref<16x96xf32, #tpu.memory_space<vmem>>, vector<16x96xf32>
      tpu.vector_store %arg7[%c0_11, %c0_12], %12 {strides = array<i32>} : memref<16x96xf32, #tpu.memory_space<vmem>>, vector<16x96xf32>,
    } else {
    }
    %c0 = arith.constant 0 : index
    %c0_1 = arith.constant 0 : index
    %3 = vector.load %arg7[%c0, %c0_1] : memref<16x96xf32, #tpu.memory_space<vmem>>, vector<16x96xf32>
    %c0_2 = arith.constant 0 : index
    %c0_3 = arith.constant 0 : index
    %4 = vector.load %arg3[%c0_2, %c0_3] : memref<16x32xbf16, #tpu.memory_space<vmem>>, vector<16x32xbf16>
    %c0_4 = arith.constant 0 : index
    %c0_5 = arith.constant 0 : index
    %5 = vector.load %arg4[%c0_4, %c0_5] : memref<32x96xbf16, #tpu.memory_space<vmem>>, vector<32x96xbf16>
    %cst = arith.constant dense<0.000000e+00> : vector<16x96xf32>
    %6 = tpu.matmul %4, %5, %cst {dimension_numbers = #tpu.dot_dimension_numbers<[1], [0], [0], [1], [0, 0, 1, 1], [], []>} : vector<16x32xbf16>, vector<32x96xbf16>, vector<16x96xf32> -> vector<16x96xf32>
    %7 = arith.addf %3, %6 : vector<16x96xf32>
    %c0_6 = arith.constant 0 : index
    %c0_7 = arith.constant 0 : index
    %8 = vector.load %arg7[%c0_6, %c0_7] : memref<16x96xf32, #tpu.memory_space<vmem>>, vector<16x96xf32>
    tpu.vector_store %arg7[%c0_6, %c0_7], %7 {strides = array<i32>} : memref<16x96xf32, #tpu.memory_space<vmem>>, vector<16x96xf32>,
    %c0_i32_8 = arith.constant 0 : i32
    %9 = arith.cmpi eq, %arg2, %c0_i32_8 : i32
    %10 = arith.extui %9 : i1 to i32
    %c0_i32_9 = arith.constant 0 : i32
    %11 = arith.cmpi ne, %10, %c0_i32_9 : i32
    scf.if %11 {
      %c0_10 = arith.constant 0 : index
      %c0_11 = arith.constant 0 : index
      %12 = vector.load %arg7[%c0_10, %c0_11] : memref<16x96xf32, #tpu.memory_space<vmem>>, vector<16x96xf32>
      %c0_12 = arith.constant 0 : index
      %c0_13 = arith.constant 0 : index
      %13 = vector.load %arg5[%c0_12, %c0_13] : memref<1x96xf32, #tpu.memory_space<vmem>>, vector<1x96xf32>
      %14 = vector.broadcast %13 : vector<1x96xf32> to vector<16x96xf32>
      %15 = arith.addf %12, %14 : vector<16x96xf32>
      %16 = arith.truncf %15 : vector<16x96xf32> to vector<16x96xbf16>
      %c0_14 = arith.constant 0 : index
      %c0_15 = arith.constant 0 : index
      %17 = vector.load %arg6[%c0_14, %c0_15] : memref<16x96xbf16, #tpu.memory_space<vmem>>, vector<16x96xbf16>
      tpu.vector_store %arg6[%c0_14, %c0_15], %16 {strides = array<i32>} : memref<16x96xbf16, #tpu.memory_space<vmem>>, vector<16x96xbf16>,
    } else {
    }
    return
  }
  func.func @transform_0(%arg0: i32, %arg1: i32, %arg2: i32) -> (i32, i32) {
    %c0_i32 = arith.constant 0 : i32
    return %arg0, %arg2 : i32, i32
  }
  func.func @transform_1(%arg0: i32, %arg1: i32, %arg2: i32) -> (i32, i32) {
    %c0_i32 = arith.constant 0 : i32
    return %arg2, %arg1 : i32, i32
  }
  func.func @transform_2(%arg0: i32, %arg1: i32, %arg2: i32) -> (i32, i32) {
    %c0_i32 = arith.constant 0 : i32
    %c0_i32_0 = arith.constant 0 : i32
    return %c0_i32, %arg1 : i32, i32
  }
  func.func @transform_3(%arg0: i32, %arg1: i32, %arg2: i32) -> (i32, i32) {
    %c0_i32 = arith.constant 0 : i32
    return %arg0, %arg1 : i32, i32
  }
}

module attributes {stable_mosaic.version = 11 : i64} {
  func.func @_attn_kernel(%arg0: i32, %arg1: memref<2x8x16xbf16, #tpu.memory_space<vmem>>, %arg2: memref<2x8x16xbf16, #tpu.memory_space<vmem>>, %arg3: memref<2x8x16xbf16, #tpu.memory_space<vmem>>, %arg4: memref<1x8x8xf32, #tpu.memory_space<vmem>>, %arg5: memref<2x8x16xbf16, #tpu.memory_space<vmem>>) attributes {dimension_semantics = [#tpu.dimension_semantics<parallel>], iteration_bounds = array<i64: 2>, scalar_prefetch = 0 : i64, scratch_operands = 0 : i64, tpu.core_type = #tpu.core_type<tc>, window_params = [{transform_indices = @transform_0, window_bounds = array<i64: 2, 8, 16>}, {transform_indices = @transform_1, window_bounds = array<i64: 2, 8, 16>}, {transform_indices = @transform_2, window_bounds = array<i64: 2, 8, 16>}, {transform_indices = @transform_3, window_bounds = array<i64: 1, 8, 8>}, {transform_indices = @transform_4, window_bounds = array<i64: 2, 8, 16>}]} {
    %c0 = arith.constant 0 : index
    %c0_0 = arith.constant 0 : index
    %c0_1 = arith.constant 0 : index
    %0 = vector.load %arg1[%c0, %c0_0, %c0_1] : memref<2x8x16xbf16, #tpu.memory_space<vmem>>, vector<2x8x16xbf16>
    %cst = arith.constant 2.500000e-01 : bf16
    %1 = vector.broadcast %cst : bf16 to vector<2x8x16xbf16>
    %2 = arith.mulf %0, %1 : vector<2x8x16xbf16>
    %c0_2 = arith.constant 0 : index
    %c0_3 = arith.constant 0 : index
    %c0_4 = arith.constant 0 : index
    %3 = vector.load %arg2[%c0_2, %c0_3, %c0_4] : memref<2x8x16xbf16, #tpu.memory_space<vmem>>, vector<2x8x16xbf16>
    %c0_5 = arith.constant 0 : index
    %c0_6 = arith.constant 0 : index
    %c0_7 = arith.constant 0 : index
    %4 = vector.load %arg3[%c0_5, %c0_6, %c0_7] : memref<2x8x16xbf16, #tpu.memory_space<vmem>>, vector<2x8x16xbf16>
    "tpu.trace_start"() <{level = 10 : i32, message = "hqd,hkd->hqk"}> : () -> ()
    %cst_8 = arith.constant dense<0.000000e+00> : vector<2x8x8xf32>
    %5 = tpu.matmul %2, %3, %cst_8 {dimension_numbers = #tpu.dot_dimension_numbers<[2], [2], [1], [1], [0, 0, 0, 1, 1, 1], [0], [0]>} : vector<2x8x16xbf16>, vector<2x8x16xbf16>, vector<2x8x8xf32> -> vector<2x8x8xf32>
    "tpu.trace_stop"() : () -> ()
    %c0_9 = arith.constant 0 : index
    %c0_10 = arith.constant 0 : index
    %c0_11 = arith.constant 0 : index
    %6 = vector.load %arg4[%c0_9, %c0_10, %c0_11] : memref<1x8x8xf32, #tpu.memory_space<vmem>>, vector<1x8x8xf32>
    %7 = vector.broadcast %6 : vector<1x8x8xf32> to vector<2x8x8xf32>
    %8 = arith.addf %5, %7 : vector<2x8x8xf32>
    %cst_12 = arith.constant dense<0xFF800000> : vector<2x8xf32>
    %9 = vector.multi_reduction <maximumf>, %8, %cst_12 [2] : vector<2x8x8xf32> to vector<2x8xf32>
    %10 = vector.shape_cast %9 : vector<2x8xf32> to vector<2x8x1xf32>
    %11 = vector.broadcast %10 : vector<2x8x1xf32> to vector<2x8x8xf32>
    %12 = arith.subf %8, %11 : vector<2x8x8xf32>
    %13 = math.exp %12 : vector<2x8x8xf32>
    %cst_13 = arith.constant dense<0.000000e+00> : vector<2x8xf32>
    %14 = vector.multi_reduction <add>, %13, %cst_13 [2] : vector<2x8x8xf32> to vector<2x8xf32>
    %15 = vector.shape_cast %14 : vector<2x8xf32> to vector<2x8x1xf32>
    %16 = tpu.reciprocal %15 {approx = true} : vector<2x8x1xf32> -> vector<2x8x1xf32>
    %17 = vector.broadcast %16 : vector<2x8x1xf32> to vector<2x8x8xf32>
    %18 = arith.mulf %13, %17 : vector<2x8x8xf32>
    %19 = arith.truncf %18 : vector<2x8x8xf32> to vector<2x8x8xbf16>
    "tpu.trace_start"() <{level = 10 : i32, message = "hqk,hkd->hqd"}> : () -> ()
    %cst_14 = arith.constant dense<0.000000e+00> : vector<2x8x16xf32>
    %20 = tpu.matmul %19, %4, %cst_14 {dimension_numbers = #tpu.dot_dimension_numbers<[2], [1], [1], [2], [0, 0, 0, 1, 1, 2], [0], [0]>} : vector<2x8x8xbf16>, vector<2x8x16xbf16>, vector<2x8x16xf32> -> vector<2x8x16xf32>
    "tpu.trace_stop"() : () -> ()
    %21 = arith.truncf %20 : vector<2x8x16xf32> to vector<2x8x16xbf16>
    %c0_15 = arith.constant 0 : index
    %c0_16 = arith.constant 0 : index
    %c0_17 = arith.constant 0 : index
    %22 = vector.load %arg5[%c0_15, %c0_16, %c0_17] : memref<2x8x16xbf16, #tpu.memory_space<vmem>>, vector<2x8x16xbf16>
    tpu.vector_store %arg5[%c0_15, %c0_16, %c0_17], %21 {strides = array<i32>} : memref<2x8x16xbf16, #tpu.memory_space<vmem>>, vector<2x8x16xbf16>,
    return
  }
  func.func @transform_0(%arg0: i32) -> (i32, i32, i32) {
    %c0_i32 = arith.constant 0 : i32
    %c0_i32_0 = arith.constant 0 : i32
    %c0_i32_1 = arith.constant 0 : i32
    return %arg0, %c0_i32, %c0_i32_0 : i32, i32, i32
  }
  func.func @transform_1(%arg0: i32) -> (i32, i32, i32) {
    %c0_i32 = arith.constant 0 : i32
    %c0_i32_0 = arith.constant 0 : i32
    %c0_i32_1 = arith.constant 0 : i32
    return %arg0, %c0_i32, %c0_i32_0 : i32, i32, i32
  }
  func.func @transform_2(%arg0: i32) -> (i32, i32, i32) {
    %c0_i32 = arith.constant 0 : i32
    %c0_i32_0 = arith.constant 0 : i32
    %c0_i32_1 = arith.constant 0 : i32
    return %arg0, %c0_i32, %c0_i32_0 : i32, i32, i32
  }
  func.func @transform_3(%arg0: i32) -> (i32, i32, i32) {
    %c0_i32 = arith.constant 0 : i32
    %c0_i32_0 = arith.constant 0 : i32
    %c0_i32_1 = arith.constant 0 : i32
    return %arg0, %c0_i32, %c0_i32_0 : i32, i32, i32
  }
  func.func @transform_4(%arg0: i32) -> (i32, i32, i32) {
    %c0_i32 = arith.constant 0 : i32
    %c0_i32_0 = arith.constant 0 : i32
    %c0_i32_1 = arith.constant 0 : i32
    return %arg0, %c0_i32, %c0_i32_0 : i32, i32, i32
  }
}

module attributes {stable_mosaic.version = 11 : i64} {
  func.func @_linear_kernel(%arg0: i32, %arg1: i32, %arg2: i32, %arg3: memref<16x32xbf16, #tpu.memory_space<vmem>>, %arg4: memref<32x32xbf16, #tpu.memory_space<vmem>>, %arg5: memref<1x32xf32, #tpu.memory_space<vmem>>, %arg6: memref<16x32xf32, #tpu.memory_space<vmem>>, %arg7: memref<16x32xbf16, #tpu.memory_space<vmem>>, %arg8: memref<16x32xf32, #tpu.memory_space<vmem>>) attributes {dimension_semantics = [#tpu.dimension_semantics<parallel>, #tpu.dimension_semantics<parallel>, #tpu.dimension_semantics<arbitrary>], iteration_bounds = array<i64: 1, 1, 1>, scalar_prefetch = 0 : i64, scratch_operands = 1 : i64, tpu.core_type = #tpu.core_type<tc>, window_params = [{transform_indices = @transform_0, window_bounds = array<i64: 16, 32>}, {transform_indices = @transform_1, window_bounds = array<i64: 32, 32>}, {transform_indices = @transform_2, window_bounds = array<i64: 1, 32>}, {transform_indices = @transform_3, window_bounds = array<i64: 16, 32>}, {transform_indices = @transform_4, window_bounds = array<i64: 16, 32>}]} {
    %c0_i32 = arith.constant 0 : i32
    %0 = arith.cmpi eq, %arg2, %c0_i32 : i32
    %1 = arith.extui %0 : i1 to i32
    %c0_i32_0 = arith.constant 0 : i32
    %2 = arith.cmpi ne, %1, %c0_i32_0 : i32
    scf.if %2 {
      %cst_10 = arith.constant 0.000000e+00 : f32
      %12 = vector.broadcast %cst_10 : f32 to vector<16x32xf32>
      %c0_11 = arith.constant 0 : index
      %c0_12 = arith.constant 0 : index
      %13 = vector.load %arg8[%c0_11, %c0_12] : memref<16x32xf32, #tpu.memory_space<vmem>>, vector<16x32xf32>
      tpu.vector_store %arg8[%c0_11, %c0_12], %12 {strides = array<i32>} : memref<16x32xf32, #tpu.memory_space<vmem>>, vector<16x32xf32>,
    } else {
    }
    %c0 = arith.constant 0 : index
    %c0_1 = arith.constant 0 : index
    %3 = vector.load %arg8[%c0, %c0_1] : memref<16x32xf32, #tpu.memory_space<vmem>>, vector<16x32xf32>
    %c0_2 = arith.constant 0 : index
    %c0_3 = arith.constant 0 : index
    %4 = vector.load %arg3[%c0_2, %c0_3] : memref<16x32xbf16, #tpu.memory_space<vmem>>, vector<16x32xbf16>
    %c0_4 = arith.constant 0 : index
    %c0_5 = arith.constant 0 : index
    %5 = vector.load %arg4[%c0_4, %c0_5] : memref<32x32xbf16, #tpu.memory_space<vmem>>, vector<32x32xbf16>
    %cst = arith.constant dense<0.000000e+00> : vector<16x32xf32>
    %6 = tpu.matmul %4, %5, %cst {dimension_numbers = #tpu.dot_dimension_numbers<[1], [0], [0], [1], [0, 0, 1, 1], [], []>} : vector<16x32xbf16>, vector<32x32xbf16>, vector<16x32xf32> -> vector<16x32xf32>
    %7 = arith.addf %3, %6 : vector<16x32xf32>
    %c0_6 = arith.constant 0 : index
    %c0_7 = arith.constant 0 : index
    %8 = vector.load %arg8[%c0_6, %c0_7] : memref<16x32xf32, #tpu.memory_space<vmem>>, vector<16x32xf32>
    tpu.vector_store %arg8[%c0_6, %c0_7], %7 {strides = array<i32>} : memref<16x32xf32, #tpu.memory_space<vmem>>, vector<16x32xf32>,
    %c0_i32_8 = arith.constant 0 : i32
    %9 = arith.cmpi eq, %arg2, %c0_i32_8 : i32
    %10 = arith.extui %9 : i1 to i32
    %c0_i32_9 = arith.constant 0 : i32
    %11 = arith.cmpi ne, %10, %c0_i32_9 : i32
    scf.if %11 {
      %c0_10 = arith.constant 0 : index
      %c0_11 = arith.constant 0 : index
      %12 = vector.load %arg8[%c0_10, %c0_11] : memref<16x32xf32, #tpu.memory_space<vmem>>, vector<16x32xf32>
      %c0_12 = arith.constant 0 : index
      %c0_13 = arith.constant 0 : index
      %13 = vector.load %arg5[%c0_12, %c0_13] : memref<1x32xf32, #tpu.memory_space<vmem>>, vector<1x32xf32>
      %14 = vector.broadcast %13 : vector<1x32xf32> to vector<16x32xf32>
      %15 = arith.addf %12, %14 : vector<16x32xf32>
      %c0_14 = arith.constant 0 : index
      %c0_15 = arith.constant 0 : index
      %16 = vector.load %arg6[%c0_14, %c0_15] : memref<16x32xf32, #tpu.memory_space<vmem>>, vector<16x32xf32>
      %17 = arith.addf %15, %16 : vector<16x32xf32>
      %18 = arith.truncf %17 : vector<16x32xf32> to vector<16x32xbf16>
      %c0_16 = arith.constant 0 : index
      %c0_17 = arith.constant 0 : index
      %19 = vector.load %arg7[%c0_16, %c0_17] : memref<16x32xbf16, #tpu.memory_space<vmem>>, vector<16x32xbf16>
      tpu.vector_store %arg7[%c0_16, %c0_17], %18 {strides = array<i32>} : memref<16x32xbf16, #tpu.memory_space<vmem>>, vector<16x32xbf16>,
    } else {
    }
    return
  }
  func.func @transform_0(%arg0: i32, %arg1: i32, %arg2: i32) -> (i32, i32) {
    %c0_i32 = arith.constant 0 : i32
    return %arg0, %arg2 : i32, i32
  }
  func.func @transform_1(%arg0: i32, %arg1: i32, %arg2: i32) -> (i32, i32) {
    %c0_i32 = arith.constant 0 : i32
    return %arg2, %arg1 : i32, i32
  }
  func.func @transform_2(%arg0: i32, %arg1: i32, %arg2: i32) -> (i32, i32) {
    %c0_i32 = arith.constant 0 : i32
    %c0_i32_0 = arith.constant 0 : i32
    return %c0_i32, %arg1 : i32, i32
  }
  func.func @transform_3(%arg0: i32, %arg1: i32, %arg2: i32) -> (i32, i32) {
    %c0_i32 = arith.constant 0 : i32
    return %arg0, %arg1 : i32, i32
  }
  func.func @transform_4(%arg0: i32, %arg1: i32, %arg2: i32) -> (i32, i32) {
    %c0_i32 = arith.constant 0 : i32
    return %arg0, %arg1 : i32, i32
  }
}

module attributes {stable_mosaic.version = 11 : i64} {
  func.func @_layernorm_kernel(%arg0: i32, %arg1: memref<16x32xbf16, #tpu.memory_space<vmem>>, %arg2: memref<1x32xf32, #tpu.memory_space<vmem>>, %arg3: memref<1x32xf32, #tpu.memory_space<vmem>>, %arg4: memref<16x32xbf16, #tpu.memory_space<vmem>>) attributes {dimension_semantics = [#tpu.dimension_semantics<parallel>], iteration_bounds = array<i64: 1>, scalar_prefetch = 0 : i64, scratch_operands = 0 : i64, tpu.core_type = #tpu.core_type<tc>, window_params = [{transform_indices = @transform_0, window_bounds = array<i64: 16, 32>}, {pipeline_mode = #tpu.pipeline_mode<synchronous>, transform_indices = @transform_1, window_bounds = array<i64: 1, 32>}, {pipeline_mode = #tpu.pipeline_mode<synchronous>, transform_indices = @transform_2, window_bounds = array<i64: 1, 32>}, {transform_indices = @transform_3, window_bounds = array<i64: 16, 32>}]} {
    %c0 = arith.constant 0 : index
    %c0_0 = arith.constant 0 : index
    %0 = vector.load %arg1[%c0, %c0_0] : memref<16x32xbf16, #tpu.memory_space<vmem>>, vector<16x32xbf16>
    %1 = arith.extf %0 : vector<16x32xbf16> to vector<16x32xf32>
    %cst = arith.constant dense<0.000000e+00> : vector<16xf32>
    %2 = vector.multi_reduction <add>, %1, %cst [1] : vector<16x32xf32> to vector<16xf32>
    %3 = vector.shape_cast %2 : vector<16xf32> to vector<16x1xf32>
    %cst_1 = arith.constant 3.200000e+01 : f32
    %4 = vector.broadcast %cst_1 : f32 to vector<16x1xf32>
    %5 = arith.divf %3, %4 : vector<16x1xf32>
    %6 = vector.broadcast %5 : vector<16x1xf32> to vector<16x32xf32>
    %7 = arith.subf %1, %6 : vector<16x32xf32>
    %8 = arith.mulf %7, %7 : vector<16x32xf32>
    %cst_2 = arith.constant dense<0.000000e+00> : vector<16xf32>
    %9 = vector.multi_reduction <add>, %8, %cst_2 [1] : vector<16x32xf32> to vector<16xf32>
    %10 = vector.shape_cast %9 : vector<16xf32> to vector<16x1xf32>
    %cst_3 = arith.constant 3.200000e+01 : f32
    %11 = vector.broadcast %cst_3 : f32 to vector<16x1xf32>
    %12 = arith.divf %10, %11 : vector<16x1xf32>
    %13 = vector.broadcast %5 : vector<16x1xf32> to vector<16x32xf32>
    %14 = arith.subf %1, %13 : vector<16x32xf32>
    %cst_4 = arith.constant 9.99999974E-6 : f32
    %15 = vector.broadcast %cst_4 : f32 to vector<16x1xf32>
    %16 = arith.addf %12, %15 : vector<16x1xf32>
    %17 = math.rsqrt %16 : vector<16x1xf32>
    %18 = vector.broadcast %17 : vector<16x1xf32> to vector<16x32xf32>
    %19 = arith.mulf %14, %18 : vector<16x32xf32>
    %c0_5 = arith.constant 0 : index
    %c0_6 = arith.constant 0 : index
    %20 = vector.load %arg2[%c0_5, %c0_6] : memref<1x32xf32, #tpu.memory_space<vmem>>, vector<1x32xf32>
    %21 = vector.broadcast %20 : vector<1x32xf32> to vector<16x32xf32>
    %22 = arith.mulf %19, %21 : vector<16x32xf32>
    %c0_7 = arith.constant 0 : index
    %c0_8 = arith.constant 0 : index
    %23 = vector.load %arg3[%c0_7, %c0_8] : memref<1x32xf32, #tpu.memory_space<vmem>>, vector<1x32xf32>
    %24 = vector.broadcast %23 : vector<1x32xf32> to vector<16x32xf32>
    %25 = arith.addf %22, %24 : vector<16x32xf32>
    %26 = arith.truncf %25 : vector<16x32xf32> to vector<16x32xbf16>
    %c0_9 = arith.constant 0 : index
    %c0_10 = arith.constant 0 : index
    %27 = vector.load %arg4[%c0_9, %c0_10] : memref<16x32xbf16, #tpu.memory_space<vmem>>, vector<16x32xbf16>
    tpu.vector_store %arg4[%c0_9, %c0_10], %26 {strides = array<i32>} : memref<16x32xbf16, #tpu.memory_space<vmem>>, vector<16x32xbf16>,
    return
  }
  func.func @transform_0(%arg0: i32) -> (i32, i32) {
    %c0_i32 = arith.constant 0 : i32
    %c0_i32_0 = arith.constant 0 : i32
    return %arg0, %c0_i32 : i32, i32
  }
  func.func @transform_1(%arg0: i32) -> (i32, i32) {
    %c0_i32 = arith.constant 0 : i32
    %c0_i32_0 = arith.constant 0 : i32
    %c0_i32_1 = arith.constant 0 : i32
    return %c0_i32, %c0_i32_0 : i32, i32
  }
  func.func @transform_2(%arg0: i32) -> (i32, i32) {
    %c0_i32 = arith.constant 0 : i32
    %c0_i32_0 = arith.constant 0 : i32
    %c0_i32_1 = arith.constant 0 : i32
    return %c0_i32, %c0_i32_0 : i32, i32
  }
  func.func @transform_3(%arg0: i32) -> (i32, i32) {
    %c0_i32 = arith.constant 0 : i32
    %c0_i32_0 = arith.constant 0 : i32
    return %arg0, %c0_i32 : i32, i32
  }
}

module attributes {stable_mosaic.version = 11 : i64} {
  func.func @_linear_kernel(%arg0: i32, %arg1: i32, %arg2: i32, %arg3: memref<16x32xbf16, #tpu.memory_space<vmem>>, %arg4: memref<32x64xbf16, #tpu.memory_space<vmem>>, %arg5: memref<1x64xf32, #tpu.memory_space<vmem>>, %arg6: memref<16x64xbf16, #tpu.memory_space<vmem>>, %arg7: memref<16x64xf32, #tpu.memory_space<vmem>>) attributes {dimension_semantics = [#tpu.dimension_semantics<parallel>, #tpu.dimension_semantics<parallel>, #tpu.dimension_semantics<arbitrary>], iteration_bounds = array<i64: 1, 1, 1>, scalar_prefetch = 0 : i64, scratch_operands = 1 : i64, tpu.core_type = #tpu.core_type<tc>, window_params = [{transform_indices = @transform_0, window_bounds = array<i64: 16, 32>}, {transform_indices = @transform_1, window_bounds = array<i64: 32, 64>}, {transform_indices = @transform_2, window_bounds = array<i64: 1, 64>}, {transform_indices = @transform_3, window_bounds = array<i64: 16, 64>}]} {
    %c0_i32 = arith.constant 0 : i32
    %0 = arith.cmpi eq, %arg2, %c0_i32 : i32
    %1 = arith.extui %0 : i1 to i32
    %c0_i32_0 = arith.constant 0 : i32
    %2 = arith.cmpi ne, %1, %c0_i32_0 : i32
    scf.if %2 {
      %cst_10 = arith.constant 0.000000e+00 : f32
      %12 = vector.broadcast %cst_10 : f32 to vector<16x64xf32>
      %c0_11 = arith.constant 0 : index
      %c0_12 = arith.constant 0 : index
      %13 = vector.load %arg7[%c0_11, %c0_12] : memref<16x64xf32, #tpu.memory_space<vmem>>, vector<16x64xf32>
      tpu.vector_store %arg7[%c0_11, %c0_12], %12 {strides = array<i32>} : memref<16x64xf32, #tpu.memory_space<vmem>>, vector<16x64xf32>,
    } else {
    }
    %c0 = arith.constant 0 : index
    %c0_1 = arith.constant 0 : index
    %3 = vector.load %arg7[%c0, %c0_1] : memref<16x64xf32, #tpu.memory_space<vmem>>, vector<16x64xf32>
    %c0_2 = arith.constant 0 : index
    %c0_3 = arith.constant 0 : index
    %4 = vector.load %arg3[%c0_2, %c0_3] : memref<16x32xbf16, #tpu.memory_space<vmem>>, vector<16x32xbf16>
    %c0_4 = arith.constant 0 : index
    %c0_5 = arith.constant 0 : index
    %5 = vector.load %arg4[%c0_4, %c0_5] : memref<32x64xbf16, #tpu.memory_space<vmem>>, vector<32x64xbf16>
    %cst = arith.constant dense<0.000000e+00> : vector<16x64xf32>
    %6 = tpu.matmul %4, %5, %cst {dimension_numbers = #tpu.dot_dimension_numbers<[1], [0], [0], [1], [0, 0, 1, 1], [], []>} : vector<16x32xbf16>, vector<32x64xbf16>, vector<16x64xf32> -> vector<16x64xf32>
    %7 = arith.addf %3, %6 : vector<16x64xf32>
    %c0_6 = arith.constant 0 : index
    %c0_7 = arith.constant 0 : index
    %8 = vector.load %arg7[%c0_6, %c0_7] : memref<16x64xf32, #tpu.memory_space<vmem>>, vector<16x64xf32>
    tpu.vector_store %arg7[%c0_6, %c0_7], %7 {strides = array<i32>} : memref<16x64xf32, #tpu.memory_space<vmem>>, vector<16x64xf32>,
    %c0_i32_8 = arith.constant 0 : i32
    %9 = arith.cmpi eq, %arg2, %c0_i32_8 : i32
    %10 = arith.extui %9 : i1 to i32
    %c0_i32_9 = arith.constant 0 : i32
    %11 = arith.cmpi ne, %10, %c0_i32_9 : i32
    scf.if %11 {
      %c0_10 = arith.constant 0 : index
      %c0_11 = arith.constant 0 : index
      %12 = vector.load %arg7[%c0_10, %c0_11] : memref<16x64xf32, #tpu.memory_space<vmem>>, vector<16x64xf32>
      %c0_12 = arith.constant 0 : index
      %c0_13 = arith.constant 0 : index
      %13 = vector.load %arg5[%c0_12, %c0_13] : memref<1x64xf32, #tpu.memory_space<vmem>>, vector<1x64xf32>
      %14 = vector.broadcast %13 : vector<1x64xf32> to vector<16x64xf32>
      %15 = arith.addf %12, %14 : vector<16x64xf32>
      %cst_14 = arith.constant 1.702000e+00 : f32
      %16 = vector.broadcast %cst_14 : f32 to vector<16x64xf32>
      %17 = arith.mulf %16, %15 : vector<16x64xf32>
      %18 = arith.negf %17 : vector<16x64xf32>
      %19 = math.exp %18 : vector<16x64xf32>
      %cst_15 = arith.constant 1.000000e+00 : f32
      %20 = vector.broadcast %cst_15 : f32 to vector<16x64xf32>
      %21 = arith.addf %20, %19 : vector<16x64xf32>
      %22 = arith.divf %20, %21 : vector<16x64xf32>
      %23 = arith.mulf %15, %22 : vector<16x64xf32>
      %24 = arith.truncf %23 : vector<16x64xf32> to vector<16x64xbf16>
      %c0_16 = arith.constant 0 : index
      %c0_17 = arith.constant 0 : index
      %25 = vector.load %arg6[%c0_16, %c0_17] : memref<16x64xbf16, #tpu.memory_space<vmem>>, vector<16x64xbf16>
      tpu.vector_store %arg6[%c0_16, %c0_17], %24 {strides = array<i32>} : memref<16x64xbf16, #tpu.memory_space<vmem>>, vector<16x64xbf16>,
    } else {
    }
    return
  }
  func.func @transform_0(%arg0: i32, %arg1: i32, %arg2: i32) -> (i32, i32) {
    %c0_i32 = arith.constant 0 : i32
    return %arg0, %arg2 : i32, i32
  }
  func.func @transform_1(%arg0: i32, %arg1: i32, %arg2: i32) -> (i32, i32) {
    %c0_i32 = arith.constant 0 : i32
    return %arg2, %arg1 : i32, i32
  }
  func.func @transform_2(%arg0: i32, %arg1: i32, %arg2: i32) -> (i32, i32) {
    %c0_i32 = arith.constant 0 : i32
    %c0_i32_0 = arith.constant 0 : i32
    return %c0_i32, %arg1 : i32, i32
  }
  func.func @transform_3(%arg0: i32, %arg1: i32, %arg2: i32) -> (i32, i32) {
    %c0_i32 = arith.constant 0 : i32
    return %arg0, %arg1 : i32, i32
  }
}

module attributes {stable_mosaic.version = 11 : i64} {
  func.func @_linear_kernel(%arg0: i32, %arg1: i32, %arg2: i32, %arg3: memref<16x64xbf16, #tpu.memory_space<vmem>>, %arg4: memref<64x32xbf16, #tpu.memory_space<vmem>>, %arg5: memref<1x32xf32, #tpu.memory_space<vmem>>, %arg6: memref<16x32xbf16, #tpu.memory_space<vmem>>, %arg7: memref<16x32xbf16, #tpu.memory_space<vmem>>, %arg8: memref<16x32xf32, #tpu.memory_space<vmem>>) attributes {dimension_semantics = [#tpu.dimension_semantics<parallel>, #tpu.dimension_semantics<parallel>, #tpu.dimension_semantics<arbitrary>], iteration_bounds = array<i64: 1, 1, 1>, scalar_prefetch = 0 : i64, scratch_operands = 1 : i64, tpu.core_type = #tpu.core_type<tc>, window_params = [{transform_indices = @transform_0, window_bounds = array<i64: 16, 64>}, {transform_indices = @transform_1, window_bounds = array<i64: 64, 32>}, {transform_indices = @transform_2, window_bounds = array<i64: 1, 32>}, {transform_indices = @transform_3, window_bounds = array<i64: 16, 32>}, {transform_indices = @transform_4, window_bounds = array<i64: 16, 32>}]} {
    %c0_i32 = arith.constant 0 : i32
    %0 = arith.cmpi eq, %arg2, %c0_i32 : i32
    %1 = arith.extui %0 : i1 to i32
    %c0_i32_0 = arith.constant 0 : i32
    %2 = arith.cmpi ne, %1, %c0_i32_0 : i32
    scf.if %2 {
      %cst_10 = arith.constant 0.000000e+00 : f32
      %12 = vector.broadcast %cst_10 : f32 to vector<16x32xf32>
      %c0_11 = arith.constant 0 : index
      %c0_12 = arith.constant 0 : index
      %13 = vector.load %arg8[%c0_11, %c0_12] : memref<16x32xf32, #tpu.memory_space<vmem>>, vector<16x32xf32>
      tpu.vector_store %arg8[%c0_11, %c0_12], %12 {strides = array<i32>} : memref<16x32xf32, #tpu.memory_space<vmem>>, vector<16x32xf32>,
    } else {
    }
    %c0 = arith.constant 0 : index
    %c0_1 = arith.constant 0 : index
    %3 = vector.load %arg8[%c0, %c0_1] : memref<16x32xf32, #tpu.memory_space<vmem>>, vector<16x32xf32>
    %c0_2 = arith.constant 0 : index
    %c0_3 = arith.constant 0 : index
    %4 = vector.load %arg3[%c0_2, %c0_3] : memref<16x64xbf16, #tpu.memory_space<vmem>>, vector<16x64xbf16>
    %c0_4 = arith.constant 0 : index
    %c0_5 = arith.constant 0 : index
    %5 = vector.load %arg4[%c0_4, %c0_5] : memref<64x32xbf16, #tpu.memory_space<vmem>>, vector<64x32xbf16>
    %cst = arith.constant dense<0.000000e+00> : vector<16x32xf32>
    %6 = tpu.matmul %4, %5, %cst {dimension_numbers = #tpu.dot_dimension_numbers<[1], [0], [0], [1], [0, 0, 1, 1], [], []>} : vector<16x64xbf16>, vector<64x32xbf16>, vector<16x32xf32> -> vector<16x32xf32>
    %7 = arith.addf %3, %6 : vector<16x32xf32>
    %c0_6 = arith.constant 0 : index
    %c0_7 = arith.constant 0 : index
    %8 = vector.load %arg8[%c0_6, %c0_7] : memref<16x32xf32, #tpu.memory_space<vmem>>, vector<16x32xf32>
    tpu.vector_store %arg8[%c0_6, %c0_7], %7 {strides = array<i32>} : memref<16x32xf32, #tpu.memory_space<vmem>>, vector<16x32xf32>,
    %c0_i32_8 = arith.constant 0 : i32
    %9 = arith.cmpi eq, %arg2, %c0_i32_8 : i32
    %10 = arith.extui %9 : i1 to i32
    %c0_i32_9 = arith.constant 0 : i32
    %11 = arith.cmpi ne, %10, %c0_i32_9 : i32
    scf.if %11 {
      %c0_10 = arith.constant 0 : index
      %c0_11 = arith.constant 0 : index
      %12 = vector.load %arg8[%c0_10, %c0_11] : memref<16x32xf32, #tpu.memory_space<vmem>>, vector<16x32xf32>
      %c0_12 = arith.constant 0 : index
      %c0_13 = arith.constant 0 : index
      %13 = vector.load %arg5[%c0_12, %c0_13] : memref<1x32xf32, #tpu.memory_space<vmem>>, vector<1x32xf32>
      %14 = vector.broadcast %13 : vector<1x32xf32> to vector<16x32xf32>
      %15 = arith.addf %12, %14 : vector<16x32xf32>
      %c0_14 = arith.constant 0 : index
      %c0_15 = arith.constant 0 : index
      %16 = vector.load %arg6[%c0_14, %c0_15] : memref<16x32xbf16, #tpu.memory_space<vmem>>, vector<16x32xbf16>
      %17 = arith.extf %16 : vector<16x32xbf16> to vector<16x32xf32>
      %18 = arith.addf %15, %17 : vector<16x32xf32>
      %19 = arith.truncf %18 : vector<16x32xf32> to vector<16x32xbf16>
      %c0_16 = arith.constant 0 : index
      %c0_17 = arith.constant 0 : index
      %20 = vector.load %arg7[%c0_16, %c0_17] : memref<16x32xbf16, #tpu.memory_space<vmem>>, vector<16x32xbf16>
      tpu.vector_store %arg7[%c0_16, %c0_17], %19 {strides = array<i32>} : memref<16x32xbf16, #tpu.memory_space<vmem>>, vector<16x32xbf16>,
    } else {
    }
    return
  }
  func.func @transform_0(%arg0: i32, %arg1: i32, %arg2: i32) -> (i32, i32) {
    %c0_i32 = arith.constant 0 : i32
    return %arg0, %arg2 : i32, i32
  }
  func.func @transform_1(%arg0: i32, %arg1: i32, %arg2: i32) -> (i32, i32) {
    %c0_i32 = arith.constant 0 : i32
    return %arg2, %arg1 : i32, i32
  }
  func.func @transform_2(%arg0: i32, %arg1: i32, %arg2: i32) -> (i32, i32) {
    %c0_i32 = arith.constant 0 : i32
    %c0_i32_0 = arith.constant 0 : i32
    return %c0_i32, %arg1 : i32, i32
  }
  func.func @transform_3(%arg0: i32, %arg1: i32, %arg2: i32) -> (i32, i32) {
    %c0_i32 = arith.constant 0 : i32
    return %arg0, %arg1 : i32, i32
  }
  func.func @transform_4(%arg0: i32, %arg1: i32, %arg2: i32) -> (i32, i32) {
    %c0_i32 = arith.constant 0 : i32
    return %arg0, %arg1 : i32, i32
  }
}

module attributes {stable_mosaic.version = 11 : i64} {
  func.func @_linear_kernel(%arg0: i32, %arg1: i32, %arg2: i32, %arg3: memref<16x32xbf16, #tpu.memory_space<vmem>>, %arg4: memref<32x32xbf16, #tpu.memory_space<vmem>>, %arg5: memref<1x32xf32, #tpu.memory_space<vmem>>, %arg6: memref<16x32xbf16, #tpu.memory_space<vmem>>, %arg7: memref<16x32xbf16, #tpu.memory_space<vmem>>, %arg8: memref<16x32xf32, #tpu.memory_space<vmem>>) attributes {dimension_semantics = [#tpu.dimension_semantics<parallel>, #tpu.dimension_semantics<parallel>, #tpu.dimension_semantics<arbitrary>], iteration_bounds = array<i64: 1, 1, 1>, scalar_prefetch = 0 : i64, scratch_operands = 1 : i64, tpu.core_type = #tpu.core_type<tc>, window_params = [{transform_indices = @transform_0, window_bounds = array<i64: 16, 32>}, {transform_indices = @transform_1, window_bounds = array<i64: 32, 32>}, {transform_indices = @transform_2, window_bounds = array<i64: 1, 32>}, {transform_indices = @transform_3, window_bounds = array<i64: 16, 32>}, {transform_indices = @transform_4, window_bounds = array<i64: 16, 32>}]} {
    %c0_i32 = arith.constant 0 : i32
    %0 = arith.cmpi eq, %arg2, %c0_i32 : i32
    %1 = arith.extui %0 : i1 to i32
    %c0_i32_0 = arith.constant 0 : i32
    %2 = arith.cmpi ne, %1, %c0_i32_0 : i32
    scf.if %2 {
      %cst_10 = arith.constant 0.000000e+00 : f32
      %12 = vector.broadcast %cst_10 : f32 to vector<16x32xf32>
      %c0_11 = arith.constant 0 : index
      %c0_12 = arith.constant 0 : index
      %13 = vector.load %arg8[%c0_11, %c0_12] : memref<16x32xf32, #tpu.memory_space<vmem>>, vector<16x32xf32>
      tpu.vector_store %arg8[%c0_11, %c0_12], %12 {strides = array<i32>} : memref<16x32xf32, #tpu.memory_space<vmem>>, vector<16x32xf32>,
    } else {
    }
    %c0 = arith.constant 0 : index
    %c0_1 = arith.constant 0 : index
    %3 = vector.load %arg8[%c0, %c0_1] : memref<16x32xf32, #tpu.memory_space<vmem>>, vector<16x32xf32>
    %c0_2 = arith.constant 0 : index
    %c0_3 = arith.constant 0 : index
    %4 = vector.load %arg3[%c0_2, %c0_3] : memref<16x32xbf16, #tpu.memory_space<vmem>>, vector<16x32xbf16>
    %c0_4 = arith.constant 0 : index
    %c0_5 = arith.constant 0 : index
    %5 = vector.load %arg4[%c0_4, %c0_5] : memref<32x32xbf16, #tpu.memory_space<vmem>>, vector<32x32xbf16>
    %cst = arith.constant dense<0.000000e+00> : vector<16x32xf32>
    %6 = tpu.matmul %4, %5, %cst {dimension_numbers = #tpu.dot_dimension_numbers<[1], [0], [0], [1], [0, 0, 1, 1], [], []>} : vector<16x32xbf16>, vector<32x32xbf16>, vector<16x32xf32> -> vector<16x32xf32>
    %7 = arith.addf %3, %6 : vector<16x32xf32>
    %c0_6 = arith.constant 0 : index
    %c0_7 = arith.constant 0 : index
    %8 = vector.load %arg8[%c0_6, %c0_7] : memref<16x32xf32, #tpu.memory_space<vmem>>, vector<16x32xf32>
    tpu.vector_store %arg8[%c0_6, %c0_7], %7 {strides = array<i32>} : memref<16x32xf32, #tpu.memory_space<vmem>>, vector<16x32xf32>,
    %c0_i32_8 = arith.constant 0 : i32
    %9 = arith.cmpi eq, %arg2, %c0_i32_8 : i32
    %10 = arith.extui %9 : i1 to i32
    %c0_i32_9 = arith.constant 0 : i32
    %11 = arith.cmpi ne, %10, %c0_i32_9 : i32
    scf.if %11 {
      %c0_10 = arith.constant 0 : index
      %c0_11 = arith.constant 0 : index
      %12 = vector.load %arg8[%c0_10, %c0_11] : memref<16x32xf32, #tpu.memory_space<vmem>>, vector<16x32xf32>
      %c0_12 = arith.constant 0 : index
      %c0_13 = arith.constant 0 : index
      %13 = vector.load %arg5[%c0_12, %c0_13] : memref<1x32xf32, #tpu.memory_space<vmem>>, vector<1x32xf32>
      %14 = vector.broadcast %13 : vector<1x32xf32> to vector<16x32xf32>
      %15 = arith.addf %12, %14 : vector<16x32xf32>
      %c0_14 = arith.constant 0 : index
      %c0_15 = arith.constant 0 : index
      %16 = vector.load %arg6[%c0_14, %c0_15] : memref<16x32xbf16, #tpu.memory_space<vmem>>, vector<16x32xbf16>
      %17 = arith.extf %16 : vector<16x32xbf16> to vector<16x32xf32>
      %18 = arith.addf %15, %17 : vector<16x32xf32>
      %19 = arith.truncf %18 : vector<16x32xf32> to vector<16x32xbf16>
      %c0_16 = arith.constant 0 : index
      %c0_17 = arith.constant 0 : index
      %20 = vector.load %arg7[%c0_16, %c0_17] : memref<16x32xbf16, #tpu.memory_space<vmem>>, vector<16x32xbf16>
      tpu.vector_store %arg7[%c0_16, %c0_17], %19 {strides = array<i32>} : memref<16x32xbf16, #tpu.memory_space<vmem>>, vector<16x32xbf16>,
    } else {
    }
    return
  }
  func.func @transform_0(%arg0: i32, %arg1: i32, %arg2: i32) -> (i32, i32) {
    %c0_i32 = arith.constant 0 : i32
    return %arg0, %arg2 : i32, i32
  }
  func.func @transform_1(%arg0: i32, %arg1: i32, %arg2: i32) -> (i32, i32) {
    %c0_i32 = arith.constant 0 : i32
    return %arg2, %arg1 : i32, i32
  }
  func.func @transform_2(%arg0: i32, %arg1: i32, %arg2: i32) -> (i32, i32) {
    %c0_i32 = arith.constant 0 : i32
    %c0_i32_0 = arith.constant 0 : i32
    return %c0_i32, %arg1 : i32, i32
  }
  func.func @transform_3(%arg0: i32, %arg1: i32, %arg2: i32) -> (i32, i32) {
    %c0_i32 = arith.constant 0 : i32
    return %arg0, %arg1 : i32, i32
  }
  func.func @transform_4(%arg0: i32, %arg1: i32, %arg2: i32) -> (i32, i32) {
    %c0_i32 = arith.constant 0 : i32
    return %arg0, %arg1 : i32, i32
  }
}

module attributes {stable_mosaic.version = 11 : i64} {
  func.func @_layernorm_kernel(%arg0: i32, %arg1: memref<2x32xbf16, #tpu.memory_space<vmem>>, %arg2: memref<1x32xf32, #tpu.memory_space<vmem>>, %arg3: memref<1x32xf32, #tpu.memory_space<vmem>>, %arg4: memref<2x32xbf16, #tpu.memory_space<vmem>>) attributes {dimension_semantics = [#tpu.dimension_semantics<parallel>], iteration_bounds = array<i64: 1>, scalar_prefetch = 0 : i64, scratch_operands = 0 : i64, tpu.core_type = #tpu.core_type<tc>, window_params = [{transform_indices = @transform_0, window_bounds = array<i64: 2, 32>}, {pipeline_mode = #tpu.pipeline_mode<synchronous>, transform_indices = @transform_1, window_bounds = array<i64: 1, 32>}, {pipeline_mode = #tpu.pipeline_mode<synchronous>, transform_indices = @transform_2, window_bounds = array<i64: 1, 32>}, {transform_indices = @transform_3, window_bounds = array<i64: 2, 32>}]} {
    %c0 = arith.constant 0 : index
    %c0_0 = arith.constant 0 : index
    %0 = vector.load %arg1[%c0, %c0_0] : memref<2x32xbf16, #tpu.memory_space<vmem>>, vector<2x32xbf16>
    %1 = arith.extf %0 : vector<2x32xbf16> to vector<2x32xf32>
    %cst = arith.constant dense<0.000000e+00> : vector<2xf32>
    %2 = vector.multi_reduction <add>, %1, %cst [1] : vector<2x32xf32> to vector<2xf32>
    %3 = vector.shape_cast %2 : vector<2xf32> to vector<2x1xf32>
    %cst_1 = arith.constant 3.200000e+01 : f32
    %4 = vector.broadcast %cst_1 : f32 to vector<2x1xf32>
    %5 = arith.divf %3, %4 : vector<2x1xf32>
    %6 = vector.broadcast %5 : vector<2x1xf32> to vector<2x32xf32>
    %7 = arith.subf %1, %6 : vector<2x32xf32>
    %8 = arith.mulf %7, %7 : vector<2x32xf32>
    %cst_2 = arith.constant dense<0.000000e+00> : vector<2xf32>
    %9 = vector.multi_reduction <add>, %8, %cst_2 [1] : vector<2x32xf32> to vector<2xf32>
    %10 = vector.shape_cast %9 : vector<2xf32> to vector<2x1xf32>
    %cst_3 = arith.constant 3.200000e+01 : f32
    %11 = vector.broadcast %cst_3 : f32 to vector<2x1xf32>
    %12 = arith.divf %10, %11 : vector<2x1xf32>
    %13 = vector.broadcast %5 : vector<2x1xf32> to vector<2x32xf32>
    %14 = arith.subf %1, %13 : vector<2x32xf32>
    %cst_4 = arith.constant 9.99999974E-6 : f32
    %15 = vector.broadcast %cst_4 : f32 to vector<2x1xf32>
    %16 = arith.addf %12, %15 : vector<2x1xf32>
    %17 = math.rsqrt %16 : vector<2x1xf32>
    %18 = vector.broadcast %17 : vector<2x1xf32> to vector<2x32xf32>
    %19 = arith.mulf %14, %18 : vector<2x32xf32>
    %c0_5 = arith.constant 0 : index
    %c0_6 = arith.constant 0 : index
    %20 = vector.load %arg2[%c0_5, %c0_6] : memref<1x32xf32, #tpu.memory_space<vmem>>, vector<1x32xf32>
    %21 = vector.broadcast %20 : vector<1x32xf32> to vector<2x32xf32>
    %22 = arith.mulf %19, %21 : vector<2x32xf32>
    %c0_7 = arith.constant 0 : index
    %c0_8 = arith.constant 0 : index
    %23 = vector.load %arg3[%c0_7, %c0_8] : memref<1x32xf32, #tpu.memory_space<vmem>>, vector<1x32xf32>
    %24 = vector.broadcast %23 : vector<1x32xf32> to vector<2x32xf32>
    %25 = arith.addf %22, %24 : vector<2x32xf32>
    %26 = arith.truncf %25 : vector<2x32xf32> to vector<2x32xbf16>
    %c0_9 = arith.constant 0 : index
    %c0_10 = arith.constant 0 : index
    %27 = vector.load %arg4[%c0_9, %c0_10] : memref<2x32xbf16, #tpu.memory_space<vmem>>, vector<2x32xbf16>
    tpu.vector_store %arg4[%c0_9, %c0_10], %26 {strides = array<i32>} : memref<2x32xbf16, #tpu.memory_space<vmem>>, vector<2x32xbf16>,
    return
  }
  func.func @transform_0(%arg0: i32) -> (i32, i32) {
    %c0_i32 = arith.constant 0 : i32
    %c0_i32_0 = arith.constant 0 : i32
    return %arg0, %c0_i32 : i32, i32
  }
  func.func @transform_1(%arg0: i32) -> (i32, i32) {
    %c0_i32 = arith.constant 0 : i32
    %c0_i32_0 = arith.constant 0 : i32
    %c0_i32_1 = arith.constant 0 : i32
    return %c0_i32, %c0_i32_0 : i32, i32
  }
  func.func @transform_2(%arg0: i32) -> (i32, i32) {
    %c0_i32 = arith.constant 0 : i32
    %c0_i32_0 = arith.constant 0 : i32
    %c0_i32_1 = arith.constant 0 : i32
    return %c0_i32, %c0_i32_0 : i32, i32
  }
  func.func @transform_3(%arg0: i32) -> (i32, i32) {
    %c0_i32 = arith.constant 0 : i32
    %c0_i32_0 = arith.constant 0 : i32
    return %arg0, %c0_i32 : i32, i32
  }
}

module attributes {stable_mosaic.version = 11 : i64} {
  func.func @_linear_kernel(%arg0: i32, %arg1: i32, %arg2: i32, %arg3: memref<2x32xbf16, #tpu.memory_space<vmem>>, %arg4: memref<32x16xbf16, #tpu.memory_space<vmem>>, %arg5: memref<1x16xf32, #tpu.memory_space<vmem>>, %arg6: memref<2x16xf32, #tpu.memory_space<vmem>>, %arg7: memref<2x16xf32, #tpu.memory_space<vmem>>) attributes {dimension_semantics = [#tpu.dimension_semantics<parallel>, #tpu.dimension_semantics<parallel>, #tpu.dimension_semantics<arbitrary>], iteration_bounds = array<i64: 1, 1, 1>, scalar_prefetch = 0 : i64, scratch_operands = 1 : i64, tpu.core_type = #tpu.core_type<tc>, window_params = [{transform_indices = @transform_0, window_bounds = array<i64: 2, 32>}, {transform_indices = @transform_1, window_bounds = array<i64: 32, 16>}, {transform_indices = @transform_2, window_bounds = array<i64: 1, 16>}, {transform_indices = @transform_3, window_bounds = array<i64: 2, 16>}]} {
    %c0_i32 = arith.constant 0 : i32
    %0 = arith.cmpi eq, %arg2, %c0_i32 : i32
    %1 = arith.extui %0 : i1 to i32
    %c0_i32_0 = arith.constant 0 : i32
    %2 = arith.cmpi ne, %1, %c0_i32_0 : i32
    scf.if %2 {
      %cst_10 = arith.constant 0.000000e+00 : f32
      %12 = vector.broadcast %cst_10 : f32 to vector<2x16xf32>
      %c0_11 = arith.constant 0 : index
      %c0_12 = arith.constant 0 : index
      %13 = vector.load %arg7[%c0_11, %c0_12] : memref<2x16xf32, #tpu.memory_space<vmem>>, vector<2x16xf32>
      tpu.vector_store %arg7[%c0_11, %c0_12], %12 {strides = array<i32>} : memref<2x16xf32, #tpu.memory_space<vmem>>, vector<2x16xf32>,
    } else {
    }
    %c0 = arith.constant 0 : index
    %c0_1 = arith.constant 0 : index
    %3 = vector.load %arg7[%c0, %c0_1] : memref<2x16xf32, #tpu.memory_space<vmem>>, vector<2x16xf32>
    %c0_2 = arith.constant 0 : index
    %c0_3 = arith.constant 0 : index
    %4 = vector.load %arg3[%c0_2, %c0_3] : memref<2x32xbf16, #tpu.memory_space<vmem>>, vector<2x32xbf16>
    %c0_4 = arith.constant 0 : index
    %c0_5 = arith.constant 0 : index
    %5 = vector.load %arg4[%c0_4, %c0_5] : memref<32x16xbf16, #tpu.memory_space<vmem>>, vector<32x16xbf16>
    %cst = arith.constant dense<0.000000e+00> : vector<2x16xf32>
    %6 = tpu.matmul %4, %5, %cst {dimension_numbers = #tpu.dot_dimension_numbers<[1], [0], [0], [1], [0, 0, 1, 1], [], []>} : vector<2x32xbf16>, vector<32x16xbf16>, vector<2x16xf32> -> vector<2x16xf32>
    %7 = arith.addf %3, %6 : vector<2x16xf32>
    %c0_6 = arith.constant 0 : index
    %c0_7 = arith.constant 0 : index
    %8 = vector.load %arg7[%c0_6, %c0_7] : memref<2x16xf32, #tpu.memory_space<vmem>>, vector<2x16xf32>
    tpu.vector_store %arg7[%c0_6, %c0_7], %7 {strides = array<i32>} : memref<2x16xf32, #tpu.memory_space<vmem>>, vector<2x16xf32>,
    %c0_i32_8 = arith.constant 0 : i32
    %9 = arith.cmpi eq, %arg2, %c0_i32_8 : i32
    %10 = arith.extui %9 : i1 to i32
    %c0_i32_9 = arith.constant 0 : i32
    %11 = arith.cmpi ne, %10, %c0_i32_9 : i32
    scf.if %11 {
      %c0_10 = arith.constant 0 : index
      %c0_11 = arith.constant 0 : index
      %12 = vector.load %arg7[%c0_10, %c0_11] : memref<2x16xf32, #tpu.memory_space<vmem>>, vector<2x16xf32>
      %c0_12 = arith.constant 0 : index
      %c0_13 = arith.constant 0 : index
      %13 = vector.load %arg5[%c0_12, %c0_13] : memref<1x16xf32, #tpu.memory_space<vmem>>, vector<1x16xf32>
      %14 = vector.broadcast %13 : vector<1x16xf32> to vector<2x16xf32>
      %15 = arith.addf %12, %14 : vector<2x16xf32>
      %c0_14 = arith.constant 0 : index
      %c0_15 = arith.constant 0 : index
      %16 = vector.load %arg6[%c0_14, %c0_15] : memref<2x16xf32, #tpu.memory_space<vmem>>, vector<2x16xf32>
      tpu.vector_store %arg6[%c0_14, %c0_15], %15 {strides = array<i32>} : memref<2x16xf32, #tpu.memory_space<vmem>>, vector<2x16xf32>,
    } else {
    }
    return
  }
  func.func @transform_0(%arg0: i32, %arg1: i32, %arg2: i32) -> (i32, i32) {
    %c0_i32 = arith.constant 0 : i32
    return %arg0, %arg2 : i32, i32
  }
  func.func @transform_1(%arg0: i32, %arg1: i32, %arg2: i32) -> (i32, i32) {
    %c0_i32 = arith.constant 0 : i32
    return %arg2, %arg1 : i32, i32
  }
  func.func @transform_2(%arg0: i32, %arg1: i32, %arg2: i32) -> (i32, i32) {
    %c0_i32 = arith.constant 0 : i32
    %c0_i32_0 = arith.constant 0 : i32
    return %c0_i32, %arg1 : i32, i32
  }
  func.func @transform_3(%arg0: i32, %arg1: i32, %arg2: i32) -> (i32, i32) {
    %c0_i32 = arith.constant 0 : i32
    return %arg0, %arg1 : i32, i32
  }
}

module attributes {stable_mosaic.version = 11 : i64} {
  func.func @_l2norm_kernel(%arg0: memref<2x16xf32, #tpu.memory_space<vmem>>, %arg1: memref<2x16xf32, #tpu.memory_space<vmem>>) attributes {dimension_semantics = [], scalar_prefetch = 0 : i64, scratch_operands = 0 : i64, tpu.core_type = #tpu.core_type<tc>} {
    %c0 = arith.constant 0 : index
    %c0_0 = arith.constant 0 : index
    %0 = vector.load %arg0[%c0, %c0_0] : memref<2x16xf32, #tpu.memory_space<vmem>>, vector<2x16xf32>
    %1 = arith.mulf %0, %0 : vector<2x16xf32>
    %cst = arith.constant dense<0.000000e+00> : vector<2xf32>
    %2 = vector.multi_reduction <add>, %1, %cst [1] : vector<2x16xf32> to vector<2xf32>
    %3 = vector.shape_cast %2 : vector<2xf32> to vector<2x1xf32>
    %cst_1 = arith.constant 9.99999996E-13 : f32
    %4 = vector.broadcast %cst_1 : f32 to vector<2x1xf32>
    %5 = arith.addf %3, %4 : vector<2x1xf32>
    %6 = math.rsqrt %5 : vector<2x1xf32>
    %7 = vector.broadcast %6 : vector<2x1xf32> to vector<2x16xf32>
    %8 = arith.mulf %0, %7 : vector<2x16xf32>
    %c0_2 = arith.constant 0 : index
    %c0_3 = arith.constant 0 : index
    %9 = vector.load %arg1[%c0_2, %c0_3] : memref<2x16xf32, #tpu.memory_space<vmem>>, vector<2x16xf32>
    tpu.vector_store %arg1[%c0_2, %c0_3], %8 {strides = array<i32>} : memref<2x16xf32, #tpu.memory_space<vmem>>, vector<2x16xf32>,
    return
  }
}

module attributes {stable_mosaic.version = 11 : i64} {
  func.func @_linear_kernel(%arg0: i32, %arg1: i32, %arg2: i32, %arg3: memref<16x192xf32, #tpu.memory_space<vmem>>, %arg4: memref<192x32xbf16, #tpu.memory_space<vmem>>, %arg5: memref<1x32xf32, #tpu.memory_space<vmem>>, %arg6: memref<16x32xf32, #tpu.memory_space<vmem>>, %arg7: memref<16x32xf32, #tpu.memory_space<vmem>>) attributes {dimension_semantics = [#tpu.dimension_semantics<parallel>, #tpu.dimension_semantics<parallel>, #tpu.dimension_semantics<arbitrary>], iteration_bounds = array<i64: 1, 1, 1>, scalar_prefetch = 0 : i64, scratch_operands = 1 : i64, tpu.core_type = #tpu.core_type<tc>, window_params = [{transform_indices = @transform_0, window_bounds = array<i64: 16, 192>}, {transform_indices = @transform_1, window_bounds = array<i64: 192, 32>}, {transform_indices = @transform_2, window_bounds = array<i64: 1, 32>}, {transform_indices = @transform_3, window_bounds = array<i64: 16, 32>}]} {
    %c0_i32 = arith.constant 0 : i32
    %0 = arith.cmpi eq, %arg2, %c0_i32 : i32
    %1 = arith.extui %0 : i1 to i32
    %c0_i32_0 = arith.constant 0 : i32
    %2 = arith.cmpi ne, %1, %c0_i32_0 : i32
    scf.if %2 {
      %cst_10 = arith.constant 0.000000e+00 : f32
      %13 = vector.broadcast %cst_10 : f32 to vector<16x32xf32>
      %c0_11 = arith.constant 0 : index
      %c0_12 = arith.constant 0 : index
      %14 = vector.load %arg7[%c0_11, %c0_12] : memref<16x32xf32, #tpu.memory_space<vmem>>, vector<16x32xf32>
      tpu.vector_store %arg7[%c0_11, %c0_12], %13 {strides = array<i32>} : memref<16x32xf32, #tpu.memory_space<vmem>>, vector<16x32xf32>,
    } else {
    }
    %c0 = arith.constant 0 : index
    %c0_1 = arith.constant 0 : index
    %3 = vector.load %arg7[%c0, %c0_1] : memref<16x32xf32, #tpu.memory_space<vmem>>, vector<16x32xf32>
    %c0_2 = arith.constant 0 : index
    %c0_3 = arith.constant 0 : index
    %4 = vector.load %arg3[%c0_2, %c0_3] : memref<16x192xf32, #tpu.memory_space<vmem>>, vector<16x192xf32>
    %5 = arith.truncf %4 : vector<16x192xf32> to vector<16x192xbf16>
    %c0_4 = arith.constant 0 : index
    %c0_5 = arith.constant 0 : index
    %6 = vector.load %arg4[%c0_4, %c0_5] : memref<192x32xbf16, #tpu.memory_space<vmem>>, vector<192x32xbf16>
    %cst = arith.constant dense<0.000000e+00> : vector<16x32xf32>
    %7 = tpu.matmul %5, %6, %cst {dimension_numbers = #tpu.dot_dimension_numbers<[1], [0], [0], [1], [0, 0, 1, 1], [], []>} : vector<16x192xbf16>, vector<192x32xbf16>, vector<16x32xf32> -> vector<16x32xf32>
    %8 = arith.addf %3, %7 : vector<16x32xf32>
    %c0_6 = arith.constant 0 : index
    %c0_7 = arith.constant 0 : index
    %9 = vector.load %arg7[%c0_6, %c0_7] : memref<16x32xf32, #tpu.memory_space<vmem>>, vector<16x32xf32>
    tpu.vector_store %arg7[%c0_6, %c0_7], %8 {strides = array<i32>} : memref<16x32xf32, #tpu.memory_space<vmem>>, vector<16x32xf32>,
    %c0_i32_8 = arith.constant 0 : i32
    %10 = arith.cmpi eq, %arg2, %c0_i32_8 : i32
    %11 = arith.extui %10 : i1 to i32
    %c0_i32_9 = arith.constant 0 : i32
    %12 = arith.cmpi ne, %11, %c0_i32_9 : i32
    scf.if %12 {
      %c0_10 = arith.constant 0 : index
      %c0_11 = arith.constant 0 : index
      %13 = vector.load %arg7[%c0_10, %c0_11] : memref<16x32xf32, #tpu.memory_space<vmem>>, vector<16x32xf32>
      %c0_12 = arith.constant 0 : index
      %c0_13 = arith.constant 0 : index
      %14 = vector.load %arg5[%c0_12, %c0_13] : memref<1x32xf32, #tpu.memory_space<vmem>>, vector<1x32xf32>
      %15 = vector.broadcast %14 : vector<1x32xf32> to vector<16x32xf32>
      %16 = arith.addf %13, %15 : vector<16x32xf32>
      %c0_14 = arith.constant 0 : index
      %c0_15 = arith.constant 0 : index
      %17 = vector.load %arg6[%c0_14, %c0_15] : memref<16x32xf32, #tpu.memory_space<vmem>>, vector<16x32xf32>
      tpu.vector_store %arg6[%c0_14, %c0_15], %16 {strides = array<i32>} : memref<16x32xf32, #tpu.memory_space<vmem>>, vector<16x32xf32>,
    } else {
    }
    return
  }
  func.func @transform_0(%arg0: i32, %arg1: i32, %arg2: i32) -> (i32, i32) {
    %c0_i32 = arith.constant 0 : i32
    return %arg0, %arg2 : i32, i32
  }
  func.func @transform_1(%arg0: i32, %arg1: i32, %arg2: i32) -> (i32, i32) {
    %c0_i32 = arith.constant 0 : i32
    return %arg2, %arg1 : i32, i32
  }
  func.func @transform_2(%arg0: i32, %arg1: i32, %arg2: i32) -> (i32, i32) {
    %c0_i32 = arith.constant 0 : i32
    %c0_i32_0 = arith.constant 0 : i32
    return %c0_i32, %arg1 : i32, i32
  }
  func.func @transform_3(%arg0: i32, %arg1: i32, %arg2: i32) -> (i32, i32) {
    %c0_i32 = arith.constant 0 : i32
    return %arg0, %arg1 : i32, i32
  }
}

module attributes {stable_mosaic.version = 11 : i64} {
  func.func @_layernorm_kernel(%arg0: i32, %arg1: memref<20x32xbf16, #tpu.memory_space<vmem>>, %arg2: memref<1x32xf32, #tpu.memory_space<vmem>>, %arg3: memref<1x32xf32, #tpu.memory_space<vmem>>, %arg4: memref<20x32xbf16, #tpu.memory_space<vmem>>) attributes {dimension_semantics = [#tpu.dimension_semantics<parallel>], iteration_bounds = array<i64: 1>, scalar_prefetch = 0 : i64, scratch_operands = 0 : i64, tpu.core_type = #tpu.core_type<tc>, window_params = [{transform_indices = @transform_0, window_bounds = array<i64: 20, 32>}, {pipeline_mode = #tpu.pipeline_mode<synchronous>, transform_indices = @transform_1, window_bounds = array<i64: 1, 32>}, {pipeline_mode = #tpu.pipeline_mode<synchronous>, transform_indices = @transform_2, window_bounds = array<i64: 1, 32>}, {transform_indices = @transform_3, window_bounds = array<i64: 20, 32>}]} {
    %c0 = arith.constant 0 : index
    %c0_0 = arith.constant 0 : index
    %0 = vector.load %arg1[%c0, %c0_0] : memref<20x32xbf16, #tpu.memory_space<vmem>>, vector<20x32xbf16>
    %1 = arith.extf %0 : vector<20x32xbf16> to vector<20x32xf32>
    %cst = arith.constant dense<0.000000e+00> : vector<20xf32>
    %2 = vector.multi_reduction <add>, %1, %cst [1] : vector<20x32xf32> to vector<20xf32>
    %3 = vector.shape_cast %2 : vector<20xf32> to vector<20x1xf32>
    %cst_1 = arith.constant 3.200000e+01 : f32
    %4 = vector.broadcast %cst_1 : f32 to vector<20x1xf32>
    %5 = arith.divf %3, %4 : vector<20x1xf32>
    %6 = vector.broadcast %5 : vector<20x1xf32> to vector<20x32xf32>
    %7 = arith.subf %1, %6 : vector<20x32xf32>
    %8 = arith.mulf %7, %7 : vector<20x32xf32>
    %cst_2 = arith.constant dense<0.000000e+00> : vector<20xf32>
    %9 = vector.multi_reduction <add>, %8, %cst_2 [1] : vector<20x32xf32> to vector<20xf32>
    %10 = vector.shape_cast %9 : vector<20xf32> to vector<20x1xf32>
    %cst_3 = arith.constant 3.200000e+01 : f32
    %11 = vector.broadcast %cst_3 : f32 to vector<20x1xf32>
    %12 = arith.divf %10, %11 : vector<20x1xf32>
    %13 = vector.broadcast %5 : vector<20x1xf32> to vector<20x32xf32>
    %14 = arith.subf %1, %13 : vector<20x32xf32>
    %cst_4 = arith.constant 9.99999974E-6 : f32
    %15 = vector.broadcast %cst_4 : f32 to vector<20x1xf32>
    %16 = arith.addf %12, %15 : vector<20x1xf32>
    %17 = math.rsqrt %16 : vector<20x1xf32>
    %18 = vector.broadcast %17 : vector<20x1xf32> to vector<20x32xf32>
    %19 = arith.mulf %14, %18 : vector<20x32xf32>
    %c0_5 = arith.constant 0 : index
    %c0_6 = arith.constant 0 : index
    %20 = vector.load %arg2[%c0_5, %c0_6] : memref<1x32xf32, #tpu.memory_space<vmem>>, vector<1x32xf32>
    %21 = vector.broadcast %20 : vector<1x32xf32> to vector<20x32xf32>
    %22 = arith.mulf %19, %21 : vector<20x32xf32>
    %c0_7 = arith.constant 0 : index
    %c0_8 = arith.constant 0 : index
    %23 = vector.load %arg3[%c0_7, %c0_8] : memref<1x32xf32, #tpu.memory_space<vmem>>, vector<1x32xf32>
    %24 = vector.broadcast %23 : vector<1x32xf32> to vector<20x32xf32>
    %25 = arith.addf %22, %24 : vector<20x32xf32>
    %26 = arith.truncf %25 : vector<20x32xf32> to vector<20x32xbf16>
    %c0_9 = arith.constant 0 : index
    %c0_10 = arith.constant 0 : index
    %27 = vector.load %arg4[%c0_9, %c0_10] : memref<20x32xbf16, #tpu.memory_space<vmem>>, vector<20x32xbf16>
    tpu.vector_store %arg4[%c0_9, %c0_10], %26 {strides = array<i32>} : memref<20x32xbf16, #tpu.memory_space<vmem>>, vector<20x32xbf16>,
    return
  }
  func.func @transform_0(%arg0: i32) -> (i32, i32) {
    %c0_i32 = arith.constant 0 : i32
    %c0_i32_0 = arith.constant 0 : i32
    return %arg0, %c0_i32 : i32, i32
  }
  func.func @transform_1(%arg0: i32) -> (i32, i32) {
    %c0_i32 = arith.constant 0 : i32
    %c0_i32_0 = arith.constant 0 : i32
    %c0_i32_1 = arith.constant 0 : i32
    return %c0_i32, %c0_i32_0 : i32, i32
  }
  func.func @transform_2(%arg0: i32) -> (i32, i32) {
    %c0_i32 = arith.constant 0 : i32
    %c0_i32_0 = arith.constant 0 : i32
    %c0_i32_1 = arith.constant 0 : i32
    return %c0_i32, %c0_i32_0 : i32, i32
  }
  func.func @transform_3(%arg0: i32) -> (i32, i32) {
    %c0_i32 = arith.constant 0 : i32
    %c0_i32_0 = arith.constant 0 : i32
    return %arg0, %c0_i32 : i32, i32
  }
}

module attributes {stable_mosaic.version = 11 : i64} {
  func.func @_linear_kernel(%arg0: i32, %arg1: i32, %arg2: i32, %arg3: memref<20x32xbf16, #tpu.memory_space<vmem>>, %arg4: memref<32x96xbf16, #tpu.memory_space<vmem>>, %arg5: memref<1x96xf32, #tpu.memory_space<vmem>>, %arg6: memref<20x96xbf16, #tpu.memory_space<vmem>>, %arg7: memref<20x96xf32, #tpu.memory_space<vmem>>) attributes {dimension_semantics = [#tpu.dimension_semantics<parallel>, #tpu.dimension_semantics<parallel>, #tpu.dimension_semantics<arbitrary>], iteration_bounds = array<i64: 1, 1, 1>, scalar_prefetch = 0 : i64, scratch_operands = 1 : i64, tpu.core_type = #tpu.core_type<tc>, window_params = [{transform_indices = @transform_0, window_bounds = array<i64: 20, 32>}, {transform_indices = @transform_1, window_bounds = array<i64: 32, 96>}, {transform_indices = @transform_2, window_bounds = array<i64: 1, 96>}, {transform_indices = @transform_3, window_bounds = array<i64: 20, 96>}]} {
    %c0_i32 = arith.constant 0 : i32
    %0 = arith.cmpi eq, %arg2, %c0_i32 : i32
    %1 = arith.extui %0 : i1 to i32
    %c0_i32_0 = arith.constant 0 : i32
    %2 = arith.cmpi ne, %1, %c0_i32_0 : i32
    scf.if %2 {
      %cst_10 = arith.constant 0.000000e+00 : f32
      %12 = vector.broadcast %cst_10 : f32 to vector<20x96xf32>
      %c0_11 = arith.constant 0 : index
      %c0_12 = arith.constant 0 : index
      %13 = vector.load %arg7[%c0_11, %c0_12] : memref<20x96xf32, #tpu.memory_space<vmem>>, vector<20x96xf32>
      tpu.vector_store %arg7[%c0_11, %c0_12], %12 {strides = array<i32>} : memref<20x96xf32, #tpu.memory_space<vmem>>, vector<20x96xf32>,
    } else {
    }
    %c0 = arith.constant 0 : index
    %c0_1 = arith.constant 0 : index
    %3 = vector.load %arg7[%c0, %c0_1] : memref<20x96xf32, #tpu.memory_space<vmem>>, vector<20x96xf32>
    %c0_2 = arith.constant 0 : index
    %c0_3 = arith.constant 0 : index
    %4 = vector.load %arg3[%c0_2, %c0_3] : memref<20x32xbf16, #tpu.memory_space<vmem>>, vector<20x32xbf16>
    %c0_4 = arith.constant 0 : index
    %c0_5 = arith.constant 0 : index
    %5 = vector.load %arg4[%c0_4, %c0_5] : memref<32x96xbf16, #tpu.memory_space<vmem>>, vector<32x96xbf16>
    %cst = arith.constant dense<0.000000e+00> : vector<20x96xf32>
    %6 = tpu.matmul %4, %5, %cst {dimension_numbers = #tpu.dot_dimension_numbers<[1], [0], [0], [1], [0, 0, 1, 1], [], []>} : vector<20x32xbf16>, vector<32x96xbf16>, vector<20x96xf32> -> vector<20x96xf32>
    %7 = arith.addf %3, %6 : vector<20x96xf32>
    %c0_6 = arith.constant 0 : index
    %c0_7 = arith.constant 0 : index
    %8 = vector.load %arg7[%c0_6, %c0_7] : memref<20x96xf32, #tpu.memory_space<vmem>>, vector<20x96xf32>
    tpu.vector_store %arg7[%c0_6, %c0_7], %7 {strides = array<i32>} : memref<20x96xf32, #tpu.memory_space<vmem>>, vector<20x96xf32>,
    %c0_i32_8 = arith.constant 0 : i32
    %9 = arith.cmpi eq, %arg2, %c0_i32_8 : i32
    %10 = arith.extui %9 : i1 to i32
    %c0_i32_9 = arith.constant 0 : i32
    %11 = arith.cmpi ne, %10, %c0_i32_9 : i32
    scf.if %11 {
      %c0_10 = arith.constant 0 : index
      %c0_11 = arith.constant 0 : index
      %12 = vector.load %arg7[%c0_10, %c0_11] : memref<20x96xf32, #tpu.memory_space<vmem>>, vector<20x96xf32>
      %c0_12 = arith.constant 0 : index
      %c0_13 = arith.constant 0 : index
      %13 = vector.load %arg5[%c0_12, %c0_13] : memref<1x96xf32, #tpu.memory_space<vmem>>, vector<1x96xf32>
      %14 = vector.broadcast %13 : vector<1x96xf32> to vector<20x96xf32>
      %15 = arith.addf %12, %14 : vector<20x96xf32>
      %16 = arith.truncf %15 : vector<20x96xf32> to vector<20x96xbf16>
      %c0_14 = arith.constant 0 : index
      %c0_15 = arith.constant 0 : index
      %17 = vector.load %arg6[%c0_14, %c0_15] : memref<20x96xbf16, #tpu.memory_space<vmem>>, vector<20x96xbf16>
      tpu.vector_store %arg6[%c0_14, %c0_15], %16 {strides = array<i32>} : memref<20x96xbf16, #tpu.memory_space<vmem>>, vector<20x96xbf16>,
    } else {
    }
    return
  }
  func.func @transform_0(%arg0: i32, %arg1: i32, %arg2: i32) -> (i32, i32) {
    %c0_i32 = arith.constant 0 : i32
    return %arg0, %arg2 : i32, i32
  }
  func.func @transform_1(%arg0: i32, %arg1: i32, %arg2: i32) -> (i32, i32) {
    %c0_i32 = arith.constant 0 : i32
    return %arg2, %arg1 : i32, i32
  }
  func.func @transform_2(%arg0: i32, %arg1: i32, %arg2: i32) -> (i32, i32) {
    %c0_i32 = arith.constant 0 : i32
    %c0_i32_0 = arith.constant 0 : i32
    return %c0_i32, %arg1 : i32, i32
  }
  func.func @transform_3(%arg0: i32, %arg1: i32, %arg2: i32) -> (i32, i32) {
    %c0_i32 = arith.constant 0 : i32
    return %arg0, %arg1 : i32, i32
  }
}

module attributes {stable_mosaic.version = 11 : i64} {
  func.func @_add_layernorm_kernel(%arg0: i32, %arg1: memref<1x5x32xf32, #tpu.memory_space<vmem>>, %arg2: memref<1x5x32xf32, #tpu.memory_space<vmem>>, %arg3: memref<1x1x32xf32, #tpu.memory_space<vmem>>, %arg4: memref<1x1x32xf32, #tpu.memory_space<vmem>>, %arg5: memref<1x5x32xbf16, #tpu.memory_space<vmem>>) attributes {dimension_semantics = [#tpu.dimension_semantics<parallel>], iteration_bounds = array<i64: 4>, scalar_prefetch = 0 : i64, scratch_operands = 0 : i64, tpu.core_type = #tpu.core_type<tc>, window_params = [{transform_indices = @transform_0, window_bounds = array<i64: 1, 5, 32>}, {pipeline_mode = #tpu.pipeline_mode<synchronous>, transform_indices = @transform_1, window_bounds = array<i64: 1, 5, 32>}, {pipeline_mode = #tpu.pipeline_mode<synchronous>, transform_indices = @transform_2, window_bounds = array<i64: 1, 1, 32>}, {pipeline_mode = #tpu.pipeline_mode<synchronous>, transform_indices = @transform_3, window_bounds = array<i64: 1, 1, 32>}, {transform_indices = @transform_4, window_bounds = array<i64: 1, 5, 32>}]} {
    %c0 = arith.constant 0 : index
    %c0_0 = arith.constant 0 : index
    %c0_1 = arith.constant 0 : index
    %0 = vector.load %arg1[%c0, %c0_0, %c0_1] : memref<1x5x32xf32, #tpu.memory_space<vmem>>, vector<1x5x32xf32>
    %c0_2 = arith.constant 0 : index
    %c0_3 = arith.constant 0 : index
    %c0_4 = arith.constant 0 : index
    %1 = vector.load %arg2[%c0_2, %c0_3, %c0_4] : memref<1x5x32xf32, #tpu.memory_space<vmem>>, vector<1x5x32xf32>
    %2 = arith.addf %0, %1 : vector<1x5x32xf32>
    %cst = arith.constant dense<0.000000e+00> : vector<1x5xf32>
    %3 = vector.multi_reduction <add>, %2, %cst [2] : vector<1x5x32xf32> to vector<1x5xf32>
    %4 = vector.shape_cast %3 : vector<1x5xf32> to vector<1x5x1xf32>
    %cst_5 = arith.constant 3.200000e+01 : f32
    %5 = vector.broadcast %cst_5 : f32 to vector<1x5x1xf32>
    %6 = arith.divf %4, %5 : vector<1x5x1xf32>
    %7 = vector.broadcast %6 : vector<1x5x1xf32> to vector<1x5x32xf32>
    %8 = arith.subf %2, %7 : vector<1x5x32xf32>
    %9 = arith.mulf %8, %8 : vector<1x5x32xf32>
    %cst_6 = arith.constant dense<0.000000e+00> : vector<1x5xf32>
    %10 = vector.multi_reduction <add>, %9, %cst_6 [2] : vector<1x5x32xf32> to vector<1x5xf32>
    %11 = vector.shape_cast %10 : vector<1x5xf32> to vector<1x5x1xf32>
    %cst_7 = arith.constant 3.200000e+01 : f32
    %12 = vector.broadcast %cst_7 : f32 to vector<1x5x1xf32>
    %13 = arith.divf %11, %12 : vector<1x5x1xf32>
    %14 = vector.broadcast %6 : vector<1x5x1xf32> to vector<1x5x32xf32>
    %15 = arith.subf %2, %14 : vector<1x5x32xf32>
    %cst_8 = arith.constant 9.99999974E-6 : f32
    %16 = vector.broadcast %cst_8 : f32 to vector<1x5x1xf32>
    %17 = arith.addf %13, %16 : vector<1x5x1xf32>
    %18 = math.rsqrt %17 : vector<1x5x1xf32>
    %19 = vector.broadcast %18 : vector<1x5x1xf32> to vector<1x5x32xf32>
    %20 = arith.mulf %15, %19 : vector<1x5x32xf32>
    %c0_9 = arith.constant 0 : index
    %c0_10 = arith.constant 0 : index
    %c0_11 = arith.constant 0 : index
    %21 = vector.load %arg3[%c0_9, %c0_10, %c0_11] : memref<1x1x32xf32, #tpu.memory_space<vmem>>, vector<1x1x32xf32>
    %22 = vector.broadcast %21 : vector<1x1x32xf32> to vector<1x5x32xf32>
    %23 = arith.mulf %20, %22 : vector<1x5x32xf32>
    %c0_12 = arith.constant 0 : index
    %c0_13 = arith.constant 0 : index
    %c0_14 = arith.constant 0 : index
    %24 = vector.load %arg4[%c0_12, %c0_13, %c0_14] : memref<1x1x32xf32, #tpu.memory_space<vmem>>, vector<1x1x32xf32>
    %25 = vector.broadcast %24 : vector<1x1x32xf32> to vector<1x5x32xf32>
    %26 = arith.addf %23, %25 : vector<1x5x32xf32>
    %27 = arith.truncf %26 : vector<1x5x32xf32> to vector<1x5x32xbf16>
    %c0_15 = arith.constant 0 : index
    %c0_16 = arith.constant 0 : index
    %c0_17 = arith.constant 0 : index
    %28 = vector.load %arg5[%c0_15, %c0_16, %c0_17] : memref<1x5x32xbf16, #tpu.memory_space<vmem>>, vector<1x5x32xbf16>
    tpu.vector_store %arg5[%c0_15, %c0_16, %c0_17], %27 {strides = array<i32>} : memref<1x5x32xbf16, #tpu.memory_space<vmem>>, vector<1x5x32xbf16>,
    return
  }
  func.func @transform_0(%arg0: i32) -> (i32, i32, i32) {
    %c0_i32 = arith.constant 0 : i32
    %c0_i32_0 = arith.constant 0 : i32
    %c0_i32_1 = arith.constant 0 : i32
    return %arg0, %c0_i32, %c0_i32_0 : i32, i32, i32
  }
  func.func @transform_1(%arg0: i32) -> (i32, i32, i32) {
    %c0_i32 = arith.constant 0 : i32
    %c0_i32_0 = arith.constant 0 : i32
    %c0_i32_1 = arith.constant 0 : i32
    %c0_i32_2 = arith.constant 0 : i32
    return %c0_i32, %c0_i32_0, %c0_i32_1 : i32, i32, i32
  }
  func.func @transform_2(%arg0: i32) -> (i32, i32, i32) {
    %c0_i32 = arith.constant 0 : i32
    %c0_i32_0 = arith.constant 0 : i32
    %c0_i32_1 = arith.constant 0 : i32
    %c0_i32_2 = arith.constant 0 : i32
    return %c0_i32, %c0_i32_0, %c0_i32_1 : i32, i32, i32
  }
  func.func @transform_3(%arg0: i32) -> (i32, i32, i32) {
    %c0_i32 = arith.constant 0 : i32
    %c0_i32_0 = arith.constant 0 : i32
    %c0_i32_1 = arith.constant 0 : i32
    %c0_i32_2 = arith.constant 0 : i32
    return %c0_i32, %c0_i32_0, %c0_i32_1 : i32, i32, i32
  }
  func.func @transform_4(%arg0: i32) -> (i32, i32, i32) {
    %c0_i32 = arith.constant 0 : i32
    %c0_i32_0 = arith.constant 0 : i32
    %c0_i32_1 = arith.constant 0 : i32
    return %arg0, %c0_i32, %c0_i32_0 : i32, i32, i32
  }
}

module attributes {stable_mosaic.version = 11 : i64} {
  func.func @_attn_kernel(%arg0: i32, %arg1: memref<2x5x16xbf16, #tpu.memory_space<vmem>>, %arg2: memref<2x5x16xbf16, #tpu.memory_space<vmem>>, %arg3: memref<2x5x16xbf16, #tpu.memory_space<vmem>>, %arg4: memref<2x5x16xbf16, #tpu.memory_space<vmem>>) attributes {dimension_semantics = [#tpu.dimension_semantics<parallel>], iteration_bounds = array<i64: 4>, scalar_prefetch = 0 : i64, scratch_operands = 0 : i64, tpu.core_type = #tpu.core_type<tc>, window_params = [{transform_indices = @transform_0, window_bounds = array<i64: 2, 5, 16>}, {transform_indices = @transform_1, window_bounds = array<i64: 2, 5, 16>}, {transform_indices = @transform_2, window_bounds = array<i64: 2, 5, 16>}, {transform_indices = @transform_3, window_bounds = array<i64: 2, 5, 16>}]} {
    %c0 = arith.constant 0 : index
    %c0_0 = arith.constant 0 : index
    %c0_1 = arith.constant 0 : index
    %0 = vector.load %arg1[%c0, %c0_0, %c0_1] : memref<2x5x16xbf16, #tpu.memory_space<vmem>>, vector<2x5x16xbf16>
    %cst = arith.constant 2.500000e-01 : bf16
    %1 = vector.broadcast %cst : bf16 to vector<2x5x16xbf16>
    %2 = arith.mulf %0, %1 : vector<2x5x16xbf16>
    %c0_2 = arith.constant 0 : index
    %c0_3 = arith.constant 0 : index
    %c0_4 = arith.constant 0 : index
    %3 = vector.load %arg2[%c0_2, %c0_3, %c0_4] : memref<2x5x16xbf16, #tpu.memory_space<vmem>>, vector<2x5x16xbf16>
    %c0_5 = arith.constant 0 : index
    %c0_6 = arith.constant 0 : index
    %c0_7 = arith.constant 0 : index
    %4 = vector.load %arg3[%c0_5, %c0_6, %c0_7] : memref<2x5x16xbf16, #tpu.memory_space<vmem>>, vector<2x5x16xbf16>
    "tpu.trace_start"() <{level = 10 : i32, message = "hqd,hkd->hqk"}> : () -> ()
    %cst_8 = arith.constant dense<0.000000e+00> : vector<2x5x5xf32>
    %5 = tpu.matmul %2, %3, %cst_8 {dimension_numbers = #tpu.dot_dimension_numbers<[2], [2], [1], [1], [0, 0, 0, 1, 1, 1], [0], [0]>} : vector<2x5x16xbf16>, vector<2x5x16xbf16>, vector<2x5x5xf32> -> vector<2x5x5xf32>
    "tpu.trace_stop"() : () -> ()
    %cst_9 = arith.constant dense<0xFF800000> : vector<2x5xf32>
    %6 = vector.multi_reduction <maximumf>, %5, %cst_9 [2] : vector<2x5x5xf32> to vector<2x5xf32>
    %7 = vector.shape_cast %6 : vector<2x5xf32> to vector<2x5x1xf32>
    %8 = vector.broadcast %7 : vector<2x5x1xf32> to vector<2x5x5xf32>
    %9 = arith.subf %5, %8 : vector<2x5x5xf32>
    %10 = math.exp %9 : vector<2x5x5xf32>
    %cst_10 = arith.constant dense<0.000000e+00> : vector<2x5xf32>
    %11 = vector.multi_reduction <add>, %10, %cst_10 [2] : vector<2x5x5xf32> to vector<2x5xf32>
    %12 = vector.shape_cast %11 : vector<2x5xf32> to vector<2x5x1xf32>
    %13 = tpu.reciprocal %12 {approx = true} : vector<2x5x1xf32> -> vector<2x5x1xf32>
    %14 = vector.broadcast %13 : vector<2x5x1xf32> to vector<2x5x5xf32>
    %15 = arith.mulf %10, %14 : vector<2x5x5xf32>
    %16 = arith.truncf %15 : vector<2x5x5xf32> to vector<2x5x5xbf16>
    "tpu.trace_start"() <{level = 10 : i32, message = "hqk,hkd->hqd"}> : () -> ()
    %cst_11 = arith.constant dense<0.000000e+00> : vector<2x5x16xf32>
    %17 = tpu.matmul %16, %4, %cst_11 {dimension_numbers = #tpu.dot_dimension_numbers<[2], [1], [1], [2], [0, 0, 0, 1, 1, 2], [0], [0]>} : vector<2x5x5xbf16>, vector<2x5x16xbf16>, vector<2x5x16xf32> -> vector<2x5x16xf32>
    "tpu.trace_stop"() : () -> ()
    %18 = arith.truncf %17 : vector<2x5x16xf32> to vector<2x5x16xbf16>
    %c0_12 = arith.constant 0 : index
    %c0_13 = arith.constant 0 : index
    %c0_14 = arith.constant 0 : index
    %19 = vector.load %arg4[%c0_12, %c0_13, %c0_14] : memref<2x5x16xbf16, #tpu.memory_space<vmem>>, vector<2x5x16xbf16>
    tpu.vector_store %arg4[%c0_12, %c0_13, %c0_14], %18 {strides = array<i32>} : memref<2x5x16xbf16, #tpu.memory_space<vmem>>, vector<2x5x16xbf16>,
    return
  }
  func.func @transform_0(%arg0: i32) -> (i32, i32, i32) {
    %c0_i32 = arith.constant 0 : i32
    %c0_i32_0 = arith.constant 0 : i32
    %c0_i32_1 = arith.constant 0 : i32
    return %arg0, %c0_i32, %c0_i32_0 : i32, i32, i32
  }
  func.func @transform_1(%arg0: i32) -> (i32, i32, i32) {
    %c0_i32 = arith.constant 0 : i32
    %c0_i32_0 = arith.constant 0 : i32
    %c0_i32_1 = arith.constant 0 : i32
    return %arg0, %c0_i32, %c0_i32_0 : i32, i32, i32
  }
  func.func @transform_2(%arg0: i32) -> (i32, i32, i32) {
    %c0_i32 = arith.constant 0 : i32
    %c0_i32_0 = arith.constant 0 : i32
    %c0_i32_1 = arith.constant 0 : i32
    return %arg0, %c0_i32, %c0_i32_0 : i32, i32, i32
  }
  func.func @transform_3(%arg0: i32) -> (i32, i32, i32) {
    %c0_i32 = arith.constant 0 : i32
    %c0_i32_0 = arith.constant 0 : i32
    %c0_i32_1 = arith.constant 0 : i32
    return %arg0, %c0_i32, %c0_i32_0 : i32, i32, i32
  }
}

module attributes {stable_mosaic.version = 11 : i64} {
  func.func @_linear_kernel(%arg0: i32, %arg1: i32, %arg2: i32, %arg3: memref<20x32xbf16, #tpu.memory_space<vmem>>, %arg4: memref<32x32xbf16, #tpu.memory_space<vmem>>, %arg5: memref<1x32xf32, #tpu.memory_space<vmem>>, %arg6: memref<20x32xbf16, #tpu.memory_space<vmem>>, %arg7: memref<20x32xbf16, #tpu.memory_space<vmem>>, %arg8: memref<20x32xf32, #tpu.memory_space<vmem>>) attributes {dimension_semantics = [#tpu.dimension_semantics<parallel>, #tpu.dimension_semantics<parallel>, #tpu.dimension_semantics<arbitrary>], iteration_bounds = array<i64: 1, 1, 1>, scalar_prefetch = 0 : i64, scratch_operands = 1 : i64, tpu.core_type = #tpu.core_type<tc>, window_params = [{transform_indices = @transform_0, window_bounds = array<i64: 20, 32>}, {transform_indices = @transform_1, window_bounds = array<i64: 32, 32>}, {transform_indices = @transform_2, window_bounds = array<i64: 1, 32>}, {transform_indices = @transform_3, window_bounds = array<i64: 20, 32>}, {transform_indices = @transform_4, window_bounds = array<i64: 20, 32>}]} {
    %c0_i32 = arith.constant 0 : i32
    %0 = arith.cmpi eq, %arg2, %c0_i32 : i32
    %1 = arith.extui %0 : i1 to i32
    %c0_i32_0 = arith.constant 0 : i32
    %2 = arith.cmpi ne, %1, %c0_i32_0 : i32
    scf.if %2 {
      %cst_10 = arith.constant 0.000000e+00 : f32
      %12 = vector.broadcast %cst_10 : f32 to vector<20x32xf32>
      %c0_11 = arith.constant 0 : index
      %c0_12 = arith.constant 0 : index
      %13 = vector.load %arg8[%c0_11, %c0_12] : memref<20x32xf32, #tpu.memory_space<vmem>>, vector<20x32xf32>
      tpu.vector_store %arg8[%c0_11, %c0_12], %12 {strides = array<i32>} : memref<20x32xf32, #tpu.memory_space<vmem>>, vector<20x32xf32>,
    } else {
    }
    %c0 = arith.constant 0 : index
    %c0_1 = arith.constant 0 : index
    %3 = vector.load %arg8[%c0, %c0_1] : memref<20x32xf32, #tpu.memory_space<vmem>>, vector<20x32xf32>
    %c0_2 = arith.constant 0 : index
    %c0_3 = arith.constant 0 : index
    %4 = vector.load %arg3[%c0_2, %c0_3] : memref<20x32xbf16, #tpu.memory_space<vmem>>, vector<20x32xbf16>
    %c0_4 = arith.constant 0 : index
    %c0_5 = arith.constant 0 : index
    %5 = vector.load %arg4[%c0_4, %c0_5] : memref<32x32xbf16, #tpu.memory_space<vmem>>, vector<32x32xbf16>
    %cst = arith.constant dense<0.000000e+00> : vector<20x32xf32>
    %6 = tpu.matmul %4, %5, %cst {dimension_numbers = #tpu.dot_dimension_numbers<[1], [0], [0], [1], [0, 0, 1, 1], [], []>} : vector<20x32xbf16>, vector<32x32xbf16>, vector<20x32xf32> -> vector<20x32xf32>
    %7 = arith.addf %3, %6 : vector<20x32xf32>
    %c0_6 = arith.constant 0 : index
    %c0_7 = arith.constant 0 : index
    %8 = vector.load %arg8[%c0_6, %c0_7] : memref<20x32xf32, #tpu.memory_space<vmem>>, vector<20x32xf32>
    tpu.vector_store %arg8[%c0_6, %c0_7], %7 {strides = array<i32>} : memref<20x32xf32, #tpu.memory_space<vmem>>, vector<20x32xf32>,
    %c0_i32_8 = arith.constant 0 : i32
    %9 = arith.cmpi eq, %arg2, %c0_i32_8 : i32
    %10 = arith.extui %9 : i1 to i32
    %c0_i32_9 = arith.constant 0 : i32
    %11 = arith.cmpi ne, %10, %c0_i32_9 : i32
    scf.if %11 {
      %c0_10 = arith.constant 0 : index
      %c0_11 = arith.constant 0 : index
      %12 = vector.load %arg8[%c0_10, %c0_11] : memref<20x32xf32, #tpu.memory_space<vmem>>, vector<20x32xf32>
      %c0_12 = arith.constant 0 : index
      %c0_13 = arith.constant 0 : index
      %13 = vector.load %arg5[%c0_12, %c0_13] : memref<1x32xf32, #tpu.memory_space<vmem>>, vector<1x32xf32>
      %14 = vector.broadcast %13 : vector<1x32xf32> to vector<20x32xf32>
      %15 = arith.addf %12, %14 : vector<20x32xf32>
      %c0_14 = arith.constant 0 : index
      %c0_15 = arith.constant 0 : index
      %16 = vector.load %arg6[%c0_14, %c0_15] : memref<20x32xbf16, #tpu.memory_space<vmem>>, vector<20x32xbf16>
      %17 = arith.extf %16 : vector<20x32xbf16> to vector<20x32xf32>
      %18 = arith.addf %15, %17 : vector<20x32xf32>
      %19 = arith.truncf %18 : vector<20x32xf32> to vector<20x32xbf16>
      %c0_16 = arith.constant 0 : index
      %c0_17 = arith.constant 0 : index
      %20 = vector.load %arg7[%c0_16, %c0_17] : memref<20x32xbf16, #tpu.memory_space<vmem>>, vector<20x32xbf16>
      tpu.vector_store %arg7[%c0_16, %c0_17], %19 {strides = array<i32>} : memref<20x32xbf16, #tpu.memory_space<vmem>>, vector<20x32xbf16>,
    } else {
    }
    return
  }
  func.func @transform_0(%arg0: i32, %arg1: i32, %arg2: i32) -> (i32, i32) {
    %c0_i32 = arith.constant 0 : i32
    return %arg0, %arg2 : i32, i32
  }
  func.func @transform_1(%arg0: i32, %arg1: i32, %arg2: i32) -> (i32, i32) {
    %c0_i32 = arith.constant 0 : i32
    return %arg2, %arg1 : i32, i32
  }
  func.func @transform_2(%arg0: i32, %arg1: i32, %arg2: i32) -> (i32, i32) {
    %c0_i32 = arith.constant 0 : i32
    %c0_i32_0 = arith.constant 0 : i32
    return %c0_i32, %arg1 : i32, i32
  }
  func.func @transform_3(%arg0: i32, %arg1: i32, %arg2: i32) -> (i32, i32) {
    %c0_i32 = arith.constant 0 : i32
    return %arg0, %arg1 : i32, i32
  }
  func.func @transform_4(%arg0: i32, %arg1: i32, %arg2: i32) -> (i32, i32) {
    %c0_i32 = arith.constant 0 : i32
    return %arg0, %arg1 : i32, i32
  }
}

module attributes {stable_mosaic.version = 11 : i64} {
  func.func @_linear_kernel(%arg0: i32, %arg1: i32, %arg2: i32, %arg3: memref<20x32xbf16, #tpu.memory_space<vmem>>, %arg4: memref<32x64xbf16, #tpu.memory_space<vmem>>, %arg5: memref<1x64xf32, #tpu.memory_space<vmem>>, %arg6: memref<20x64xbf16, #tpu.memory_space<vmem>>, %arg7: memref<20x64xf32, #tpu.memory_space<vmem>>) attributes {dimension_semantics = [#tpu.dimension_semantics<parallel>, #tpu.dimension_semantics<parallel>, #tpu.dimension_semantics<arbitrary>], iteration_bounds = array<i64: 1, 1, 1>, scalar_prefetch = 0 : i64, scratch_operands = 1 : i64, tpu.core_type = #tpu.core_type<tc>, window_params = [{transform_indices = @transform_0, window_bounds = array<i64: 20, 32>}, {transform_indices = @transform_1, window_bounds = array<i64: 32, 64>}, {transform_indices = @transform_2, window_bounds = array<i64: 1, 64>}, {transform_indices = @transform_3, window_bounds = array<i64: 20, 64>}]} {
    %c0_i32 = arith.constant 0 : i32
    %0 = arith.cmpi eq, %arg2, %c0_i32 : i32
    %1 = arith.extui %0 : i1 to i32
    %c0_i32_0 = arith.constant 0 : i32
    %2 = arith.cmpi ne, %1, %c0_i32_0 : i32
    scf.if %2 {
      %cst_10 = arith.constant 0.000000e+00 : f32
      %12 = vector.broadcast %cst_10 : f32 to vector<20x64xf32>
      %c0_11 = arith.constant 0 : index
      %c0_12 = arith.constant 0 : index
      %13 = vector.load %arg7[%c0_11, %c0_12] : memref<20x64xf32, #tpu.memory_space<vmem>>, vector<20x64xf32>
      tpu.vector_store %arg7[%c0_11, %c0_12], %12 {strides = array<i32>} : memref<20x64xf32, #tpu.memory_space<vmem>>, vector<20x64xf32>,
    } else {
    }
    %c0 = arith.constant 0 : index
    %c0_1 = arith.constant 0 : index
    %3 = vector.load %arg7[%c0, %c0_1] : memref<20x64xf32, #tpu.memory_space<vmem>>, vector<20x64xf32>
    %c0_2 = arith.constant 0 : index
    %c0_3 = arith.constant 0 : index
    %4 = vector.load %arg3[%c0_2, %c0_3] : memref<20x32xbf16, #tpu.memory_space<vmem>>, vector<20x32xbf16>
    %c0_4 = arith.constant 0 : index
    %c0_5 = arith.constant 0 : index
    %5 = vector.load %arg4[%c0_4, %c0_5] : memref<32x64xbf16, #tpu.memory_space<vmem>>, vector<32x64xbf16>
    %cst = arith.constant dense<0.000000e+00> : vector<20x64xf32>
    %6 = tpu.matmul %4, %5, %cst {dimension_numbers = #tpu.dot_dimension_numbers<[1], [0], [0], [1], [0, 0, 1, 1], [], []>} : vector<20x32xbf16>, vector<32x64xbf16>, vector<20x64xf32> -> vector<20x64xf32>
    %7 = arith.addf %3, %6 : vector<20x64xf32>
    %c0_6 = arith.constant 0 : index
    %c0_7 = arith.constant 0 : index
    %8 = vector.load %arg7[%c0_6, %c0_7] : memref<20x64xf32, #tpu.memory_space<vmem>>, vector<20x64xf32>
    tpu.vector_store %arg7[%c0_6, %c0_7], %7 {strides = array<i32>} : memref<20x64xf32, #tpu.memory_space<vmem>>, vector<20x64xf32>,
    %c0_i32_8 = arith.constant 0 : i32
    %9 = arith.cmpi eq, %arg2, %c0_i32_8 : i32
    %10 = arith.extui %9 : i1 to i32
    %c0_i32_9 = arith.constant 0 : i32
    %11 = arith.cmpi ne, %10, %c0_i32_9 : i32
    scf.if %11 {
      %c0_10 = arith.constant 0 : index
      %c0_11 = arith.constant 0 : index
      %12 = vector.load %arg7[%c0_10, %c0_11] : memref<20x64xf32, #tpu.memory_space<vmem>>, vector<20x64xf32>
      %c0_12 = arith.constant 0 : index
      %c0_13 = arith.constant 0 : index
      %13 = vector.load %arg5[%c0_12, %c0_13] : memref<1x64xf32, #tpu.memory_space<vmem>>, vector<1x64xf32>
      %14 = vector.broadcast %13 : vector<1x64xf32> to vector<20x64xf32>
      %15 = arith.addf %12, %14 : vector<20x64xf32>
      %cst_14 = arith.constant 1.702000e+00 : f32
      %16 = vector.broadcast %cst_14 : f32 to vector<20x64xf32>
      %17 = arith.mulf %16, %15 : vector<20x64xf32>
      %18 = arith.negf %17 : vector<20x64xf32>
      %19 = math.exp %18 : vector<20x64xf32>
      %cst_15 = arith.constant 1.000000e+00 : f32
      %20 = vector.broadcast %cst_15 : f32 to vector<20x64xf32>
      %21 = arith.addf %20, %19 : vector<20x64xf32>
      %22 = arith.divf %20, %21 : vector<20x64xf32>
      %23 = arith.mulf %15, %22 : vector<20x64xf32>
      %24 = arith.truncf %23 : vector<20x64xf32> to vector<20x64xbf16>
      %c0_16 = arith.constant 0 : index
      %c0_17 = arith.constant 0 : index
      %25 = vector.load %arg6[%c0_16, %c0_17] : memref<20x64xbf16, #tpu.memory_space<vmem>>, vector<20x64xbf16>
      tpu.vector_store %arg6[%c0_16, %c0_17], %24 {strides = array<i32>} : memref<20x64xbf16, #tpu.memory_space<vmem>>, vector<20x64xbf16>,
    } else {
    }
    return
  }
  func.func @transform_0(%arg0: i32, %arg1: i32, %arg2: i32) -> (i32, i32) {
    %c0_i32 = arith.constant 0 : i32
    return %arg0, %arg2 : i32, i32
  }
  func.func @transform_1(%arg0: i32, %arg1: i32, %arg2: i32) -> (i32, i32) {
    %c0_i32 = arith.constant 0 : i32
    return %arg2, %arg1 : i32, i32
  }
  func.func @transform_2(%arg0: i32, %arg1: i32, %arg2: i32) -> (i32, i32) {
    %c0_i32 = arith.constant 0 : i32
    %c0_i32_0 = arith.constant 0 : i32
    return %c0_i32, %arg1 : i32, i32
  }
  func.func @transform_3(%arg0: i32, %arg1: i32, %arg2: i32) -> (i32, i32) {
    %c0_i32 = arith.constant 0 : i32
    return %arg0, %arg1 : i32, i32
  }
}

module attributes {stable_mosaic.version = 11 : i64} {
  func.func @_linear_kernel(%arg0: i32, %arg1: i32, %arg2: i32, %arg3: memref<20x64xbf16, #tpu.memory_space<vmem>>, %arg4: memref<64x32xbf16, #tpu.memory_space<vmem>>, %arg5: memref<1x32xf32, #tpu.memory_space<vmem>>, %arg6: memref<20x32xbf16, #tpu.memory_space<vmem>>, %arg7: memref<20x32xbf16, #tpu.memory_space<vmem>>, %arg8: memref<20x32xf32, #tpu.memory_space<vmem>>) attributes {dimension_semantics = [#tpu.dimension_semantics<parallel>, #tpu.dimension_semantics<parallel>, #tpu.dimension_semantics<arbitrary>], iteration_bounds = array<i64: 1, 1, 1>, scalar_prefetch = 0 : i64, scratch_operands = 1 : i64, tpu.core_type = #tpu.core_type<tc>, window_params = [{transform_indices = @transform_0, window_bounds = array<i64: 20, 64>}, {transform_indices = @transform_1, window_bounds = array<i64: 64, 32>}, {transform_indices = @transform_2, window_bounds = array<i64: 1, 32>}, {transform_indices = @transform_3, window_bounds = array<i64: 20, 32>}, {transform_indices = @transform_4, window_bounds = array<i64: 20, 32>}]} {
    %c0_i32 = arith.constant 0 : i32
    %0 = arith.cmpi eq, %arg2, %c0_i32 : i32
    %1 = arith.extui %0 : i1 to i32
    %c0_i32_0 = arith.constant 0 : i32
    %2 = arith.cmpi ne, %1, %c0_i32_0 : i32
    scf.if %2 {
      %cst_10 = arith.constant 0.000000e+00 : f32
      %12 = vector.broadcast %cst_10 : f32 to vector<20x32xf32>
      %c0_11 = arith.constant 0 : index
      %c0_12 = arith.constant 0 : index
      %13 = vector.load %arg8[%c0_11, %c0_12] : memref<20x32xf32, #tpu.memory_space<vmem>>, vector<20x32xf32>
      tpu.vector_store %arg8[%c0_11, %c0_12], %12 {strides = array<i32>} : memref<20x32xf32, #tpu.memory_space<vmem>>, vector<20x32xf32>,
    } else {
    }
    %c0 = arith.constant 0 : index
    %c0_1 = arith.constant 0 : index
    %3 = vector.load %arg8[%c0, %c0_1] : memref<20x32xf32, #tpu.memory_space<vmem>>, vector<20x32xf32>
    %c0_2 = arith.constant 0 : index
    %c0_3 = arith.constant 0 : index
    %4 = vector.load %arg3[%c0_2, %c0_3] : memref<20x64xbf16, #tpu.memory_space<vmem>>, vector<20x64xbf16>
    %c0_4 = arith.constant 0 : index
    %c0_5 = arith.constant 0 : index
    %5 = vector.load %arg4[%c0_4, %c0_5] : memref<64x32xbf16, #tpu.memory_space<vmem>>, vector<64x32xbf16>
    %cst = arith.constant dense<0.000000e+00> : vector<20x32xf32>
    %6 = tpu.matmul %4, %5, %cst {dimension_numbers = #tpu.dot_dimension_numbers<[1], [0], [0], [1], [0, 0, 1, 1], [], []>} : vector<20x64xbf16>, vector<64x32xbf16>, vector<20x32xf32> -> vector<20x32xf32>
    %7 = arith.addf %3, %6 : vector<20x32xf32>
    %c0_6 = arith.constant 0 : index
    %c0_7 = arith.constant 0 : index
    %8 = vector.load %arg8[%c0_6, %c0_7] : memref<20x32xf32, #tpu.memory_space<vmem>>, vector<20x32xf32>
    tpu.vector_store %arg8[%c0_6, %c0_7], %7 {strides = array<i32>} : memref<20x32xf32, #tpu.memory_space<vmem>>, vector<20x32xf32>,
    %c0_i32_8 = arith.constant 0 : i32
    %9 = arith.cmpi eq, %arg2, %c0_i32_8 : i32
    %10 = arith.extui %9 : i1 to i32
    %c0_i32_9 = arith.constant 0 : i32
    %11 = arith.cmpi ne, %10, %c0_i32_9 : i32
    scf.if %11 {
      %c0_10 = arith.constant 0 : index
      %c0_11 = arith.constant 0 : index
      %12 = vector.load %arg8[%c0_10, %c0_11] : memref<20x32xf32, #tpu.memory_space<vmem>>, vector<20x32xf32>
      %c0_12 = arith.constant 0 : index
      %c0_13 = arith.constant 0 : index
      %13 = vector.load %arg5[%c0_12, %c0_13] : memref<1x32xf32, #tpu.memory_space<vmem>>, vector<1x32xf32>
      %14 = vector.broadcast %13 : vector<1x32xf32> to vector<20x32xf32>
      %15 = arith.addf %12, %14 : vector<20x32xf32>
      %c0_14 = arith.constant 0 : index
      %c0_15 = arith.constant 0 : index
      %16 = vector.load %arg6[%c0_14, %c0_15] : memref<20x32xbf16, #tpu.memory_space<vmem>>, vector<20x32xbf16>
      %17 = arith.extf %16 : vector<20x32xbf16> to vector<20x32xf32>
      %18 = arith.addf %15, %17 : vector<20x32xf32>
      %19 = arith.truncf %18 : vector<20x32xf32> to vector<20x32xbf16>
      %c0_16 = arith.constant 0 : index
      %c0_17 = arith.constant 0 : index
      %20 = vector.load %arg7[%c0_16, %c0_17] : memref<20x32xbf16, #tpu.memory_space<vmem>>, vector<20x32xbf16>
      tpu.vector_store %arg7[%c0_16, %c0_17], %19 {strides = array<i32>} : memref<20x32xbf16, #tpu.memory_space<vmem>>, vector<20x32xbf16>,
    } else {
    }
    return
  }
  func.func @transform_0(%arg0: i32, %arg1: i32, %arg2: i32) -> (i32, i32) {
    %c0_i32 = arith.constant 0 : i32
    return %arg0, %arg2 : i32, i32
  }
  func.func @transform_1(%arg0: i32, %arg1: i32, %arg2: i32) -> (i32, i32) {
    %c0_i32 = arith.constant 0 : i32
    return %arg2, %arg1 : i32, i32
  }
  func.func @transform_2(%arg0: i32, %arg1: i32, %arg2: i32) -> (i32, i32) {
    %c0_i32 = arith.constant 0 : i32
    %c0_i32_0 = arith.constant 0 : i32
    return %c0_i32, %arg1 : i32, i32
  }
  func.func @transform_3(%arg0: i32, %arg1: i32, %arg2: i32) -> (i32, i32) {
    %c0_i32 = arith.constant 0 : i32
    return %arg0, %arg1 : i32, i32
  }
  func.func @transform_4(%arg0: i32, %arg1: i32, %arg2: i32) -> (i32, i32) {
    %c0_i32 = arith.constant 0 : i32
    return %arg0, %arg1 : i32, i32
  }
}

module attributes {stable_mosaic.version = 11 : i64} {
  func.func @_layernorm_kernel(%arg0: i32, %arg1: memref<4x32xbf16, #tpu.memory_space<vmem>>, %arg2: memref<1x32xf32, #tpu.memory_space<vmem>>, %arg3: memref<1x32xf32, #tpu.memory_space<vmem>>, %arg4: memref<4x32xbf16, #tpu.memory_space<vmem>>) attributes {dimension_semantics = [#tpu.dimension_semantics<parallel>], iteration_bounds = array<i64: 1>, scalar_prefetch = 0 : i64, scratch_operands = 0 : i64, tpu.core_type = #tpu.core_type<tc>, window_params = [{transform_indices = @transform_0, window_bounds = array<i64: 4, 32>}, {pipeline_mode = #tpu.pipeline_mode<synchronous>, transform_indices = @transform_1, window_bounds = array<i64: 1, 32>}, {pipeline_mode = #tpu.pipeline_mode<synchronous>, transform_indices = @transform_2, window_bounds = array<i64: 1, 32>}, {transform_indices = @transform_3, window_bounds = array<i64: 4, 32>}]} {
    %c0 = arith.constant 0 : index
    %c0_0 = arith.constant 0 : index
    %0 = vector.load %arg1[%c0, %c0_0] : memref<4x32xbf16, #tpu.memory_space<vmem>>, vector<4x32xbf16>
    %1 = arith.extf %0 : vector<4x32xbf16> to vector<4x32xf32>
    %cst = arith.constant dense<0.000000e+00> : vector<4xf32>
    %2 = vector.multi_reduction <add>, %1, %cst [1] : vector<4x32xf32> to vector<4xf32>
    %3 = vector.shape_cast %2 : vector<4xf32> to vector<4x1xf32>
    %cst_1 = arith.constant 3.200000e+01 : f32
    %4 = vector.broadcast %cst_1 : f32 to vector<4x1xf32>
    %5 = arith.divf %3, %4 : vector<4x1xf32>
    %6 = vector.broadcast %5 : vector<4x1xf32> to vector<4x32xf32>
    %7 = arith.subf %1, %6 : vector<4x32xf32>
    %8 = arith.mulf %7, %7 : vector<4x32xf32>
    %cst_2 = arith.constant dense<0.000000e+00> : vector<4xf32>
    %9 = vector.multi_reduction <add>, %8, %cst_2 [1] : vector<4x32xf32> to vector<4xf32>
    %10 = vector.shape_cast %9 : vector<4xf32> to vector<4x1xf32>
    %cst_3 = arith.constant 3.200000e+01 : f32
    %11 = vector.broadcast %cst_3 : f32 to vector<4x1xf32>
    %12 = arith.divf %10, %11 : vector<4x1xf32>
    %13 = vector.broadcast %5 : vector<4x1xf32> to vector<4x32xf32>
    %14 = arith.subf %1, %13 : vector<4x32xf32>
    %cst_4 = arith.constant 9.99999974E-6 : f32
    %15 = vector.broadcast %cst_4 : f32 to vector<4x1xf32>
    %16 = arith.addf %12, %15 : vector<4x1xf32>
    %17 = math.rsqrt %16 : vector<4x1xf32>
    %18 = vector.broadcast %17 : vector<4x1xf32> to vector<4x32xf32>
    %19 = arith.mulf %14, %18 : vector<4x32xf32>
    %c0_5 = arith.constant 0 : index
    %c0_6 = arith.constant 0 : index
    %20 = vector.load %arg2[%c0_5, %c0_6] : memref<1x32xf32, #tpu.memory_space<vmem>>, vector<1x32xf32>
    %21 = vector.broadcast %20 : vector<1x32xf32> to vector<4x32xf32>
    %22 = arith.mulf %19, %21 : vector<4x32xf32>
    %c0_7 = arith.constant 0 : index
    %c0_8 = arith.constant 0 : index
    %23 = vector.load %arg3[%c0_7, %c0_8] : memref<1x32xf32, #tpu.memory_space<vmem>>, vector<1x32xf32>
    %24 = vector.broadcast %23 : vector<1x32xf32> to vector<4x32xf32>
    %25 = arith.addf %22, %24 : vector<4x32xf32>
    %26 = arith.truncf %25 : vector<4x32xf32> to vector<4x32xbf16>
    %c0_9 = arith.constant 0 : index
    %c0_10 = arith.constant 0 : index
    %27 = vector.load %arg4[%c0_9, %c0_10] : memref<4x32xbf16, #tpu.memory_space<vmem>>, vector<4x32xbf16>
    tpu.vector_store %arg4[%c0_9, %c0_10], %26 {strides = array<i32>} : memref<4x32xbf16, #tpu.memory_space<vmem>>, vector<4x32xbf16>,
    return
  }
  func.func @transform_0(%arg0: i32) -> (i32, i32) {
    %c0_i32 = arith.constant 0 : i32
    %c0_i32_0 = arith.constant 0 : i32
    return %arg0, %c0_i32 : i32, i32
  }
  func.func @transform_1(%arg0: i32) -> (i32, i32) {
    %c0_i32 = arith.constant 0 : i32
    %c0_i32_0 = arith.constant 0 : i32
    %c0_i32_1 = arith.constant 0 : i32
    return %c0_i32, %c0_i32_0 : i32, i32
  }
  func.func @transform_2(%arg0: i32) -> (i32, i32) {
    %c0_i32 = arith.constant 0 : i32
    %c0_i32_0 = arith.constant 0 : i32
    %c0_i32_1 = arith.constant 0 : i32
    return %c0_i32, %c0_i32_0 : i32, i32
  }
  func.func @transform_3(%arg0: i32) -> (i32, i32) {
    %c0_i32 = arith.constant 0 : i32
    %c0_i32_0 = arith.constant 0 : i32
    return %arg0, %c0_i32 : i32, i32
  }
}

module attributes {stable_mosaic.version = 11 : i64} {
  func.func @_linear_kernel(%arg0: i32, %arg1: i32, %arg2: i32, %arg3: memref<4x32xbf16, #tpu.memory_space<vmem>>, %arg4: memref<32x16xbf16, #tpu.memory_space<vmem>>, %arg5: memref<1x16xf32, #tpu.memory_space<vmem>>, %arg6: memref<4x16xf32, #tpu.memory_space<vmem>>, %arg7: memref<4x16xf32, #tpu.memory_space<vmem>>) attributes {dimension_semantics = [#tpu.dimension_semantics<parallel>, #tpu.dimension_semantics<parallel>, #tpu.dimension_semantics<arbitrary>], iteration_bounds = array<i64: 1, 1, 1>, scalar_prefetch = 0 : i64, scratch_operands = 1 : i64, tpu.core_type = #tpu.core_type<tc>, window_params = [{transform_indices = @transform_0, window_bounds = array<i64: 4, 32>}, {transform_indices = @transform_1, window_bounds = array<i64: 32, 16>}, {transform_indices = @transform_2, window_bounds = array<i64: 1, 16>}, {transform_indices = @transform_3, window_bounds = array<i64: 4, 16>}]} {
    %c0_i32 = arith.constant 0 : i32
    %0 = arith.cmpi eq, %arg2, %c0_i32 : i32
    %1 = arith.extui %0 : i1 to i32
    %c0_i32_0 = arith.constant 0 : i32
    %2 = arith.cmpi ne, %1, %c0_i32_0 : i32
    scf.if %2 {
      %cst_10 = arith.constant 0.000000e+00 : f32
      %12 = vector.broadcast %cst_10 : f32 to vector<4x16xf32>
      %c0_11 = arith.constant 0 : index
      %c0_12 = arith.constant 0 : index
      %13 = vector.load %arg7[%c0_11, %c0_12] : memref<4x16xf32, #tpu.memory_space<vmem>>, vector<4x16xf32>
      tpu.vector_store %arg7[%c0_11, %c0_12], %12 {strides = array<i32>} : memref<4x16xf32, #tpu.memory_space<vmem>>, vector<4x16xf32>,
    } else {
    }
    %c0 = arith.constant 0 : index
    %c0_1 = arith.constant 0 : index
    %3 = vector.load %arg7[%c0, %c0_1] : memref<4x16xf32, #tpu.memory_space<vmem>>, vector<4x16xf32>
    %c0_2 = arith.constant 0 : index
    %c0_3 = arith.constant 0 : index
    %4 = vector.load %arg3[%c0_2, %c0_3] : memref<4x32xbf16, #tpu.memory_space<vmem>>, vector<4x32xbf16>
    %c0_4 = arith.constant 0 : index
    %c0_5 = arith.constant 0 : index
    %5 = vector.load %arg4[%c0_4, %c0_5] : memref<32x16xbf16, #tpu.memory_space<vmem>>, vector<32x16xbf16>
    %cst = arith.constant dense<0.000000e+00> : vector<4x16xf32>
    %6 = tpu.matmul %4, %5, %cst {dimension_numbers = #tpu.dot_dimension_numbers<[1], [0], [0], [1], [0, 0, 1, 1], [], []>} : vector<4x32xbf16>, vector<32x16xbf16>, vector<4x16xf32> -> vector<4x16xf32>
    %7 = arith.addf %3, %6 : vector<4x16xf32>
    %c0_6 = arith.constant 0 : index
    %c0_7 = arith.constant 0 : index
    %8 = vector.load %arg7[%c0_6, %c0_7] : memref<4x16xf32, #tpu.memory_space<vmem>>, vector<4x16xf32>
    tpu.vector_store %arg7[%c0_6, %c0_7], %7 {strides = array<i32>} : memref<4x16xf32, #tpu.memory_space<vmem>>, vector<4x16xf32>,
    %c0_i32_8 = arith.constant 0 : i32
    %9 = arith.cmpi eq, %arg2, %c0_i32_8 : i32
    %10 = arith.extui %9 : i1 to i32
    %c0_i32_9 = arith.constant 0 : i32
    %11 = arith.cmpi ne, %10, %c0_i32_9 : i32
    scf.if %11 {
      %c0_10 = arith.constant 0 : index
      %c0_11 = arith.constant 0 : index
      %12 = vector.load %arg7[%c0_10, %c0_11] : memref<4x16xf32, #tpu.memory_space<vmem>>, vector<4x16xf32>
      %c0_12 = arith.constant 0 : index
      %c0_13 = arith.constant 0 : index
      %13 = vector.load %arg5[%c0_12, %c0_13] : memref<1x16xf32, #tpu.memory_space<vmem>>, vector<1x16xf32>
      %14 = vector.broadcast %13 : vector<1x16xf32> to vector<4x16xf32>
      %15 = arith.addf %12, %14 : vector<4x16xf32>
      %c0_14 = arith.constant 0 : index
      %c0_15 = arith.constant 0 : index
      %16 = vector.load %arg6[%c0_14, %c0_15] : memref<4x16xf32, #tpu.memory_space<vmem>>, vector<4x16xf32>
      tpu.vector_store %arg6[%c0_14, %c0_15], %15 {strides = array<i32>} : memref<4x16xf32, #tpu.memory_space<vmem>>, vector<4x16xf32>,
    } else {
    }
    return
  }
  func.func @transform_0(%arg0: i32, %arg1: i32, %arg2: i32) -> (i32, i32) {
    %c0_i32 = arith.constant 0 : i32
    return %arg0, %arg2 : i32, i32
  }
  func.func @transform_1(%arg0: i32, %arg1: i32, %arg2: i32) -> (i32, i32) {
    %c0_i32 = arith.constant 0 : i32
    return %arg2, %arg1 : i32, i32
  }
  func.func @transform_2(%arg0: i32, %arg1: i32, %arg2: i32) -> (i32, i32) {
    %c0_i32 = arith.constant 0 : i32
    %c0_i32_0 = arith.constant 0 : i32
    return %c0_i32, %arg1 : i32, i32
  }
  func.func @transform_3(%arg0: i32, %arg1: i32, %arg2: i32) -> (i32, i32) {
    %c0_i32 = arith.constant 0 : i32
    return %arg0, %arg1 : i32, i32
  }
}

module attributes {stable_mosaic.version = 11 : i64} {
  func.func @_l2norm_kernel(%arg0: memref<4x16xf32, #tpu.memory_space<vmem>>, %arg1: memref<4x16xf32, #tpu.memory_space<vmem>>) attributes {dimension_semantics = [], scalar_prefetch = 0 : i64, scratch_operands = 0 : i64, tpu.core_type = #tpu.core_type<tc>} {
    %c0 = arith.constant 0 : index
    %c0_0 = arith.constant 0 : index
    %0 = vector.load %arg0[%c0, %c0_0] : memref<4x16xf32, #tpu.memory_space<vmem>>, vector<4x16xf32>
    %1 = arith.mulf %0, %0 : vector<4x16xf32>
    %cst = arith.constant dense<0.000000e+00> : vector<4xf32>
    %2 = vector.multi_reduction <add>, %1, %cst [1] : vector<4x16xf32> to vector<4xf32>
    %3 = vector.shape_cast %2 : vector<4xf32> to vector<4x1xf32>
    %cst_1 = arith.constant 9.99999996E-13 : f32
    %4 = vector.broadcast %cst_1 : f32 to vector<4x1xf32>
    %5 = arith.addf %3, %4 : vector<4x1xf32>
    %6 = math.rsqrt %5 : vector<4x1xf32>
    %7 = vector.broadcast %6 : vector<4x1xf32> to vector<4x16xf32>
    %8 = arith.mulf %0, %7 : vector<4x16xf32>
    %c0_2 = arith.constant 0 : index
    %c0_3 = arith.constant 0 : index
    %9 = vector.load %arg1[%c0_2, %c0_3] : memref<4x16xf32, #tpu.memory_space<vmem>>, vector<4x16xf32>
    tpu.vector_store %arg1[%c0_2, %c0_3], %8 {strides = array<i32>} : memref<4x16xf32, #tpu.memory_space<vmem>>, vector<4x16xf32>,
    return
  }
}

module attributes {stable_mosaic.version = 11 : i64} {
  func.func @_frame_mean_norm_kernel(%arg0: memref<2x2x16xf32, #tpu.memory_space<vmem>>, %arg1: memref<2x16xf32, #tpu.memory_space<vmem>>) attributes {dimension_semantics = [], scalar_prefetch = 0 : i64, scratch_operands = 0 : i64, tpu.core_type = #tpu.core_type<tc>} {
    %c0 = arith.constant 0 : index
    %c0_0 = arith.constant 0 : index
    %c0_1 = arith.constant 0 : index
    %0 = vector.load %arg0[%c0, %c0_0, %c0_1] : memref<2x2x16xf32, #tpu.memory_space<vmem>>, vector<2x2x16xf32>
    %cst = arith.constant dense<0.000000e+00> : vector<2x16xf32>
    %1 = vector.multi_reduction <add>, %0, %cst [1] : vector<2x2x16xf32> to vector<2x16xf32>
    %cst_2 = arith.constant 2.000000e+00 : f32
    %2 = vector.broadcast %cst_2 : f32 to vector<2x16xf32>
    %3 = arith.divf %1, %2 : vector<2x16xf32>
    %4 = arith.mulf %3, %3 : vector<2x16xf32>
    %cst_3 = arith.constant dense<0.000000e+00> : vector<2xf32>
    %5 = vector.multi_reduction <add>, %4, %cst_3 [1] : vector<2x16xf32> to vector<2xf32>
    %6 = vector.shape_cast %5 : vector<2xf32> to vector<2x1xf32>
    %cst_4 = arith.constant 9.99999996E-13 : f32
    %7 = vector.broadcast %cst_4 : f32 to vector<2x1xf32>
    %8 = arith.addf %6, %7 : vector<2x1xf32>
    %9 = math.rsqrt %8 : vector<2x1xf32>
    %10 = vector.broadcast %9 : vector<2x1xf32> to vector<2x16xf32>
    %11 = arith.mulf %3, %10 : vector<2x16xf32>
    %c0_5 = arith.constant 0 : index
    %c0_6 = arith.constant 0 : index
    %12 = vector.load %arg1[%c0_5, %c0_6] : memref<2x16xf32, #tpu.memory_space<vmem>>, vector<2x16xf32>
    tpu.vector_store %arg1[%c0_5, %c0_6], %11 {strides = array<i32>} : memref<2x16xf32, #tpu.memory_space<vmem>>, vector<2x16xf32>,
    return
  }
}

</mosaic_0001>

<bundles_post_ra>
// kernel: _lambda_.57
= control target key start
LH: loop header
LB: loop body
LE: loop exit
PB: predicated region body
PF: predicated region fallthrough
CT: control target
= control target key end

     0   :  { %vm16_vm0 = vcmask 261120   ;;  %vm70_vm1 = vcmask 257024   ;;  %s129_s0 = inlined_call_operand.vmem [shape: f32[16,32], index: 0, kind: input, shape index: {}]   ;;  %s130_s1 = inlined_call_operand.vmem [shape: f32[1,32], index: 1, kind: input, shape index: {}]   ;;  %s131_s2 = inlined_call_operand.vmem [shape: f32[1,32], index: 2, kind: input, shape index: {}]   ;;  %s132_s3 = inlined_call_operand.vmem [shape: bf16[16,32], index: 3, kind: output, shape index: {}]  }
   0x1   :  { %v14_v0 = vld [vmem:[%s129_s0] sm:$0xff]  ;;  %v15_v1 = vld [vmem:[%s129_s0 + $0x8] sm:$0xff] }
   0x2   :  { %v17_v2 = vsel %vm16_vm0, %v14_v0, 0.0  ;;  %v20_v3 = vsel %vm16_vm0, %v15_v1, 0.0  ;;  %v77_v21 = vld [vmem:[%s130_s1] ss:$0 sm:$0xff] }
   0x3   :  { %18 = vadd.xlane.f32.xlu0 %v17_v2  ;;  %v78_v23 = vld [vmem:[%s131_s2] ss:$0 sm:$0xff] }
   0x7   :  { %21 = vadd.xlane.f32.xlu0 %v20_v3 }
  0x8c   :  { %v19_v4 = vpop.xlane.xlu0 %18 }
  0x8d   :  { %v24_v5 = vmul.f32 0.03125, %v19_v4 }
  0x8f   :  { %v26_v6 = vsub.f32 %v14_v0, %v24_v5 }
  0x90   :  { %v22_v7 = vpop.xlane.xlu0 %21 }
  0x91   :  { %v25_v8 = vmul.f32 0.03125, %v22_v7  ;;  %v28_v9 = vmul.f32 %v26_v6, %v26_v6 }
  0x93   :  { %v27_v10 = vsub.f32 %v15_v1, %v25_v8  ;;  %v30_v11 = vsel %vm16_vm0, %v28_v9, 0.0 }
  0x94   :  { %31 = vadd.xlane.f32.xlu1 %v30_v11 }
  0x95   :  { %v29_v12 = vmul.f32 %v27_v10, %v27_v10 }
  0x97   :  { %v33_v13 = vsel %vm16_vm0, %v29_v12, 0.0 }
  0x98   :  { %34 = vadd.xlane.f32.xlu1 %v33_v13 }
 0x11d   :  { %v32_v14 = vpop.xlane.xlu1 %31 }
 0x11e   :  { %v36_v15 = vmul.f32 0.03125, %v32_v14 }
 0x120   :  { %v38_v16 = vadd.f32 1e-05, %v36_v15 }
 0x121   :  { %v35_v17 = vpop.xlane.xlu1 %34 }
 0x122   :  { %83 = vrsqrt.f32 %v38_v16  ;;  %v37_v18 = vmul.f32 0.03125, %v35_v17 }
 0x124   :  { %v39_v19 = vadd.f32 1e-05, %v37_v18 }
 0x126   :  { %85 = vrsqrt.f32 %v39_v19 }
 0x12f   :  { %v84_v20 = vpop.eup %83 }
 0x130   :  { %v42_v22 = vmul.f32 %v84_v20, %v26_v6 }
 0x132   :  { %v51_v24 = vmul.f32 %v77_v21, %v42_v22 }
 0x133   :  { %v86_v25 = vpop.eup %85 }
 0x134   :  { %v60_v26 = vadd.f32 %v78_v23, %v51_v24  ;;  %v43_v27 = vmul.f32 %v86_v25, %v27_v10 }
 0x136   :  { %v81_v28 = vpack.c.bf16 %v60_v26, %v60_v26  ;;  %v52_v29 = vmul.f32 %v77_v21, %v43_v27 }
 0x138   :  { %71 = vst.msk [vmem:[%s132_s3] sm:$0xf] %vm70_vm1, %v81_v28  ;;  %v61_v30 = vadd.f32 %v78_v23, %v52_v29 }
 0x13a   :  { %v82_v31 = vpack.c.bf16 %v61_v30, %v61_v30 }
 0x13c   :  { %72 = vst.msk [vmem:[%s132_s3 + $0x4] sm:$0xf] %vm70_vm1, %v82_v31 }

// kernel: _lambda_.58
= control target key start
LH: loop header
LB: loop body
LE: loop exit
PB: predicated region body
PF: predicated region fallthrough
CT: control target
= control target key end

     0   :  { %vm19_vm0 = vcmask 785408   ;;  %v151_v0 = vmov 0.0   ;;  %vm152_vm1 = vmmov 0   ;;  %vm47_vm2 = vcmask 261120   ;;  %s195_s1 = inlined_call_operand.vmem [shape: bf16[32,96], index: 1, kind: input, shape index: {}]   ;;  %s196_s0 = inlined_call_operand.vmem [shape: bf16[16,32], index: 0, kind: input, shape index: {}]   ;;  %s197_s2 = inlined_call_operand.vmem [shape: f32[1,96], index: 2, kind: input, shape index: {}]   ;;  %s198_s3 = inlined_call_operand.vmem [shape: bf16[16,96], index: 3, kind: output, shape index: {}]  }
   0x1   :  { %138 = vmatprep.subr.bf16.mxu0 %v151_v0  ;;  %v148_v1 = vld [vmem:[%s195_s1 + $0x8] sm:$0xff]   ;;  %142 = vmatprep.mubr.msk.bf16.mxu0 %vm152_vm1, %v151_v0  ;;  %20 = vst.msk [vmem:[#allocation2] sm:$0xff] %vm19_vm0, %v151_v0  ;;  %21 = vst.msk [vmem:[#allocation2 + $0x8] sm:$0xff] %vm19_vm0, %v151_v0  ;;  %v149_v2 = vld [vmem:[%s195_s1] sm:$0xff]   ;;  %vm119_vm3 = vcmask 781312  }
   0x2   :  { %139 = vmatpush3.bf16.msra.mxu0 %v148_v1  ;;  %v150_v3 = vld [vmem:[%s196_s0] sm:$0xff]  }
   0x3   :  { %140 = vmatprep.subr.bf16.mxu0 %v151_v0  ;;  %v130_v12 = vld [vmem:[%s197_s2] ss:$0 sm:$0xff] }
   0x6   :  { %141 = vmatpush3.bf16.msra.mxu0 %v149_v2 }
   0x8   :  { %v22_v4 = vld [vmem:[#allocation2] sm:$0xff]  ;;  %v23_v8 = vld [vmem:[#allocation2 + $0x8] sm:$0xff] }
   0x9   :  { %143 = vmatmul.mubr.msk.bf16.vlgmr.msra.gmra.mxu0 %vm47_vm2, %v150_v3 }
  0xc9   :  { %v85_v5 = vpop.f32.mrf.mxu0 }
  0xca   :  { %v92_v6 = vadd.f32 %v85_v5, %v22_v4 }
  0xcb   :  { %v144_v7 = vpop.f32.mrf.mxu0 }
  0xcc   :  { %95 = vst.msk [vmem:[#allocation2] sm:$0xff] %vm19_vm0, %v92_v6 }
  0xcd   :  { %v88_v9 = vpop.f32.mrf.mxu0 }
  0xce   :  { %v93_v10 = vadd.f32 %v88_v9, %v23_v8 }
  0xcf   :  { %v145_v11 = vpop.f32.mrf.mxu0 }
  0xd0   :  { %96 = vst.msk [vmem:[#allocation2 + $0x8] sm:$0xff] %vm19_vm0, %v93_v10 }
  0xd3   :  { %v100_v13 = vld [vmem:[#allocation2] sm:$0xff] }
  0xd4   :  { %v109_v14 = vadd.f32 %v130_v12, %v100_v13 }
  0xd6   :  { %v133_v15 = vpack.c.bf16 %v109_v14, %v109_v14 }
  0xd7   :  { %v101_v16 = vld [vmem:[#allocation2 + $0x8] sm:$0xff] }
  0xd8   :  { %120 = vst.msk [vmem:[%s198_s3] sm:$0xf] %vm119_vm3, %v133_v15  ;;  %v110_v17 = vadd.f32 %v130_v12, %v101_v16 }
  0xda   :  { %v134_v18 = vpack.c.bf16 %v110_v17, %v110_v17 }
  0xdc   :  { %121 = vst.msk [vmem:[%s198_s3 + $0x4] sm:$0xf] %vm119_vm3, %v134_v18 }

// kernel: _lambda_.59
= control target key start
LH: loop header
LB: loop body
LE: loop exit
PB: predicated region body
PF: predicated region fallthrough
CT: control target
= control target key end

     0   :  { %s686_s15 = smov 0   ;;  %s737_s0 = inlined_call_operand.vmem [shape: bf16[4,8,16], index: 0, kind: input, shape index: {}]   ;;  %s738_s1 = inlined_call_operand.vmem [shape: bf16[4,8,16], index: 1, kind: input, shape index: {}]   ;;  %s739_s2 = inlined_call_operand.vmem [shape: bf16[4,8,16], index: 2, kind: input, shape index: {}]   ;;  %s740_s3 = inlined_call_operand.vmem [shape: f32[2,8,8], index: 3, kind: input, shape index: {}]   ;;  %s741_s4 = inlined_call_operand.vmem [shape: bf16[4,8,16], index: 4, kind: output, shape index: {}]  }
   0x1 LB: > { %s692_s16 = sadd.s32 4294967295, %s657_s15   ;;  %p585_p0 = scmp.ge.s32.totalorder %s657_s15, 1  ;;  %s657_s15 = sphi %s686_s15, %s14_s15  }
   0x2   : > { %p194_p1 = scmp.lt.s32.totalorder %s657_s15, 3 }
   0x4   : > { %p195_p2 = pnand %p585_p0, %p194_p1 }
   0x5   : > { %s586_s17 = sshll.u32 (!%p195_p2), %s692_s16, 1  ;;  %p252_p4 = scmp.lt.s32.totalorder (!%p195_p2), %s692_s16, 1 }
   0x6   : > { %198 = sbr.rel (%p195_p2) target bundleno = 735 (0x2df), region = 36  ;;  %p235_p3 = scmp.lt.s32.totalorder (!%p195_p2), %s586_s17, 3 }
   0xb   : > { %v659_v0 = vmov 0.0   ;;  %vm660_vm0 = vmmov 0   ;;  %s743_s17 = smov (!%p235_p3, %s586_s17), 3  ;;  %vm273_vm1 = vcmask 130048   ;;  %s745_s16 = smov (!%p252_p4, %s692_s16), 1  ;;  %vm366_vm2 = vcmask 64512  }
   0xc   : > { %609 = vmatprep.subr.bf16.mxu0 %v659_v0  ;;  %615 = vmatprep.subr.bf16.mxu1 %v659_v0  ;;  %s699_s18 = sshll.u32 %s743_s17, 2  ;;  %s592_s25 = sshll.u32 %s745_s16, 3  ;;  %vm394_vm3 = vcmask 1043456   ;;  %vm486_vm4 = vcmask 125952  }
   0xd   : > { %611 = vmatprep.mubr.msk.bf16.mxu0 %vm660_vm0, %v659_v0  ;;  %617 = vmatprep.mubr.msk.bf16.mxu1 %vm660_vm0, %v659_v0  ;;  %s244_s21 = scalar_lea.vmem %s738_s1, %s699_s18  ;;  %s238_s24 = scalar_lea.vmem %s737_s0, %s699_s18 }
   0xe   : > { %v268_v1 = vld [vmem:[%s244_s21] sm:$0xf]  ;;  %v269_v2 = vld [vmem:[%s244_s21 + $0x4] sm:$0xf]  ;;  %s255_s28 = scalar_lea.vmem %s740_s3, %s592_s25  ;;  %s250_s5 = scalar_lea.vmem %s739_s2, %s699_s18 }
   0xf   : > { %v278_v3 = vsel %vm273_vm1, %v268_v1, 0  ;;  %v324_v4 = vsel %vm273_vm1, %v269_v2, 0  ;;  %v264_v5 = vld [vmem:[%s238_s24] sm:$0xf]  ;;  %v265_v6 = vld [vmem:[%s238_s24 + $0x4] sm:$0xf]  ;;  %s260_s8 = scalar_lea.vmem %s741_s4, %s699_s18 }
  0x10   : > { %610 = vmatpush3.bf16.xpose.msra.mxu0 %v278_v3  ;;  %616 = vmatpush3.bf16.xpose.msra.mxu1 %v324_v4  ;;  %v266_v7 = vmul.bf16 1048592000, %v264_v5  ;;  %v267_v8 = vmul.bf16 1048592000, %v265_v6  ;;  %v272_v9 = vld [vmem:[%s255_s28] sm:$0xff] }
  0x11   : > { %621 = vmatprep.subr.bf16.mxu0 %v659_v0  ;;  %627 = vmatprep.subr.bf16.mxu1 %v659_v0  ;;  %v270_v32 = vld [vmem:[%s250_s5] sm:$0xf]  ;;  %v271_v33 = vld [vmem:[%s250_s5 + $0x4] sm:$0xf] }
  0x12   : > { %v396_v34 = vsel %vm394_vm3, %v270_v32, 0  ;;  %v442_v35 = vsel %vm394_vm3, %v271_v33, 0 }
  0x17   : > { %612 = vmatmul.mubr.msk.bf16.vlgmr.msra.gmra.mxu0 %vm273_vm1, %v266_v7  ;;  %618 = vmatmul.mubr.msk.bf16.vlgmr.msra.gmra.mxu1 %vm273_vm1, %v267_v8 }
  0x18   : > { %623 = vmatprep.mubr.msk.bf16.mxu0 %vm660_vm0, %v659_v0  ;;  %629 = vmatprep.mubr.msk.bf16.mxu1 %vm660_vm0, %v659_v0 }
  0x19   : > { %622 = vmatpush3.bf16.msra.mxu0 %v396_v34  ;;  %628 = vmatpush3.bf16.msra.mxu1 %v442_v35 }
  0xd7   : > { %v314_v10 = vpop.f32.mrf.mxu0  ;;  %v360_v11 = vpop.f32.mrf.mxu1 }
  0xd8   : > { %v315_v12 = vadd.f32 %v314_v10, %v272_v9  ;;  %v361_v13 = vadd.f32 %v360_v11, %v272_v9 }
  0xd9   : > { %v613_v14 = vpop.f32.mrf.mxu0  ;;  %v619_v15 = vpop.f32.mrf.mxu1 }
  0xda   : > { %v367_v16 = vsel %vm366_vm2, %v315_v12, -inf  ;;  %v370_v19 = vsel %vm366_vm2, %v361_v13, -inf }
  0xdb   : > { %v363_v17 = vpop.f32.mrf.mxu1  ;;  %368 = vmax.xlane.f32.xlu0 %v367_v16  ;;  %v317_v18 = vpop.f32.mrf.mxu0 }
  0xdd   : > { %v614_v20 = vpop.f32.mrf.mxu0  ;;  %v620_v21 = vpop.f32.mrf.mxu1 }
  0xdf   : > { %371 = vmax.xlane.f32.xlu0 %v370_v19 }
 0x164   : > { %v369_v22 = vpop.xlane.xlu0 %368 }
 0x165   : > { %v373_v23 = vsub.f32 %v315_v12, %v369_v22 }
 0x167   : > { %v375_v24 = vmul.f32 1.442695, %v373_v23 }
 0x168   : > { %v372_v25 = vpop.xlane.xlu0 %371 }
 0x169   : > { %643 = vpow2.f32 %v375_v24  ;;  %v374_v26 = vsub.f32 %v361_v13, %v372_v25 }
 0x16b   : > { %v377_v27 = vmul.f32 1.442695, %v374_v26 }
 0x16d   : > { %645 = vpow2.f32 %v377_v27 }
 0x176   : > { %v644_v28 = vpop.eup %643 }
 0x177   : > { %v379_v29 = vsel %vm366_vm2, %v644_v28, 0.0 }
 0x178   : > { %380 = vadd.xlane.f32.xlu1 %v379_v29 }
 0x17a   : > { %v646_v30 = vpop.eup %645 }
 0x17b   : > { %v382_v31 = vsel %vm366_vm2, %v646_v30, 0.0 }
 0x17c   : > { %383 = vadd.xlane.f32.xlu1 %v382_v31 }
 0x201   : > { %v381_v36 = vpop.xlane.xlu1 %380 }
 0x202   : > { %647 = vrcp.f32 %v381_v36 }
 0x205   : > { %v384_v37 = vpop.xlane.xlu1 %383 }
 0x206   : > { %649 = vrcp.f32 %v384_v37 }
 0x20f   : > { %v648_v38 = vpop.eup %647 }
 0x210   : > { %v387_v39 = vmul.f32 %v648_v38, %v644_v28 }
 0x212   : > { %v389_v40 = vpack.c.bf16 %v387_v39, %v387_v39 }
 0x213   : > { %v650_v41 = vpop.eup %649 }
 0x214   : > { %624 = vmatmul.mubr.msk.bf16.vlgmr.msra.gmra.mxu0 %vm366_vm2, %v389_v40  ;;  %v388_v42 = vmul.f32 %v650_v41, %v646_v30 }
 0x216   : > { %v390_v43 = vpack.c.bf16 %v388_v42, %v388_v42 }
 0x218   : > { %630 = vmatmul.mubr.msk.bf16.vlgmr.msra.gmra.mxu1 %vm366_vm2, %v390_v43 }
 0x2d4   : > { %v432_v44 = vpop.f32.mrf.mxu0 }
 0x2d5   : > { %v484_v45 = vpack.c.bf16 %v432_v44, %v432_v44 }
 0x2d6   : > { %v625_v46 = vpop.f32.mrf.mxu0 }
 0x2d7   : > { %487 = vst.msk [vmem:[%s260_s8] sm:$0xf] %vm486_vm4, %v484_v45 }
 0x2d8   : > { %v435_v47 = vpop.f32.mrf.mxu0  ;;  %v478_v48 = vpop.f32.mrf.mxu1 }
 0x2d9   : > { %v485_v49 = vpack.c.bf16 %v478_v48, %v478_v48 }
 0x2da   : > { %v626_v50 = vpop.f32.mrf.mxu0  ;;  %v631_v51 = vpop.f32.mrf.mxu1 }
 0x2db   : > { %488 = vst.msk [vmem:[%s260_s8 + $0x4] sm:$0xf] %vm486_vm4, %v485_v49 }
 0x2dc   : > { %v481_v52 = vpop.f32.mrf.mxu1 }
 0x2de   : > { %v632_v53 = vpop.f32.mrf.mxu1 }
 0x2df PF: > { %s14_s15 = sadd.s32 1, %s657_s15  }
 0x2e0   : > { %p11_p5 = scmp.ge.s32.totalorder %s14_s15, 4  }
 0x2e2   :  { %13 = sbr.rel (!%p11_p5) target bundleno = 1 (0x1), region = 75 }

// kernel: _lambda_.60
= control target key start
LH: loop header
LB: loop body
LE: loop exit
PB: predicated region body
PF: predicated region fallthrough
CT: control target
= control target key end

     0   :  { %vm22_vm0 = vcmask 261120   ;;  %v157_v0 = vmov 0.0   ;;  %vm158_vm1 = vmmov 0   ;;  %vm125_vm2 = vcmask 257024   ;;  %s213_s1 = inlined_call_operand.vmem [shape: bf16[32,32], index: 1, kind: input, shape index: {}]   ;;  %s214_s0 = inlined_call_operand.vmem [shape: bf16[16,32], index: 0, kind: input, shape index: {}]   ;;  %s215_s2 = inlined_call_operand.vmem [shape: f32[1,32], index: 2, kind: input, shape index: {}]   ;;  %s216_s3 = inlined_call_operand.vmem [shape: f32[16,32], index: 3, kind: input, shape index: {}]   ;;  %s217_s4 = inlined_call_operand.vmem [shape: bf16[16,32], index: 4, kind: output, shape index: {}]  }
   0x1   :  { %144 = vmatprep.subr.bf16.mxu0 %v157_v0  ;;  %v154_v1 = vld [vmem:[%s213_s1 + $0x8] sm:$0xff]   ;;  %148 = vmatprep.mubr.msk.bf16.mxu0 %vm158_vm1, %v157_v0  ;;  %23 = vst.msk [vmem:[#allocation2] sm:$0xff] %vm22_vm0, %v157_v0  ;;  %24 = vst.msk [vmem:[#allocation2 + $0x8] sm:$0xff] %vm22_vm0, %v157_v0  ;;  %v155_v2 = vld [vmem:[%s213_s1] sm:$0xff]  }
   0x2   :  { %145 = vmatpush3.bf16.msra.mxu0 %v154_v1  ;;  %v156_v3 = vld [vmem:[%s214_s0] sm:$0xff]   ;;  %v114_v18 = vld [vmem:[%s216_s3 + $0x8] sm:$0xff] }
   0x3   :  { %146 = vmatprep.subr.bf16.mxu0 %v157_v0  ;;  %v136_v12 = vld [vmem:[%s215_s2] ss:$0 sm:$0xff] }
   0x4   :  { %v113_v14 = vld [vmem:[%s216_s3] sm:$0xff] }
   0x6   :  { %147 = vmatpush3.bf16.msra.mxu0 %v155_v2 }
   0x8   :  { %v25_v4 = vld [vmem:[#allocation2] sm:$0xff]  ;;  %v26_v8 = vld [vmem:[#allocation2 + $0x8] sm:$0xff] }
   0x9   :  { %149 = vmatmul.mubr.msk.bf16.vlgmr.msra.gmra.mxu0 %vm22_vm0, %v156_v3 }
  0xc9   :  { %v88_v5 = vpop.f32.mrf.mxu0 }
  0xca   :  { %v95_v6 = vadd.f32 %v88_v5, %v25_v4 }
  0xcb   :  { %v150_v7 = vpop.f32.mrf.mxu0 }
  0xcc   :  { %97 = vst.msk [vmem:[#allocation2] sm:$0xff] %vm22_vm0, %v95_v6 }
  0xcd   :  { %v91_v9 = vpop.f32.mrf.mxu0 }
  0xce   :  { %v96_v10 = vadd.f32 %v91_v9, %v26_v8 }
  0xcf   :  { %v151_v11 = vpop.f32.mrf.mxu0 }
  0xd0   :  { %98 = vst.msk [vmem:[#allocation2 + $0x8] sm:$0xff] %vm22_vm0, %v96_v10 }
  0xd3   :  { %v102_v13 = vld [vmem:[#allocation2] sm:$0xff] }
  0xd4   :  { %v111_v15 = vadd.f32 %v136_v12, %v102_v13 }
  0xd6   :  { %v115_v16 = vadd.f32 %v113_v14, %v111_v15 }
  0xd7   :  { %v103_v17 = vld [vmem:[#allocation2 + $0x8] sm:$0xff] }
  0xd8   :  { %v139_v19 = vpack.c.bf16 %v115_v16, %v115_v16  ;;  %v112_v20 = vadd.f32 %v136_v12, %v103_v17 }
  0xda   :  { %126 = vst.msk [vmem:[%s217_s4] sm:$0xf] %vm125_vm2, %v139_v19  ;;  %v116_v21 = vadd.f32 %v114_v18, %v112_v20 }
  0xdc   :  { %v140_v22 = vpack.c.bf16 %v116_v21, %v116_v21 }
  0xde   :  { %127 = vst.msk [vmem:[%s217_s4 + $0x4] sm:$0xf] %vm125_vm2, %v140_v22 }

// kernel: _lambda_.61
= control target key start
LH: loop header
LB: loop body
LE: loop exit
PB: predicated region body
PF: predicated region fallthrough
CT: control target
= control target key end

     0   :  { %vm18_vm0 = vcmask 261120   ;;  %vm72_vm1 = vcmask 257024   ;;  %s132_s0 = inlined_call_operand.vmem [shape: bf16[16,32], index: 0, kind: input, shape index: {}]   ;;  %s133_s1 = inlined_call_operand.vmem [shape: f32[1,32], index: 1, kind: input, shape index: {}]   ;;  %s134_s2 = inlined_call_operand.vmem [shape: f32[1,32], index: 2, kind: input, shape index: {}]   ;;  %s135_s3 = inlined_call_operand.vmem [shape: bf16[16,32], index: 3, kind: output, shape index: {}]  }
   0x1   :  { %v86_v0 = vld [vmem:[%s132_s0] sm:$0xff]  }
   0x2   :  { %v87_v1 = vunpack.c.l.bf16 %v86_v0  ;;  %v88_v2 = vunpack.c.h.bf16 %v86_v0  ;;  %v79_v22 = vld [vmem:[%s133_s1] ss:$0 sm:$0xff] }
   0x3   :  { %v80_v24 = vld [vmem:[%s134_s2] ss:$0 sm:$0xff] }
   0x4   :  { %v19_v3 = vsel %vm18_vm0, %v87_v1, 0.0  ;;  %v22_v4 = vsel %vm18_vm0, %v88_v2, 0.0 }
   0x5   :  { %20 = vadd.xlane.f32.xlu0 %v19_v3 }
   0x9   :  { %23 = vadd.xlane.f32.xlu0 %v22_v4 }
  0x8e   :  { %v21_v5 = vpop.xlane.xlu0 %20 }
  0x8f   :  { %v26_v6 = vmul.f32 0.03125, %v21_v5 }
  0x91   :  { %v28_v7 = vsub.f32 %v87_v1, %v26_v6 }
  0x92   :  { %v24_v8 = vpop.xlane.xlu0 %23 }
  0x93   :  { %v27_v9 = vmul.f32 0.03125, %v24_v8  ;;  %v30_v10 = vmul.f32 %v28_v7, %v28_v7 }
  0x95   :  { %v29_v11 = vsub.f32 %v88_v2, %v27_v9  ;;  %v32_v12 = vsel %vm18_vm0, %v30_v10, 0.0 }
  0x96   :  { %33 = vadd.xlane.f32.xlu1 %v32_v12 }
  0x97   :  { %v31_v13 = vmul.f32 %v29_v11, %v29_v11 }
  0x99   :  { %v35_v14 = vsel %vm18_vm0, %v31_v13, 0.0 }
  0x9a   :  { %36 = vadd.xlane.f32.xlu1 %v35_v14 }
 0x11f   :  { %v34_v15 = vpop.xlane.xlu1 %33 }
 0x120   :  { %v38_v16 = vmul.f32 0.03125, %v34_v15 }
 0x122   :  { %v40_v17 = vadd.f32 1e-05, %v38_v16 }
 0x123   :  { %v37_v18 = vpop.xlane.xlu1 %36 }
 0x124   :  { %89 = vrsqrt.f32 %v40_v17  ;;  %v39_v19 = vmul.f32 0.03125, %v37_v18 }
 0x126   :  { %v41_v20 = vadd.f32 1e-05, %v39_v19 }
 0x128   :  { %91 = vrsqrt.f32 %v41_v20 }
 0x131   :  { %v90_v21 = vpop.eup %89 }
 0x132   :  { %v44_v23 = vmul.f32 %v90_v21, %v28_v7 }
 0x134   :  { %v53_v25 = vmul.f32 %v79_v22, %v44_v23 }
 0x135   :  { %v92_v26 = vpop.eup %91 }
 0x136   :  { %v62_v27 = vadd.f32 %v80_v24, %v53_v25  ;;  %v45_v28 = vmul.f32 %v92_v26, %v29_v11 }
 0x138   :  { %v83_v29 = vpack.c.bf16 %v62_v27, %v62_v27  ;;  %v54_v30 = vmul.f32 %v79_v22, %v45_v28 }
 0x13a   :  { %73 = vst.msk [vmem:[%s135_s3] sm:$0xf] %vm72_vm1, %v83_v29  ;;  %v63_v31 = vadd.f32 %v80_v24, %v54_v30 }
 0x13c   :  { %v84_v32 = vpack.c.bf16 %v63_v31, %v63_v31 }
 0x13e   :  { %74 = vst.msk [vmem:[%s135_s3 + $0x4] sm:$0xf] %vm72_vm1, %v84_v32 }

// kernel: _lambda_.62
= control target key start
LH: loop header
LB: loop body
LE: loop exit
PB: predicated region body
PF: predicated region fallthrough
CT: control target
= control target key end

     0   :  { %vm19_vm0 = vcmask 523264   ;;  %v177_v0 = vmov 0.0   ;;  %vm178_vm1 = vmmov 0   ;;  %vm47_vm2 = vcmask 261120   ;;  %s221_s1 = inlined_call_operand.vmem [shape: bf16[32,64], index: 1, kind: input, shape index: {}]   ;;  %s222_s0 = inlined_call_operand.vmem [shape: bf16[16,32], index: 0, kind: input, shape index: {}]   ;;  %s223_s2 = inlined_call_operand.vmem [shape: f32[1,64], index: 2, kind: input, shape index: {}]   ;;  %s224_s3 = inlined_call_operand.vmem [shape: bf16[16,64], index: 3, kind: output, shape index: {}]  }
   0x1   :  { %156 = vmatprep.subr.bf16.mxu0 %v177_v0  ;;  %v166_v1 = vld [vmem:[%s221_s1 + $0x8] sm:$0xff]   ;;  %160 = vmatprep.mubr.msk.bf16.mxu0 %vm178_vm1, %v177_v0  ;;  %20 = vst.msk [vmem:[#allocation2] sm:$0xff] %vm19_vm0, %v177_v0  ;;  %21 = vst.msk [vmem:[#allocation2 + $0x8] sm:$0xff] %vm19_vm0, %v177_v0  ;;  %v167_v2 = vld [vmem:[%s221_s1] sm:$0xff]   ;;  %vm135_vm3 = vcmask 519168  }
   0x2   :  { %157 = vmatpush3.bf16.msra.mxu0 %v166_v1  ;;  %v168_v3 = vld [vmem:[%s222_s0] sm:$0xff]  }
   0x3   :  { %158 = vmatprep.subr.bf16.mxu0 %v177_v0  ;;  %v146_v12 = vld [vmem:[%s223_s2] ss:$0 sm:$0xff] }
   0x6   :  { %159 = vmatpush3.bf16.msra.mxu0 %v167_v2 }
   0x8   :  { %v22_v4 = vld [vmem:[#allocation2] sm:$0xff]  ;;  %v23_v8 = vld [vmem:[#allocation2 + $0x8] sm:$0xff] }
   0x9   :  { %161 = vmatmul.mubr.msk.bf16.vlgmr.msra.gmra.mxu0 %vm47_vm2, %v168_v3 }
  0xc9   :  { %v85_v5 = vpop.f32.mrf.mxu0 }
  0xca   :  { %v92_v6 = vadd.f32 %v85_v5, %v22_v4 }
  0xcb   :  { %v162_v7 = vpop.f32.mrf.mxu0 }
  0xcc   :  { %95 = vst.msk [vmem:[#allocation2] sm:$0xff] %vm19_vm0, %v92_v6 }
  0xcd   :  { %v88_v9 = vpop.f32.mrf.mxu0 }
  0xce   :  { %v93_v10 = vadd.f32 %v88_v9, %v23_v8 }
  0xcf   :  { %v163_v11 = vpop.f32.mrf.mxu0 }
  0xd0   :  { %96 = vst.msk [vmem:[#allocation2 + $0x8] sm:$0xff] %vm19_vm0, %v93_v10 }
  0xd3   :  { %v100_v13 = vld [vmem:[#allocation2] sm:$0xff] }
  0xd4   :  { %v109_v14 = vadd.f32 %v146_v12, %v100_v13 }
  0xd6   :  { %v147_v15 = vmul.f32 -1.702, %v109_v14 }
  0xd7   :  { %v101_v16 = vld [vmem:[#allocation2 + $0x8] sm:$0xff] }
  0xd8   :  { %v115_v17 = vmul.f32 1.442695, %v147_v15  ;;  %v110_v18 = vadd.f32 %v146_v12, %v101_v16 }
  0xda   :  { %169 = vpow2.f32 %v115_v17  ;;  %v148_v19 = vmul.f32 -1.702, %v110_v18 }
  0xdc   :  { %v117_v20 = vmul.f32 1.442695, %v148_v19 }
  0xde   :  { %171 = vpow2.f32 %v117_v20 }
  0xe7   :  { %v170_v21 = vpop.eup %169 }
  0xe8   :  { %v119_v22 = vadd.f32 1.0, %v170_v21 }
  0xea   :  { %173 = vrcp.f32 %v119_v22 }
  0xeb   :  { %v172_v23 = vpop.eup %171 }
  0xec   :  { %v120_v24 = vadd.f32 1.0, %v172_v23 }
  0xee   :  { %175 = vrcp.f32 %v120_v24 }
  0xf7   :  { %v174_v25 = vpop.eup %173 }
  0xf8   :  { %v125_v26 = vmul.f32 %v174_v25, %v109_v14 }
  0xfa   :  { %v151_v27 = vpack.c.bf16 %v125_v26, %v125_v26 }
  0xfb   :  { %v176_v28 = vpop.eup %175 }
  0xfc   :  { %136 = vst.msk [vmem:[%s224_s3] sm:$0xf] %vm135_vm3, %v151_v27  ;;  %v126_v29 = vmul.f32 %v176_v28, %v110_v18 }
  0xfe   :  { %v152_v30 = vpack.c.bf16 %v126_v29, %v126_v29 }
 0x100   :  { %137 = vst.msk [vmem:[%s224_s3 + $0x4] sm:$0xf] %vm135_vm3, %v152_v30 }

// kernel: _lambda_.63
= control target key start
LH: loop header
LB: loop body
LE: loop exit
PB: predicated region body
PF: predicated region fallthrough
CT: control target
= control target key end

     0   :  { %vm22_vm0 = vcmask 261120   ;;  %v190_v0 = vmov 0.0   ;;  %vm191_vm1 = vmmov 0   ;;  %vm66_vm2 = vcmask 523264   ;;  %s248_s1 = inlined_call_operand.vmem [shape: bf16[64,32], index: 1, kind: input, shape index: {}]   ;;  %s249_s0 = inlined_call_operand.vmem [shape: bf16[16,64], index: 0, kind: input, shape index: {}]   ;;  %s250_s3 = inlined_call_operand.vmem [shape: bf16[16,32], index: 3, kind: input, shape index: {}]   ;;  %s251_s2 = inlined_call_operand.vmem [shape: f32[1,32], index: 2, kind: input, shape index: {}]   ;;  %s252_s4 = inlined_call_operand.vmem [shape: bf16[16,32], index: 4, kind: output, shape index: {}]  }
   0x1   :  { %171 = vmatprep.subr.bf16.mxu0 %v190_v0  ;;  %v185_v1 = vld [vmem:[%s248_s1 + $0x18] sm:$0xff]   ;;  %179 = vmatprep.mubr.msk.bf16.mxu0 %vm191_vm1, %v190_v0  ;;  %23 = vst.msk [vmem:[#allocation2] sm:$0xff] %vm22_vm0, %v190_v0  ;;  %24 = vst.msk [vmem:[#allocation2 + $0x8] sm:$0xff] %vm22_vm0, %v190_v0  ;;  %v186_v2 = vld [vmem:[%s248_s1 + $0x10] sm:$0xff]   ;;  %vm144_vm3 = vcmask 257024  }
   0x2   :  { %172 = vmatpush3.bf16.msra.mxu0 %v185_v1  ;;  %v187_v3 = vld [vmem:[%s248_s1 + $0x8] sm:$0xff]   ;;  %v188_v4 = vld [vmem:[%s248_s1] sm:$0xff]  }
   0x3   :  { %173 = vmatprep.subr.bf16.mxu0 %v190_v0  ;;  %v189_v5 = vld [vmem:[%s249_s0] sm:$0xff]  }
   0x4   :  { %v163_v13 = vld [vmem:[%s250_s3] sm:$0xff]  }
   0x5   :  { %v157_v15 = vld [vmem:[%s251_s2] ss:$0 sm:$0xff]  ;;  %v164_v16 = vunpack.c.l.bf16 %v163_v13  ;;  %v165_v20 = vunpack.c.h.bf16 %v163_v13 }
   0x6   :  { %174 = vmatpush3.bf16.msra.mxu0 %v186_v2 }
   0x7   :  { %175 = vmatprep.subr.bf16.mxu0 %v190_v0 }
   0x8   :  { %v25_v6 = vld [vmem:[#allocation2] sm:$0xff]  ;;  %v26_v10 = vld [vmem:[#allocation2 + $0x8] sm:$0xff] }
   0xa   :  { %176 = vmatpush3.bf16.msra.mxu0 %v187_v3 }
   0xb   :  { %177 = vmatprep.subr.bf16.mxu0 %v190_v0 }
   0xe   :  { %178 = vmatpush3.bf16.msra.mxu0 %v188_v4 }
  0x11   :  { %180 = vmatmul.mubr.msk.bf16.vlgmr.msra.gmra.mxu0 %vm66_vm2, %v189_v5 }
  0xd1   :  { %v104_v7 = vpop.f32.mrf.mxu0 }
  0xd2   :  { %v111_v8 = vadd.f32 %v104_v7, %v25_v6 }
  0xd3   :  { %v181_v9 = vpop.f32.mrf.mxu0 }
  0xd4   :  { %114 = vst.msk [vmem:[#allocation2] sm:$0xff] %vm22_vm0, %v111_v8 }
  0xd5   :  { %v107_v11 = vpop.f32.mrf.mxu0 }
  0xd6   :  { %v112_v12 = vadd.f32 %v107_v11, %v26_v10 }
  0xd7   :  { %v182_v14 = vpop.f32.mrf.mxu0 }
  0xd8   :  { %115 = vst.msk [vmem:[#allocation2 + $0x8] sm:$0xff] %vm22_vm0, %v112_v12 }
  0xdb   :  { %v119_v17 = vld [vmem:[#allocation2] sm:$0xff] }
  0xdc   :  { %v128_v18 = vadd.f32 %v157_v15, %v119_v17 }
  0xde   :  { %v134_v19 = vadd.f32 %v164_v16, %v128_v18 }
  0xdf   :  { %v120_v21 = vld [vmem:[#allocation2 + $0x8] sm:$0xff] }
  0xe0   :  { %v160_v22 = vpack.c.bf16 %v134_v19, %v134_v19  ;;  %v129_v23 = vadd.f32 %v157_v15, %v120_v21 }
  0xe2   :  { %145 = vst.msk [vmem:[%s252_s4] sm:$0xf] %vm144_vm3, %v160_v22  ;;  %v135_v24 = vadd.f32 %v165_v20, %v129_v23 }
  0xe4   :  { %v161_v25 = vpack.c.bf16 %v135_v24, %v135_v24 }
  0xe6   :  { %146 = vst.msk [vmem:[%s252_s4 + $0x4] sm:$0xf] %vm144_vm3, %v161_v25 }

// kernel: _lambda_.67
= control target key start
LH: loop header
LB: loop body
LE: loop exit
PB: predicated region body
PF: predicated region fallthrough
CT: control target
= control target key end

     0   :  { %vm22_vm0 = vcmask 261120   ;;  %v163_v0 = vmov 0.0   ;;  %vm164_vm1 = vmmov 0   ;;  %vm127_vm2 = vcmask 257024   ;;  %s216_s1 = inlined_call_operand.vmem [shape: bf16[32,32], index: 1, kind: input, shape index: {}]   ;;  %s217_s0 = inlined_call_operand.vmem [shape: bf16[16,32], index: 0, kind: input, shape index: {}]   ;;  %s218_s3 = inlined_call_operand.vmem [shape: bf16[16,32], index: 3, kind: input, shape index: {}]   ;;  %s219_s2 = inlined_call_operand.vmem [shape: f32[1,32], index: 2, kind: input, shape index: {}]   ;;  %s220_s4 = inlined_call_operand.vmem [shape: bf16[16,32], index: 4, kind: output, shape index: {}]  }
   0x1   :  { %150 = vmatprep.subr.bf16.mxu0 %v163_v0  ;;  %v160_v1 = vld [vmem:[%s216_s1 + $0x8] sm:$0xff]   ;;  %154 = vmatprep.mubr.msk.bf16.mxu0 %vm164_vm1, %v163_v0  ;;  %23 = vst.msk [vmem:[#allocation2] sm:$0xff] %vm22_vm0, %v163_v0  ;;  %24 = vst.msk [vmem:[#allocation2 + $0x8] sm:$0xff] %vm22_vm0, %v163_v0  ;;  %v161_v2 = vld [vmem:[%s216_s1] sm:$0xff]  }
   0x2   :  { %151 = vmatpush3.bf16.msra.mxu0 %v160_v1  ;;  %v162_v3 = vld [vmem:[%s217_s0] sm:$0xff]  }
   0x3   :  { %152 = vmatprep.subr.bf16.mxu0 %v163_v0  ;;  %v144_v11 = vld [vmem:[%s218_s3] sm:$0xff]  }
   0x4   :  { %v138_v13 = vld [vmem:[%s219_s2] ss:$0 sm:$0xff]  ;;  %v145_v14 = vunpack.c.l.bf16 %v144_v11  ;;  %v146_v18 = vunpack.c.h.bf16 %v144_v11 }
   0x6   :  { %153 = vmatpush3.bf16.msra.mxu0 %v161_v2 }
   0x8   :  { %v25_v4 = vld [vmem:[#allocation2] sm:$0xff]  ;;  %v26_v8 = vld [vmem:[#allocation2 + $0x8] sm:$0xff] }
   0x9   :  { %155 = vmatmul.mubr.msk.bf16.vlgmr.msra.gmra.mxu0 %vm22_vm0, %v162_v3 }
  0xc9   :  { %v88_v5 = vpop.f32.mrf.mxu0 }
  0xca   :  { %v95_v6 = vadd.f32 %v88_v5, %v25_v4 }
  0xcb   :  { %v156_v7 = vpop.f32.mrf.mxu0 }
  0xcc   :  { %97 = vst.msk [vmem:[#allocation2] sm:$0xff] %vm22_vm0, %v95_v6 }
  0xcd   :  { %v91_v9 = vpop.f32.mrf.mxu0 }
  0xce   :  { %v96_v10 = vadd.f32 %v91_v9, %v26_v8 }
  0xcf   :  { %v157_v12 = vpop.f32.mrf.mxu0 }
  0xd0   :  { %98 = vst.msk [vmem:[#allocation2 + $0x8] sm:$0xff] %vm22_vm0, %v96_v10 }
  0xd3   :  { %v102_v15 = vld [vmem:[#allocation2] sm:$0xff] }
  0xd4   :  { %v111_v16 = vadd.f32 %v138_v13, %v102_v15 }
  0xd6   :  { %v117_v17 = vadd.f32 %v145_v14, %v111_v16 }
  0xd7   :  { %v103_v19 = vld [vmem:[#allocation2 + $0x8] sm:$0xff] }
  0xd8   :  { %v141_v20 = vpack.c.bf16 %v117_v17, %v117_v17  ;;  %v112_v21 = vadd.f32 %v138_v13, %v103_v19 }
  0xda   :  { %128 = vst.msk [vmem:[%s220_s4] sm:$0xf] %vm127_vm2, %v141_v20  ;;  %v118_v22 = vadd.f32 %v146_v18, %v112_v21 }
  0xdc   :  { %v142_v23 = vpack.c.bf16 %v118_v22, %v118_v22 }
  0xde   :  { %129 = vst.msk [vmem:[%s220_s4 + $0x4] sm:$0xf] %vm127_vm2, %v142_v23 }

// kernel: _lambda_.71
= control target key start
LH: loop header
LB: loop body
LE: loop exit
PB: predicated region body
PF: predicated region fallthrough
CT: control target
= control target key end

     0   :  { %vm16_vm0 = vcmask 254976   ;;  %vm48_vm1 = vcmask 253952   ;;  %s90_s0 = inlined_call_operand.vmem [shape: bf16[2,32], index: 0, kind: input, shape index: {}]   ;;  %s91_s1 = inlined_call_operand.vmem [shape: f32[1,32], index: 1, kind: input, shape index: {}]   ;;  %s92_s2 = inlined_call_operand.vmem [shape: f32[1,32], index: 2, kind: input, shape index: {}]   ;;  %s93_s3 = inlined_call_operand.vmem [shape: bf16[2,32], index: 3, kind: output, shape index: {}]  }
   0x1   :  { %v14_v0 = vld [vmem:[%s90_s0] sm:$0x1] }
   0x2   :  { %v15_v1 = vunpack.c.l.bf16 %v14_v0  ;;  %v54_v12 = vld [vmem:[%s91_s1] ss:$0 sm:$0xff] }
   0x3   :  { %v55_v14 = vld [vmem:[%s92_s2] ss:$0 sm:$0xff] }
   0x4   :  { %v17_v2 = vsel %vm16_vm0, %v15_v1, 0.0 }
   0x5   :  { %18 = vadd.xlane.f32.xlu0 %v17_v2 }
  0x8e   :  { %v19_v3 = vpop.xlane.xlu0 %18 }
  0x8f   :  { %v21_v4 = vmul.f32 0.03125, %v19_v3 }
  0x91   :  { %v22_v5 = vsub.f32 %v15_v1, %v21_v4 }
  0x93   :  { %v23_v6 = vmul.f32 %v22_v5, %v22_v5 }
  0x95   :  { %v24_v7 = vsel %vm16_vm0, %v23_v6, 0.0 }
  0x96   :  { %25 = vadd.xlane.f32.xlu0 %v24_v7 }
 0x11f   :  { %v26_v8 = vpop.xlane.xlu0 %25 }
 0x120   :  { %v27_v9 = vmul.f32 0.03125, %v26_v8 }
 0x122   :  { %v28_v10 = vadd.f32 1e-05, %v27_v9 }
 0x124   :  { %56 = vrsqrt.f32 %v28_v10 }
 0x131   :  { %v57_v11 = vpop.eup %56 }
 0x132   :  { %v30_v13 = vmul.f32 %v57_v11, %v22_v5 }
 0x134   :  { %v38_v15 = vmul.f32 %v54_v12, %v30_v13 }
 0x136   :  { %v46_v16 = vadd.f32 %v55_v14, %v38_v15 }
 0x138   :  { %v47_v17 = vpack.c.bf16 %v46_v16, %v46_v16 }
 0x13a   :  { %49 = vst.msk [vmem:[%s93_s3] sm:$0x1] %vm48_vm1, %v47_v17 }

// kernel: _lambda_.73
= control target key start
LH: loop header
LB: loop body
LE: loop exit
PB: predicated region body
PF: predicated region fallthrough
CT: control target
= control target key end

     0   :  { %vm11_vm0 = vcmask 123904   ;;  %s75_s0 = inlined_call_operand.vmem [shape: f32[2,16], index: 0, kind: input, shape index: {}]   ;;  %s76_s1 = inlined_call_operand.hbm [shape: f32[2,16], index: 1, kind: output, shape index: {}]  }
   0x1   :  { %v9_v0 = vld [vmem:[%s75_s0] sm:$0x3] }
   0x2   :  { %6 = vsyncpa [#allocation3], 0  ;;  %v10_v1 = vmul.f32 %v9_v0, %v9_v0  ;;  %s58_s8 = smov [#allocation2]  }
   0x3   :  { %s25_s9 = sshll.u32 %s58_s8, 4  ;;  %s26_s9 = int_to_ptr.vmem [resolvable:$true] %s25_s9 }
   0x4   :  { %v12_v2 = vsel %vm11_vm0, %v10_v1, 0.0  ;;  %s36_s10 = scalar_lea.vmem %s26_s9, 32  ;;  %p41_p1 = scmp.lt.s32.totalorder %s26_s9, %s26_s9 }
   0x5   :  { %13 = vadd.xlane.f32.xlu0 %v12_v2  ;;  %p37_p0 = scmp.ne.s32.totalorder %s26_s9, %s36_s10  ;;  %p42_p2 = scmp.lt.s32.totalorder %s36_s10, %s36_s10 }
   0x7   :  { %p43_p3 = por %p42_p2, %p41_p1 }
   0x9   :  { %p44_p4 = pnand %p43_p3, %p37_p0 }
  0x8e   :  { %v14_v3 = vpop.xlane.xlu0 %13 }
  0x8f   :  { %v15_v4 = vadd.f32 1e-12, %v14_v3 }
  0x91   :  { %34 = vrsqrt.f32 %v15_v4 }
  0x9e   :  { %v35_v5 = vpop.eup %34 }
  0x9f   :  { %v17_v6 = vmul.f32 %v35_v5, %v9_v0 }
  0xa1   :  { %18 = vst.msk [vmem:[#allocation2] sm:$0x3] %vm11_vm0, %v17_v6 }
  0xa2   :  { %47 = shalt.err (!%p44_p4)
}
  0xa3   :  { %28 = dma.vmem_to_hbm [thread:$0]  %s26_s9, 32, %s76_s1, [#allocation3]  }
  0xa4   :  { %56 = dma.done.wait [#allocation3], 32  }
  0xa5   :  { %57 = vsyncadd [#allocation3], 4294967264 }
  0xa6   :  { %32 = vsyncpa [#allocation3], 1 }

// kernel: _lambda_.72
= control target key start
LH: loop header
LB: loop body
LE: loop exit
PB: predicated region body
PF: predicated region fallthrough
CT: control target
= control target key end

     0   :  { %vm19_vm0 = vcmask 123904   ;;  %v122_v0 = vmov 0.0   ;;  %vm123_vm1 = vmmov 0   ;;  %vm39_vm2 = vcmask 261120   ;;  %s162_s1 = inlined_call_operand.vmem [shape: bf16[32,16], index: 1, kind: input, shape index: {}]   ;;  %s163_s0 = inlined_call_operand.vmem [shape: bf16[2,32], index: 0, kind: input, shape index: {}]   ;;  %s164_s2 = inlined_call_operand.vmem [shape: f32[1,16], index: 2, kind: input, shape index: {}]   ;;  %s165_s3 = inlined_call_operand.vmem [shape: f32[2,16], index: 3, kind: output, shape index: {}]  }
   0x1   :  { %20 = vst.msk [vmem:[#allocation2] sm:$0x3] %vm19_vm0, %v122_v0  ;;  %110 = vmatprep.subr.bf16.mxu0 %v122_v0  ;;  %v120_v1 = vld [vmem:[%s162_s1 + $0x8] sm:$0xff]   ;;  %114 = vmatprep.mubr.msk.bf16.mxu0 %vm123_vm1, %v122_v0  ;;  %v121_v2 = vld [vmem:[%s162_s1] sm:$0xff]  }
   0x2   :  { %111 = vmatpush3.bf16.msra.mxu0 %v120_v1  ;;  %v22_v3 = vld [vmem:[%s163_s0] sm:$0x1] }
   0x3   :  { %112 = vmatprep.subr.bf16.mxu0 %v122_v0  ;;  %v106_v10 = vld [vmem:[%s164_s2] ss:$0 sm:$0xff] }
   0x6   :  { %113 = vmatpush3.bf16.msra.mxu0 %v121_v2 }
   0x8   :  { %v21_v4 = vld [vmem:[#allocation2] sm:$0x3] }
   0x9   :  { %115 = vmatmul.mubr.msk.bf16.vlgmr.msra.gmra.mxu0 %vm39_vm2, %v22_v3 }
  0xc9   :  { %v77_v5 = vpop.f32.mrf.mxu0 }
  0xca   :  { %v83_v6 = vadd.f32 %v77_v5, %v21_v4 }
  0xcb   :  { %v116_v7 = vpop.f32.mrf.mxu0 }
  0xcc   :  { %85 = vst.msk [vmem:[#allocation2] sm:$0x3] %vm19_vm0, %v83_v6 }
  0xcd   :  { %v80_v8 = vpop.f32.mrf.mxu0 }
  0xcf   :  { %v117_v9 = vpop.f32.mrf.mxu0 }
  0xd3   :  { %v89_v11 = vld [vmem:[#allocation2] sm:$0x3] }
  0xd4   :  { %v97_v12 = vadd.f32 %v106_v10, %v89_v11 }
  0xd6   :  { %98 = vst.msk [vmem:[%s165_s3] sm:$0x3] %vm19_vm0, %v97_v12 }

// kernel: _lambda_.37
= control target key start
LH: loop header
LB: loop body
LE: loop exit
PB: predicated region body
PF: predicated region fallthrough
CT: control target
= control target key end

     0   :  { %vm19_vm0 = vcmask 261120   ;;  %v224_v0 = vmov 0   ;;  %v225_v2 = vmov 0.0   ;;  %vm126_vm1 = vcmask 523264   ;;  %s309_s1 = inlined_call_operand.vmem [shape: bf16[192,32], index: 1, kind: input, shape index: {}]   ;;  %s310_s0 = inlined_call_operand.vmem [shape: f32[16,192], index: 0, kind: input, shape index: {}]   ;;  %s311_s2 = inlined_call_operand.vmem [shape: f32[1,32], index: 2, kind: input, shape index: {}]   ;;  %s312_s3 = inlined_call_operand.vmem [shape: f32[16,32], index: 3, kind: output, shape index: {}]  }
   0x1   :  { %130 = vmatprep.subr.bf16.mxu0 %v224_v0  ;;  %v212_v1 = vld [vmem:[%s309_s1 + $0x38] sm:$0xff]   ;;  %20 = vst.msk [vmem:[#allocation2] sm:$0xff] %vm19_vm0, %v225_v2  ;;  %21 = vst.msk [vmem:[#allocation2 + $0x8] sm:$0xff] %vm19_vm0, %v225_v2  ;;  %v213_v3 = vld [vmem:[%s309_s1 + $0x30] sm:$0xff]  }
   0x2   :  { %131 = vmatpush1.bf16.msra.mxu0 %v212_v1  ;;  %v214_v4 = vld [vmem:[%s309_s1 + $0x28] sm:$0xff]   ;;  %v215_v5 = vld [vmem:[%s309_s1 + $0x20] sm:$0xff]   ;;  %v27_v7 = vld [vmem:[%s310_s0 + $0x18] sm:$0xff] }
   0x3   :  { %132 = vmatprep.subr.bf16.mxu0 %v224_v0  ;;  %v25_v6 = vld [vmem:[%s310_s0 + $0x8] sm:$0xff]  ;;  %v216_v9 = vld [vmem:[%s309_s1 + $0x18] sm:$0xff]   ;;  %v217_v10 = vld [vmem:[%s309_s1 + $0x10] sm:$0xff]  }
   0x4   :  { %v29_v8 = vpack.c.bf16 %v27_v7, %v25_v6  ;;  %v218_v11 = vld [vmem:[%s309_s1 + $0x8] sm:$0xff]   ;;  %v219_v12 = vld [vmem:[%s309_s1] sm:$0xff]   ;;  %v220_v13 = vld [vmem:[%s309_s1 + $0x58] sm:$0xff]  }
   0x5   :  { %v221_v14 = vld [vmem:[%s309_s1 + $0x50] sm:$0xff]   ;;  %v222_v15 = vld [vmem:[%s309_s1 + $0x48] sm:$0xff]   ;;  %v223_v16 = vld [vmem:[%s309_s1 + $0x40] sm:$0xff]  }
   0x6   :  { %133 = vmatpush1.bf16.msra.mxu0 %v213_v3  ;;  %208 = vmatprep.mubr.msk.bf16.mxu0 %vm126_vm1, %v29_v8  ;;  %v24_v17 = vld [vmem:[%s310_s0] sm:$0xff]  ;;  %v26_v18 = vld [vmem:[%s310_s0 + $0x10] sm:$0xff] }
   0x7   :  { %134 = vmatprep.subr.bf16.mxu0 %v224_v0  ;;  %v28_v19 = vpack.c.bf16 %v26_v18, %v24_v17  ;;  %v209_v28 = vld [vmem:[%s311_s2] ss:$0 sm:$0xff] }
   0x8   :  { %v22_v20 = vld [vmem:[#allocation2] sm:$0xff]  ;;  %v23_v24 = vld [vmem:[#allocation2 + $0x8] sm:$0xff] }
   0xa   :  { %135 = vmatpush1.bf16.msra.mxu0 %v214_v4 }
   0xb   :  { %136 = vmatprep.subr.bf16.mxu0 %v224_v0 }
   0xe   :  { %137 = vmatpush1.bf16.msra.mxu0 %v215_v5 }
   0xf   :  { %138 = vmatprep.subr.bf16.mxu0 %v224_v0 }
  0x12   :  { %139 = vmatpush1.bf16.msra.mxu0 %v216_v9 }
  0x13   :  { %140 = vmatprep.subr.bf16.mxu0 %v224_v0 }
  0x16   :  { %141 = vmatpush1.bf16.msra.mxu0 %v217_v10 }
  0x17   :  { %142 = vmatprep.subr.bf16.mxu0 %v224_v0 }
  0x1a   :  { %143 = vmatpush1.bf16.msra.mxu0 %v218_v11 }
  0x1b   :  { %144 = vmatprep.subr.bf16.mxu0 %v224_v0 }
  0x1e   :  { %145 = vmatpush1.bf16.msra.mxu0 %v219_v12 }
  0x1f   :  { %154 = vmatprep.subr.bf16.mxu0 %v224_v0 }
  0x22   :  { %155 = vmatpush2.bf16.msra.mxu0 %v220_v13 }
  0x23   :  { %156 = vmatprep.subr.bf16.mxu0 %v224_v0 }
  0x26   :  { %157 = vmatpush2.bf16.msra.mxu0 %v221_v14 }
  0x27   :  { %158 = vmatprep.subr.bf16.mxu0 %v224_v0 }
  0x2a   :  { %159 = vmatpush2.bf16.msra.mxu0 %v222_v15 }
  0x2b   :  { %160 = vmatprep.subr.bf16.mxu0 %v224_v0 }
  0x2e   :  { %161 = vmatpush2.bf16.msra.mxu0 %v223_v16 }
  0x31   :  { %163 = vmatmul.mubr.bf16.vlgmr.msra.gmra.mxu0 %v28_v19 }
  0xf1   :  { %v164_v21 = vpop.f32.mrf.mxu0 }
  0xf2   :  { %v171_v22 = vadd.f32 %v164_v21, %v22_v20 }
  0xf3   :  { %v166_v23 = vpop.f32.mrf.mxu0 }
  0xf4   :  { %174 = vst.msk [vmem:[#allocation2] sm:$0xff] %vm19_vm0, %v171_v22 }
  0xf5   :  { %v167_v25 = vpop.f32.mrf.mxu0 }
  0xf6   :  { %v172_v26 = vadd.f32 %v167_v25, %v23_v24 }
  0xf7   :  { %v169_v27 = vpop.f32.mrf.mxu0 }
  0xf8   :  { %175 = vst.msk [vmem:[#allocation2 + $0x8] sm:$0xff] %vm19_vm0, %v172_v26 }
  0xfb   :  { %v179_v29 = vld [vmem:[#allocation2] sm:$0xff] }
  0xfc   :  { %v188_v30 = vadd.f32 %v209_v28, %v179_v29 }
  0xfe   :  { %190 = vst.msk [vmem:[%s312_s3] sm:$0xff] %vm19_vm0, %v188_v30 }
  0xff   :  { %v180_v31 = vld [vmem:[#allocation2 + $0x8] sm:$0xff] }
 0x100   :  { %v189_v32 = vadd.f32 %v209_v28, %v180_v31 }
 0x102   :  { %191 = vst.msk [vmem:[%s312_s3 + $0x8] sm:$0xff] %vm19_vm0, %v189_v32 }

// kernel: _lambda_.39
= control target key start
LH: loop header
LB: loop body
LE: loop exit
PB: predicated region body
PF: predicated region fallthrough
CT: control target
= control target key end

     0   :  { %vm20_vm0 = vcmask 261120   ;;  %vm27_vm1 = vcmask 257024   ;;  %vm97_vm2 = vcmask 254976   ;;  %s170_s0 = inlined_call_operand.vmem [shape: bf16[20,32], index: 0, kind: input, shape index: {}]   ;;  %s171_s1 = inlined_call_operand.vmem [shape: f32[1,32], index: 1, kind: input, shape index: {}]   ;;  %s172_s2 = inlined_call_operand.vmem [shape: f32[1,32], index: 2, kind: input, shape index: {}]   ;;  %s173_s3 = inlined_call_operand.vmem [shape: bf16[20,32], index: 3, kind: output, shape index: {}]  }
   0x1   :  { %v112_v0 = vld [vmem:[%s170_s0] sm:$0xff]   ;;  %v16_v1 = vld [vmem:[%s170_s0 + $0x8] sm:$0x3] }
   0x2   :  { %v113_v2 = vunpack.c.l.bf16 %v112_v0  ;;  %v19_v3 = vunpack.c.l.bf16 %v16_v1  ;;  %v114_v4 = vunpack.c.h.bf16 %v112_v0  ;;  %v103_v33 = vld [vmem:[%s171_s1] ss:$0 sm:$0xff] }
   0x3   :  { %v104_v35 = vld [vmem:[%s172_s2] ss:$0 sm:$0xff] }
   0x4   :  { %v21_v5 = vsel %vm20_vm0, %v113_v2, 0.0  ;;  %v28_v6 = vsel %vm27_vm1, %v19_v3, 0.0  ;;  %v24_v7 = vsel %vm20_vm0, %v114_v4, 0.0 }
   0x5   :  { %22 = vadd.xlane.f32.xlu0 %v21_v5  ;;  %29 = vadd.xlane.f32.xlu1 %v28_v6 }
   0x9   :  { %25 = vadd.xlane.f32.xlu0 %v24_v7 }
  0x8e   :  { %v23_v8 = vpop.xlane.xlu0 %22  ;;  %v30_v9 = vpop.xlane.xlu1 %29 }
  0x8f   :  { %v32_v10 = vmul.f32 0.03125, %v23_v8  ;;  %v34_v11 = vmul.f32 0.03125, %v30_v9 }
  0x91   :  { %v35_v12 = vsub.f32 %v113_v2, %v32_v10  ;;  %v37_v13 = vsub.f32 %v19_v3, %v34_v11 }
  0x92   :  { %v26_v14 = vpop.xlane.xlu0 %25 }
  0x93   :  { %v33_v15 = vmul.f32 0.03125, %v26_v14  ;;  %v38_v16 = vmul.f32 %v35_v12, %v35_v12  ;;  %v40_v17 = vmul.f32 %v37_v13, %v37_v13 }
  0x95   :  { %v36_v18 = vsub.f32 %v114_v4, %v33_v15  ;;  %v41_v19 = vsel %vm20_vm0, %v38_v16, 0.0  ;;  %v47_v20 = vsel %vm27_vm1, %v40_v17, 0.0 }
  0x96   :  { %42 = vadd.xlane.f32.xlu1 %v41_v19 }
  0x97   :  { %v39_v21 = vmul.f32 %v36_v18, %v36_v18 }
  0x99   :  { %v44_v22 = vsel %vm20_vm0, %v39_v21, 0.0 }
  0x9a   :  { %48 = vadd.xlane.f32.xlu1 %v47_v20  ;;  %45 = vadd.xlane.f32.xlu0 %v44_v22 }
 0x11f   :  { %v43_v23 = vpop.xlane.xlu1 %42 }
 0x120   :  { %v50_v24 = vmul.f32 0.03125, %v43_v23 }
 0x122   :  { %v53_v25 = vadd.f32 1e-05, %v50_v24 }
 0x123   :  { %v49_v26 = vpop.xlane.xlu1 %48  ;;  %v46_v27 = vpop.xlane.xlu0 %45 }
 0x124   :  { %115 = vrsqrt.f32 %v53_v25  ;;  %v52_v28 = vmul.f32 0.03125, %v49_v26  ;;  %v51_v29 = vmul.f32 0.03125, %v46_v27 }
 0x126   :  { %v55_v30 = vadd.f32 1e-05, %v52_v28  ;;  %v54_v31 = vadd.f32 1e-05, %v51_v29 }
 0x128   :  { %117 = vrsqrt.f32 %v55_v30 }
 0x129   :  { %119 = vrsqrt.f32 %v54_v31 }
 0x131   :  { %v116_v32 = vpop.eup %115 }
 0x132   :  { %v59_v34 = vmul.f32 %v116_v32, %v35_v12 }
 0x134   :  { %v69_v36 = vmul.f32 %v103_v33, %v59_v34 }
 0x135   :  { %v118_v37 = vpop.eup %117 }
 0x136   :  { %v120_v38 = vpop.eup %119  ;;  %v79_v39 = vadd.f32 %v104_v35, %v69_v36  ;;  %v61_v40 = vmul.f32 %v118_v37, %v37_v13 }
 0x137   :  { %v60_v41 = vmul.f32 %v120_v38, %v36_v18 }
 0x138   :  { %v108_v42 = vpack.c.bf16 %v79_v39, %v79_v39  ;;  %v71_v43 = vmul.f32 %v103_v33, %v61_v40 }
 0x139   :  { %v70_v44 = vmul.f32 %v103_v33, %v60_v41 }
 0x13a   :  { %95 = vst.msk [vmem:[%s173_s3] sm:$0xf] %vm27_vm1, %v108_v42  ;;  %v81_v45 = vadd.f32 %v104_v35, %v71_v43 }
 0x13b   :  { %v80_v46 = vadd.f32 %v104_v35, %v70_v44 }
 0x13c   :  { %v110_v47 = vpack.c.bf16 %v81_v45, %v81_v45 }
 0x13d   :  { %v109_v48 = vpack.c.bf16 %v80_v46, %v80_v46 }
 0x13e   :  { %98 = vst.msk [vmem:[%s173_s3 + $0x8] sm:$0x3] %vm97_vm2, %v110_v47 }
 0x13f   :  { %96 = vst.msk [vmem:[%s173_s3 + $0x4] sm:$0xf] %vm27_vm1, %v109_v48 }

// kernel: _lambda_.40
= control target key start
LH: loop header
LB: loop body
LE: loop exit
PB: predicated region body
PF: predicated region fallthrough
CT: control target
= control target key end

     0   :  { %vm22_vm0 = vcmask 781312   ;;  %v184_v1 = vmov 0.0   ;;  %vm54_vm1 = vcmask 261120   ;;  %vm19_vm2 = vcmask 785408   ;;  %s237_s1 = inlined_call_operand.vmem [shape: bf16[32,96], index: 1, kind: input, shape index: {}]   ;;  %s238_s0 = inlined_call_operand.vmem [shape: bf16[20,32], index: 0, kind: input, shape index: {}]   ;;  %s239_s2 = inlined_call_operand.vmem [shape: f32[1,96], index: 2, kind: input, shape index: {}]   ;;  %s240_s3 = inlined_call_operand.vmem [shape: bf16[20,96], index: 3, kind: output, shape index: {}]  }
   0x1   :  { %v180_v0 = vld [vmem:[%s237_s1 + $0x8] sm:$0xff]   ;;  %23 = vst.msk [vmem:[#allocation2 + $0x10] sm:$0xf] %vm22_vm0, %v184_v1  ;;  %v181_v2 = vld [vmem:[%s237_s1] sm:$0xff]   ;;  %vm148_vm3 = vcmask 779264  }
   0x2   :  { %171 = vmatprep.subr.bf16.mxu0 %v180_v0  ;;  %v182_v3 = vld [vmem:[%s238_s0] sm:$0xff]   ;;  %v183_v4 = vld [vmem:[%s238_s0 + $0x8] ss:$0 sps:$4 sm:$0x33]   ;;  %20 = vst.msk [vmem:[#allocation2] sm:$0xff] %vm19_vm2, %v184_v1  ;;  %21 = vst.msk [vmem:[#allocation2 + $0x8] sm:$0xff] %vm19_vm2, %v184_v1 }
   0x3   :  { %172 = vmatpush3.bf16.msra.mxu0 %v180_v0  ;;  %175 = vmatprep.mubr.msk.bf16.mxu0 %vm54_vm1, %v182_v3  ;;  %v160_v15 = vld [vmem:[%s239_s2] ss:$0 sm:$0xff] }
   0x4   :  { %173 = vmatprep.subr.bf16.mxu0 %v181_v2 }
   0x7   :  { %174 = vmatpush3.bf16.msra.mxu0 %v181_v2 }
   0x8   :  { %v26_v5 = vld [vmem:[#allocation2 + $0x10] sm:$0xf] }
   0x9   :  { %v24_v7 = vld [vmem:[#allocation2] sm:$0xff]  ;;  %v25_v12 = vld [vmem:[#allocation2 + $0x8] sm:$0xff] }
   0xa   :  { %176 = vmatmul.mubr.msk.bf16.vlgmr.msra.gmra.mxu0 %vm54_vm1, %v183_v4 }
  0xca   :  { %v177_v6 = vpop.f32.mrf.mxu0 }
  0xcb   :  { %v111_v8 = vadd.f32 %v177_v6, %v26_v5 }
  0xcc   :  { %v95_v9 = vpop.f32.mrf.mxu0 }
  0xcd   :  { %116 = vst.msk [vmem:[#allocation2 + $0x10] sm:$0xf] %vm22_vm0, %v111_v8  ;;  %v109_v10 = vadd.f32 %v95_v9, %v24_v7 }
  0xce   :  { %v178_v11 = vpop.f32.mrf.mxu0 }
  0xcf   :  { %113 = vst.msk [vmem:[#allocation2] sm:$0xff] %vm19_vm2, %v109_v10 }
  0xd0   :  { %v98_v13 = vpop.f32.mrf.mxu0 }
  0xd1   :  { %v110_v14 = vadd.f32 %v98_v13, %v25_v12 }
  0xd3   :  { %114 = vst.msk [vmem:[#allocation2 + $0x8] sm:$0xff] %vm19_vm2, %v110_v14 }
  0xd4   :  { %v122_v16 = vld [vmem:[#allocation2 + $0x10] sm:$0xf] }
  0xd5   :  { %v132_v17 = vadd.f32 %v160_v15, %v122_v16 }
  0xd6   :  { %v120_v18 = vld [vmem:[#allocation2] sm:$0xff] }
  0xd7   :  { %v166_v19 = vpack.c.bf16 %v132_v17, %v132_v17  ;;  %v130_v20 = vadd.f32 %v160_v15, %v120_v18 }
  0xd9   :  { %149 = vst.msk [vmem:[%s240_s3 + $0x8] sm:$0x3] %vm148_vm3, %v166_v19  ;;  %v164_v21 = vpack.c.bf16 %v130_v20, %v130_v20 }
  0xda   :  { %v121_v22 = vld [vmem:[#allocation2 + $0x8] sm:$0xff] }
  0xdb   :  { %146 = vst.msk [vmem:[%s240_s3] sm:$0xf] %vm22_vm0, %v164_v21  ;;  %v131_v23 = vadd.f32 %v160_v15, %v121_v22 }
  0xdd   :  { %v165_v24 = vpack.c.bf16 %v131_v23, %v131_v23 }
  0xdf   :  { %147 = vst.msk [vmem:[%s240_s3 + $0x4] sm:$0xf] %vm22_vm0, %v165_v24 }

// kernel: _lambda_.38
= control target key start
LH: loop header
LB: loop body
LE: loop exit
PB: predicated region body
PF: predicated region fallthrough
CT: control target
= control target key end

     0   :  { %s341_s15 = smov 0   ;;  %s367_s0 = inlined_call_operand.vmem [shape: f32[4,5,32], index: 0, kind: input, shape index: {}]   ;;  %s368_s1 = inlined_call_operand.vmem [shape: f32[1,5,32], index: 1, kind: input, shape index: {}]   ;;  %s369_s2 = inlined_call_operand.vmem [shape: f32[1,1,32], index: 2, kind: input, shape index: {}]   ;;  %s370_s3 = inlined_call_operand.vmem [shape: f32[1,1,32], index: 3, kind: input, shape index: {}]   ;;  %s371_s4 = inlined_call_operand.vmem [shape: bf16[4,5,32], index: 4, kind: output, shape index: {}]  }
   0x1 LB: > { %s287_s16 = sadd.s32 4294967295, %s314_s15   ;;  %p291_p0 = scmp.ge.s32.totalorder %s314_s15, 1  ;;  %s314_s15 = sphi %s341_s15, %s14_s15  }
   0x2   : > { %p161_p1 = scmp.lt.s32.totalorder %s314_s15, 5 }
   0x4   : > { %p162_p2 = pnand %p291_p0, %p161_p1 }
   0x5   : > { %p185_p3 = scmp.lt.s32.totalorder (!%p162_p2), %s287_s16, 3 }
   0x6   : > { %165 = sbr.rel (%p162_p2) target bundleno = 329 (0x149), region = 36 }
   0xb   : > { %s373_s16 = smov (!%p185_p3, %s287_s16), 3  ;;  %v194_v0 = vld [vmem:[%s368_s1] sm:$0x1f]  ;;  %vm196_vm0 = vcmask 258048   ;;  %vm228_vm1 = vcmask 256000  }
   0xc   : > { %s292_s17 = sshll.u32 %s373_s16, 3  ;;  %s293_s23 = sshll.u32 %s373_s16, 2  ;;  %v294_v13 = vld [vmem:[%s369_s2] ss:$0 sm:$0xff]  ;;  %vm229_vm2 = vsmask.f32 2304 }
   0xd   : > { %s188_s22 = scalar_lea.vmem %s367_s0, %s292_s17  ;;  %v295_v15 = vld [vmem:[%s370_s3] ss:$0 sm:$0xff]  ;;  %s192_s30 = scalar_lea.vmem %s371_s4, %s293_s23  ;;  %vm230_vm3 = vmand %vm228_vm1, %vm229_vm2 }
   0xe   : > { %v193_v1 = vld [vmem:[%s188_s22] sm:$0x1f] }
   0xf   : > { %v195_v2 = vadd.f32 %v194_v0, %v193_v1  ;;  %v231_v18 = vld [vmem:[%s192_s30] sm:$0x7] }
  0x11   : > { %v197_v3 = vsel %vm196_vm0, %v195_v2, 0.0 }
  0x12   : > { %198 = vadd.xlane.f32.xlu0 %v197_v3 }
  0x9b   : > { %v199_v4 = vpop.xlane.xlu0 %198 }
  0x9c   : > { %v201_v5 = vmul.f32 0.03125, %v199_v4 }
  0x9e   : > { %v202_v6 = vsub.f32 %v195_v2, %v201_v5 }
  0xa0   : > { %v203_v7 = vmul.f32 %v202_v6, %v202_v6 }
  0xa2   : > { %v204_v8 = vsel %vm196_vm0, %v203_v7, 0.0 }
  0xa3   : > { %205 = vadd.xlane.f32.xlu0 %v204_v8 }
 0x12c   : > { %v206_v9 = vpop.xlane.xlu0 %205 }
 0x12d   : > { %v207_v10 = vmul.f32 0.03125, %v206_v9 }
 0x12f   : > { %v208_v11 = vadd.f32 1e-05, %v207_v10 }
 0x131   : > { %306 = vrsqrt.f32 %v208_v11 }
 0x13e   : > { %v307_v12 = vpop.eup %306 }
 0x13f   : > { %v210_v14 = vmul.f32 %v307_v12, %v202_v6 }
 0x141   : > { %v218_v16 = vmul.f32 %v294_v13, %v210_v14 }
 0x143   : > { %v226_v17 = vadd.f32 %v295_v15, %v218_v16 }
 0x145   : > { %v227_v19 = vpack.c.bf16 %v226_v17, %v226_v17 }
 0x147   : > { %v232_v20 = vsel %vm230_vm3, %v227_v19, %v231_v18 }
 0x148   : > { %233 = vst [vmem:[%s192_s30] sm:$0x7] %v232_v20 }
 0x149 PF: > { %s14_s15 = sadd.s32 1, %s314_s15  }
 0x14a   : > { %p11_p4 = scmp.ge.s32.totalorder %s14_s15, 6  }
 0x14c   :  { %13 = sbr.rel (!%p11_p4) target bundleno = 1 (0x1), region = 66 }

// kernel: _lambda_.41
= control target key start
LH: loop header
LB: loop body
LE: loop exit
PB: predicated region body
PF: predicated region fallthrough
CT: control target
= control target key end

     0   :  { %s635_s12 = smov 0   ;;  %s676_s0 = inlined_call_operand.vmem [shape: bf16[8,5,16], index: 0, kind: input, shape index: {}]   ;;  %s677_s1 = inlined_call_operand.vmem [shape: bf16[8,5,16], index: 1, kind: input, shape index: {}]   ;;  %s678_s2 = inlined_call_operand.vmem [shape: bf16[8,5,16], index: 2, kind: input, shape index: {}]   ;;  %s679_s3 = inlined_call_operand.vmem [shape: bf16[8,5,16], index: 3, kind: output, shape index: {}]  }
   0x1 LB: > { %s534_s13 = sadd.s32 4294967295, %s610_s12   ;;  %p538_p0 = scmp.ge.s32.totalorder %s610_s12, 1  ;;  %s610_s12 = sphi %s635_s12, %s13_s12  }
   0x2   : > { %p160_p1 = scmp.lt.s32.totalorder %s610_s12, 5 }
   0x4   : > { %p161_p2 = pnand %p538_p0, %p160_p1 }
   0x5   : > { %s539_s14 = sshll.u32 (!%p161_p2), %s534_s13, 1 }
   0x6   : > { %164 = sbr.rel (%p161_p2) target bundleno = 733 (0x2dd), region = 32  ;;  %p195_p3 = scmp.lt.s32.totalorder (!%p161_p2), %s539_s14, 7 }
   0xb   : > { %v612_v0 = vmov 0.0   ;;  %vm613_vm0 = vmmov 0   ;;  %s681_s14 = smov (!%p195_p3, %s539_s14), 7  ;;  %vm228_vm1 = vcmask 130048   ;;  %vm321_vm2 = vcmask 36864  }
   0xc   : > { %561 = vmatprep.subr.bf16.mxu0 %v612_v0  ;;  %567 = vmatprep.subr.bf16.mxu1 %v612_v0  ;;  %s645_s15 = sshll.u32 %s681_s14, 2  ;;  %vm350_vm3 = vcmask 1041408   ;;  %vm351_vm4 = vcmask 1042432   ;;  %v614_v30 = vmov 65535   ;;  %vm346_vm5 = vcmask 39936  }
   0xd   : > { %563 = vmatprep.mubr.msk.bf16.mxu0 %vm613_vm0, %v612_v0  ;;  %569 = vmatprep.mubr.msk.bf16.mxu1 %vm613_vm0, %v612_v0  ;;  %s204_s18 = scalar_lea.vmem %s677_s1, %s645_s15  ;;  %s198_s21 = scalar_lea.vmem %s676_s0, %s645_s15  ;;  %v352_v31 = vsel %vm350_vm3, 4294967295, %v614_v30  ;;  %vm445_vm6 = vcmask 124928   ;;  %vm446_vm7 = vsmask.f32 2304 }
   0xe   : > { %v224_v1 = vld [vmem:[%s204_s18] sm:$0x7]  ;;  %v225_v2 = vld [vmem:[%s204_s18 + $0x4] sm:$0x7]  ;;  %s210_s24 = scalar_lea.vmem %s678_s2, %s645_s15  ;;  %v353_v33 = vsel %vm351_vm4, %v352_v31, 0  ;;  %s216_s27 = scalar_lea.vmem %s679_s3, %s645_s15  ;;  %vm447_vm8 = vmand %vm445_vm6, %vm446_vm7 }
   0xf   : > { %v233_v3 = vsel %vm228_vm1, %v224_v1, 0  ;;  %v279_v4 = vsel %vm228_vm1, %v225_v2, 0  ;;  %v220_v5 = vld [vmem:[%s198_s21] sm:$0x7]  ;;  %v221_v6 = vld [vmem:[%s198_s21 + $0x4] sm:$0x7] }
  0x10   : > { %562 = vmatpush3.bf16.xpose.msra.mxu0 %v233_v3  ;;  %568 = vmatpush3.bf16.xpose.msra.mxu1 %v279_v4  ;;  %v222_v7 = vmul.bf16 1048592000, %v220_v5  ;;  %v223_v8 = vmul.bf16 1048592000, %v221_v6  ;;  %v226_v29 = vld [vmem:[%s210_s24] sm:$0x7] }
  0x11   : > { %573 = vmatprep.subr.bf16.mxu0 %v612_v0  ;;  %579 = vmatprep.subr.bf16.mxu1 %v612_v0  ;;  %v227_v32 = vld [vmem:[%s210_s24 + $0x4] sm:$0x7]  ;;  %v355_v34 = vand.u32 %v353_v33, %v226_v29  ;;  %v448_v45 = vld [vmem:[%s216_s27] sm:$0x7] }
  0x12   : > { %v401_v35 = vand.u32 %v353_v33, %v227_v32  ;;  %v451_v56 = vld [vmem:[%s216_s27 + $0x4] sm:$0x7] }
  0x17   : > { %564 = vmatmul.mubr.msk.bf16.vlgmr.msra.gmra.mxu0 %vm228_vm1, %v222_v7  ;;  %570 = vmatmul.mubr.msk.bf16.vlgmr.msra.gmra.mxu1 %vm228_vm1, %v223_v8 }
  0x18   : > { %575 = vmatprep.mubr.msk.bf16.mxu0 %vm613_vm0, %v612_v0  ;;  %581 = vmatprep.mubr.msk.bf16.mxu1 %vm613_vm0, %v612_v0 }
  0x19   : > { %574 = vmatpush3.bf16.msra.mxu0 %v355_v34  ;;  %580 = vmatpush3.bf16.msra.mxu1 %v401_v35 }
  0xd7   : > { %v269_v9 = vpop.f32.mrf.mxu0  ;;  %v315_v10 = vpop.f32.mrf.mxu1 }
  0xd8   : > { %v322_v11 = vsel %vm321_vm2, %v269_v9, -inf  ;;  %v325_v14 = vsel %vm321_vm2, %v315_v10, -inf }
  0xd9   : > { %323 = vmax.xlane.f32.xlu0 %v322_v11  ;;  %v565_v12 = vpop.f32.mrf.mxu0  ;;  %v571_v13 = vpop.f32.mrf.mxu1 }
  0xdb   : > { %v272_v15 = vpop.f32.mrf.mxu0  ;;  %v318_v16 = vpop.f32.mrf.mxu1 }
  0xdd   : > { %326 = vmax.xlane.f32.xlu0 %v325_v14  ;;  %v566_v17 = vpop.f32.mrf.mxu0  ;;  %v572_v18 = vpop.f32.mrf.mxu1 }
 0x162   : > { %v324_v19 = vpop.xlane.xlu0 %323 }
 0x163   : > { %v328_v20 = vsub.f32 %v269_v9, %v324_v19 }
 0x165   : > { %v330_v21 = vmul.f32 1.442695, %v328_v20 }
 0x166   : > { %v327_v22 = vpop.xlane.xlu0 %326 }
 0x167   : > { %596 = vpow2.f32 %v330_v21  ;;  %v329_v23 = vsub.f32 %v315_v10, %v327_v22 }
 0x169   : > { %v332_v24 = vmul.f32 1.442695, %v329_v23 }
 0x16b   : > { %598 = vpow2.f32 %v332_v24 }
 0x174   : > { %v597_v25 = vpop.eup %596 }
 0x175   : > { %v334_v26 = vsel %vm321_vm2, %v597_v25, 0.0 }
 0x176   : > { %335 = vadd.xlane.f32.xlu1 %v334_v26 }
 0x178   : > { %v599_v27 = vpop.eup %598 }
 0x179   : > { %v337_v28 = vsel %vm321_vm2, %v599_v27, 0.0 }
 0x17a   : > { %338 = vadd.xlane.f32.xlu1 %v337_v28 }
 0x1ff   : > { %v336_v36 = vpop.xlane.xlu1 %335 }
 0x200   : > { %600 = vrcp.f32 %v336_v36 }
 0x203   : > { %v339_v37 = vpop.xlane.xlu1 %338 }
 0x204   : > { %602 = vrcp.f32 %v339_v37 }
 0x20d   : > { %v601_v38 = vpop.eup %600 }
 0x20e   : > { %v342_v39 = vmul.f32 %v601_v38, %v597_v25 }
 0x210   : > { %v344_v40 = vpack.c.bf16 %v342_v39, %v342_v39 }
 0x211   : > { %v603_v41 = vpop.eup %602 }
 0x212   : > { %576 = vmatmul.mubr.msk.bf16.vlgmr.msra.gmra.mxu0 %vm346_vm5, %v344_v40  ;;  %v343_v42 = vmul.f32 %v603_v41, %v599_v27 }
 0x214   : > { %v345_v43 = vpack.c.bf16 %v343_v42, %v343_v42 }
 0x216   : > { %582 = vmatmul.mubr.msk.bf16.vlgmr.msra.gmra.mxu1 %vm346_vm5, %v345_v43 }
 0x2d2   : > { %v391_v44 = vpop.f32.mrf.mxu0 }
 0x2d3   : > { %v443_v46 = vpack.c.bf16 %v391_v44, %v391_v44 }
 0x2d4   : > { %v577_v47 = vpop.f32.mrf.mxu0 }
 0x2d5   : > { %v449_v48 = vsel %vm447_vm8, %v443_v46, %v448_v45 }
 0x2d6   : > { %450 = vst [vmem:[%s216_s27] sm:$0x7] %v449_v48  ;;  %v394_v49 = vpop.f32.mrf.mxu0  ;;  %v437_v50 = vpop.f32.mrf.mxu1 }
 0x2d7   : > { %v444_v54 = vpack.c.bf16 %v437_v50, %v437_v50 }
 0x2d8   : > { %v578_v51 = vpop.f32.mrf.mxu0  ;;  %v583_v52 = vpop.f32.mrf.mxu1 }
 0x2d9   : > { %v452_v57 = vsel %vm447_vm8, %v444_v54, %v451_v56 }
 0x2da   : > { %v440_v53 = vpop.f32.mrf.mxu1  ;;  %453 = vst [vmem:[%s216_s27 + $0x4] sm:$0x7] %v452_v57 }
 0x2dc   : > { %v584_v55 = vpop.f32.mrf.mxu1 }
 0x2dd PF: > { %s13_s12 = sadd.s32 1, %s610_s12  }
 0x2de   : > { %p10_p4 = scmp.ge.s32.totalorder %s13_s12, 6  }
 0x2e0   :  { %12 = sbr.rel (!%p10_p4) target bundleno = 1 (0x1), region = 68 }

// kernel: _lambda_.42
= control target key start
LH: loop header
LB: loop body
LE: loop exit
PB: predicated region body
PF: predicated region fallthrough
CT: control target
= control target key end

     0   :  { %vm22_vm0 = vcmask 261120   ;;  %vm25_vm1 = vcmask 257024   ;;  %v199_v1 = vmov 0.0   ;;  %vm159_vm2 = vcmask 254976   ;;  %s265_s1 = inlined_call_operand.vmem [shape: bf16[32,32], index: 1, kind: input, shape index: {}]   ;;  %s266_s0 = inlined_call_operand.vmem [shape: bf16[20,32], index: 0, kind: input, shape index: {}]   ;;  %s267_s3 = inlined_call_operand.vmem [shape: bf16[20,32], index: 3, kind: input, shape index: {}]   ;;  %s268_s2 = inlined_call_operand.vmem [shape: f32[1,32], index: 2, kind: input, shape index: {}]   ;;  %s269_s4 = inlined_call_operand.vmem [shape: bf16[20,32], index: 4, kind: output, shape index: {}]  }
   0x1   :  { %v195_v0 = vld [vmem:[%s265_s1 + $0x8] sm:$0xff]   ;;  %26 = vst.msk [vmem:[#allocation2 + $0x10] sm:$0xf] %vm25_vm1, %v199_v1  ;;  %v196_v2 = vld [vmem:[%s265_s1] sm:$0xff]  }
   0x2   :  { %23 = vst.msk [vmem:[#allocation2] sm:$0xff] %vm22_vm0, %v199_v1  ;;  %24 = vst.msk [vmem:[#allocation2 + $0x8] sm:$0xff] %vm22_vm0, %v199_v1  ;;  %186 = vmatprep.subr.bf16.mxu0 %v195_v0  ;;  %v197_v3 = vld [vmem:[%s266_s0] sm:$0xff]   ;;  %v198_v4 = vld [vmem:[%s266_s0 + $0x8] ss:$0 sps:$4 sm:$0x33]  }
   0x3   :  { %187 = vmatpush3.bf16.msra.mxu0 %v195_v0  ;;  %190 = vmatprep.mubr.msk.bf16.mxu0 %vm22_vm0, %v197_v3  ;;  %v137_v13 = vld [vmem:[%s267_s3 + $0x8] sm:$0x3]  ;;  %v171_v16 = vld [vmem:[%s268_s2] ss:$0 sm:$0xff] }
   0x4   :  { %188 = vmatprep.subr.bf16.mxu0 %v196_v2  ;;  %v179_v17 = vld [vmem:[%s267_s3] sm:$0xff]   ;;  %v140_v18 = vunpack.c.l.bf16 %v137_v13 }
   0x5   :  { %v180_v21 = vunpack.c.l.bf16 %v179_v17  ;;  %v181_v27 = vunpack.c.h.bf16 %v179_v17 }
   0x7   :  { %189 = vmatpush3.bf16.msra.mxu0 %v196_v2 }
   0x8   :  { %v29_v5 = vld [vmem:[#allocation2 + $0x10] sm:$0xf] }
   0x9   :  { %v27_v7 = vld [vmem:[#allocation2] sm:$0xff]  ;;  %v28_v12 = vld [vmem:[#allocation2 + $0x8] sm:$0xff] }
   0xa   :  { %191 = vmatmul.mubr.msk.bf16.vlgmr.msra.gmra.mxu0 %vm22_vm0, %v198_v4 }
  0xca   :  { %v192_v6 = vpop.f32.mrf.mxu0 }
  0xcb   :  { %v114_v8 = vadd.f32 %v192_v6, %v29_v5 }
  0xcc   :  { %v98_v9 = vpop.f32.mrf.mxu0 }
  0xcd   :  { %118 = vst.msk [vmem:[#allocation2 + $0x10] sm:$0xf] %vm25_vm1, %v114_v8  ;;  %v112_v10 = vadd.f32 %v98_v9, %v27_v7 }
  0xce   :  { %v193_v11 = vpop.f32.mrf.mxu0 }
  0xcf   :  { %115 = vst.msk [vmem:[#allocation2] sm:$0xff] %vm22_vm0, %v112_v10 }
  0xd0   :  { %v101_v14 = vpop.f32.mrf.mxu0 }
  0xd1   :  { %v113_v15 = vadd.f32 %v101_v14, %v28_v12 }
  0xd3   :  { %116 = vst.msk [vmem:[#allocation2 + $0x8] sm:$0xff] %vm22_vm0, %v113_v15 }
  0xd4   :  { %v124_v19 = vld [vmem:[#allocation2 + $0x10] sm:$0xf] }
  0xd5   :  { %v134_v20 = vadd.f32 %v171_v16, %v124_v19 }
  0xd6   :  { %v122_v22 = vld [vmem:[#allocation2] sm:$0xff] }
  0xd7   :  { %v143_v23 = vadd.f32 %v140_v18, %v134_v20  ;;  %v132_v24 = vadd.f32 %v171_v16, %v122_v22 }
  0xd9   :  { %v177_v25 = vpack.c.bf16 %v143_v23, %v143_v23  ;;  %v141_v26 = vadd.f32 %v180_v21, %v132_v24 }
  0xda   :  { %v123_v28 = vld [vmem:[#allocation2 + $0x8] sm:$0xff] }
  0xdb   :  { %160 = vst.msk [vmem:[%s269_s4 + $0x8] sm:$0x3] %vm159_vm2, %v177_v25  ;;  %v175_v29 = vpack.c.bf16 %v141_v26, %v141_v26  ;;  %v133_v30 = vadd.f32 %v171_v16, %v123_v28 }
  0xdd   :  { %157 = vst.msk [vmem:[%s269_s4] sm:$0xf] %vm25_vm1, %v175_v29  ;;  %v142_v31 = vadd.f32 %v181_v27, %v133_v30 }
  0xdf   :  { %v176_v32 = vpack.c.bf16 %v142_v31, %v142_v31 }
  0xe1   :  { %158 = vst.msk [vmem:[%s269_s4 + $0x4] sm:$0xf] %vm25_vm1, %v176_v32 }

// kernel: _lambda_.44
= control target key start
LH: loop header
LB: loop body
LE: loop exit
PB: predicated region body
PF: predicated region fallthrough
CT: control target
= control target key end

     0   :  { %vm22_vm0 = vcmask 519168   ;;  %v223_v1 = vmov 0.0   ;;  %vm54_vm1 = vcmask 261120   ;;  %vm19_vm2 = vcmask 523264   ;;  %s276_s1 = inlined_call_operand.vmem [shape: bf16[32,64], index: 1, kind: input, shape index: {}]   ;;  %s277_s0 = inlined_call_operand.vmem [shape: bf16[20,32], index: 0, kind: input, shape index: {}]   ;;  %s278_s2 = inlined_call_operand.vmem [shape: f32[1,64], index: 2, kind: input, shape index: {}]   ;;  %s279_s3 = inlined_call_operand.vmem [shape: bf16[20,64], index: 3, kind: output, shape index: {}]  }
   0x1   :  { %v207_v0 = vld [vmem:[%s276_s1 + $0x8] sm:$0xff]   ;;  %23 = vst.msk [vmem:[#allocation2 + $0x10] sm:$0xf] %vm22_vm0, %v223_v1  ;;  %v208_v2 = vld [vmem:[%s276_s1] sm:$0xff]   ;;  %vm172_vm3 = vcmask 517120  }
   0x2   :  { %198 = vmatprep.subr.bf16.mxu0 %v207_v0  ;;  %v209_v3 = vld [vmem:[%s277_s0] sm:$0xff]   ;;  %v210_v4 = vld [vmem:[%s277_s0 + $0x8] ss:$0 sps:$4 sm:$0x33]   ;;  %20 = vst.msk [vmem:[#allocation2] sm:$0xff] %vm19_vm2, %v223_v1  ;;  %21 = vst.msk [vmem:[#allocation2 + $0x8] sm:$0xff] %vm19_vm2, %v223_v1 }
   0x3   :  { %199 = vmatpush3.bf16.msra.mxu0 %v207_v0  ;;  %202 = vmatprep.mubr.msk.bf16.mxu0 %vm54_vm1, %v209_v3  ;;  %v184_v15 = vld [vmem:[%s278_s2] ss:$0 sm:$0xff] }
   0x4   :  { %200 = vmatprep.subr.bf16.mxu0 %v208_v2 }
   0x7   :  { %201 = vmatpush3.bf16.msra.mxu0 %v208_v2 }
   0x8   :  { %v26_v5 = vld [vmem:[#allocation2 + $0x10] sm:$0xf] }
   0x9   :  { %v24_v7 = vld [vmem:[#allocation2] sm:$0xff]  ;;  %v25_v12 = vld [vmem:[#allocation2 + $0x8] sm:$0xff] }
   0xa   :  { %203 = vmatmul.mubr.msk.bf16.vlgmr.msra.gmra.mxu0 %vm54_vm1, %v210_v4 }
  0xca   :  { %v204_v6 = vpop.f32.mrf.mxu0 }
  0xcb   :  { %v111_v8 = vadd.f32 %v204_v6, %v26_v5 }
  0xcc   :  { %v95_v9 = vpop.f32.mrf.mxu0 }
  0xcd   :  { %116 = vst.msk [vmem:[#allocation2 + $0x10] sm:$0xf] %vm22_vm0, %v111_v8  ;;  %v109_v10 = vadd.f32 %v95_v9, %v24_v7 }
  0xce   :  { %v205_v11 = vpop.f32.mrf.mxu0 }
  0xcf   :  { %113 = vst.msk [vmem:[#allocation2] sm:$0xff] %vm19_vm2, %v109_v10 }
  0xd0   :  { %v98_v13 = vpop.f32.mrf.mxu0 }
  0xd1   :  { %v110_v14 = vadd.f32 %v98_v13, %v25_v12 }
  0xd3   :  { %114 = vst.msk [vmem:[#allocation2 + $0x8] sm:$0xff] %vm19_vm2, %v110_v14 }
  0xd4   :  { %v122_v16 = vld [vmem:[#allocation2 + $0x10] sm:$0xf] }
  0xd5   :  { %v132_v17 = vadd.f32 %v184_v15, %v122_v16 }
  0xd6   :  { %v120_v18 = vld [vmem:[#allocation2] sm:$0xff] }
  0xd7   :  { %v187_v19 = vmul.f32 -1.702, %v132_v17  ;;  %v130_v20 = vadd.f32 %v184_v15, %v120_v18 }
  0xd9   :  { %v143_v21 = vmul.f32 1.442695, %v187_v19  ;;  %v185_v22 = vmul.f32 -1.702, %v130_v20 }
  0xda   :  { %v121_v23 = vld [vmem:[#allocation2 + $0x8] sm:$0xff] }
  0xdb   :  { %211 = vpow2.f32 %v143_v21  ;;  %v139_v24 = vmul.f32 1.442695, %v185_v22  ;;  %v131_v25 = vadd.f32 %v184_v15, %v121_v23 }
  0xdd   :  { %213 = vpow2.f32 %v139_v24  ;;  %v186_v26 = vmul.f32 -1.702, %v131_v25 }
  0xdf   :  { %v141_v27 = vmul.f32 1.442695, %v186_v26 }
  0xe1   :  { %215 = vpow2.f32 %v141_v27 }
  0xe8   :  { %v212_v28 = vpop.eup %211 }
  0xe9   :  { %v147_v29 = vadd.f32 1.0, %v212_v28 }
  0xea   :  { %v214_v30 = vpop.eup %213 }
  0xeb   :  { %217 = vrcp.f32 %v147_v29  ;;  %v145_v31 = vadd.f32 1.0, %v214_v30 }
  0xed   :  { %219 = vrcp.f32 %v145_v31 }
  0xee   :  { %v216_v32 = vpop.eup %215 }
  0xef   :  { %v146_v33 = vadd.f32 1.0, %v216_v32 }
  0xf1   :  { %221 = vrcp.f32 %v146_v33 }
  0xf8   :  { %v218_v34 = vpop.eup %217 }
  0xf9   :  { %v156_v35 = vmul.f32 %v218_v34, %v132_v17 }
  0xfa   :  { %v220_v36 = vpop.eup %219 }
  0xfb   :  { %v193_v37 = vpack.c.bf16 %v156_v35, %v156_v35  ;;  %v154_v38 = vmul.f32 %v220_v36, %v130_v20 }
  0xfd   :  { %173 = vst.msk [vmem:[%s279_s3 + $0x8] sm:$0x3] %vm172_vm3, %v193_v37  ;;  %v191_v39 = vpack.c.bf16 %v154_v38, %v154_v38 }
  0xfe   :  { %v222_v40 = vpop.eup %221 }
  0xff   :  { %170 = vst.msk [vmem:[%s279_s3] sm:$0xf] %vm22_vm0, %v191_v39  ;;  %v155_v41 = vmul.f32 %v222_v40, %v131_v25 }
 0x101   :  { %v192_v42 = vpack.c.bf16 %v155_v41, %v155_v41 }
 0x103   :  { %171 = vst.msk [vmem:[%s279_s3 + $0x4] sm:$0xf] %vm22_vm0, %v192_v42 }

// kernel: _lambda_.45
= control target key start
LH: loop header
LB: loop body
LE: loop exit
PB: predicated region body
PF: predicated region fallthrough
CT: control target
= control target key end

     0   :  { %vm25_vm0 = vcmask 257024   ;;  %v226_v1 = vmov 0.0   ;;  %vm73_vm1 = vcmask 523264   ;;  %vm22_vm2 = vcmask 261120   ;;  %s296_s1 = inlined_call_operand.vmem [shape: bf16[64,32], index: 1, kind: input, shape index: {}]   ;;  %s297_s0 = inlined_call_operand.vmem [shape: bf16[20,64], index: 0, kind: input, shape index: {}]   ;;  %s298_s3 = inlined_call_operand.vmem [shape: bf16[20,32], index: 3, kind: input, shape index: {}]   ;;  %s299_s2 = inlined_call_operand.vmem [shape: f32[1,32], index: 2, kind: input, shape index: {}]   ;;  %s300_s4 = inlined_call_operand.vmem [shape: bf16[20,32], index: 4, kind: output, shape index: {}]  }
   0x1   :  { %v220_v0 = vld [vmem:[%s296_s1 + $0x18] sm:$0xff]   ;;  %26 = vst.msk [vmem:[#allocation2 + $0x10] sm:$0xf] %vm25_vm0, %v226_v1  ;;  %v221_v2 = vld [vmem:[%s296_s1 + $0x10] sm:$0xff]   ;;  %v222_v3 = vld [vmem:[%s296_s1 + $0x8] sm:$0xff]   ;;  %vm176_vm3 = vcmask 254976  }
   0x2   :  { %207 = vmatprep.subr.bf16.mxu0 %v220_v0  ;;  %v224_v4 = vld [vmem:[%s297_s0] sm:$0xff]   ;;  %v225_v6 = vld [vmem:[%s297_s0 + $0x8] ss:$0 sps:$4 sm:$0x33]   ;;  %23 = vst.msk [vmem:[#allocation2] sm:$0xff] %vm22_vm2, %v226_v1  ;;  %24 = vst.msk [vmem:[#allocation2 + $0x8] sm:$0xff] %vm22_vm2, %v226_v1 }
   0x3   :  { %208 = vmatpush3.bf16.msra.mxu0 %v220_v0  ;;  %215 = vmatprep.mubr.msk.bf16.mxu0 %vm73_vm1, %v224_v4  ;;  %v223_v5 = vld [vmem:[%s296_s1] sm:$0xff]   ;;  %v154_v15 = vld [vmem:[%s298_s3 + $0x8] sm:$0x3] }
   0x4   :  { %209 = vmatprep.subr.bf16.mxu0 %v221_v2  ;;  %v190_v18 = vld [vmem:[%s299_s2] ss:$0 sm:$0xff]  ;;  %v157_v20 = vunpack.c.l.bf16 %v154_v15 }
   0x5   :  { %v198_v19 = vld [vmem:[%s298_s3] sm:$0xff]  }
   0x6   :  { %v199_v23 = vunpack.c.l.bf16 %v198_v19  ;;  %v200_v29 = vunpack.c.h.bf16 %v198_v19 }
   0x7   :  { %210 = vmatpush3.bf16.msra.mxu0 %v221_v2 }
   0x8   :  { %211 = vmatprep.subr.bf16.mxu0 %v222_v3  ;;  %v29_v7 = vld [vmem:[#allocation2 + $0x10] sm:$0xf] }
   0x9   :  { %v27_v9 = vld [vmem:[#allocation2] sm:$0xff]  ;;  %v28_v14 = vld [vmem:[#allocation2 + $0x8] sm:$0xff] }
   0xb   :  { %212 = vmatpush3.bf16.msra.mxu0 %v222_v3 }
   0xc   :  { %213 = vmatprep.subr.bf16.mxu0 %v223_v5 }
   0xf   :  { %214 = vmatpush3.bf16.msra.mxu0 %v223_v5 }
  0x12   :  { %216 = vmatmul.mubr.msk.bf16.vlgmr.msra.gmra.mxu0 %vm73_vm1, %v225_v6 }
  0xd2   :  { %v217_v8 = vpop.f32.mrf.mxu0 }
  0xd3   :  { %v130_v10 = vadd.f32 %v217_v8, %v29_v7 }
  0xd4   :  { %v114_v11 = vpop.f32.mrf.mxu0 }
  0xd5   :  { %135 = vst.msk [vmem:[#allocation2 + $0x10] sm:$0xf] %vm25_vm0, %v130_v10  ;;  %v128_v12 = vadd.f32 %v114_v11, %v27_v9 }
  0xd6   :  { %v218_v13 = vpop.f32.mrf.mxu0 }
  0xd7   :  { %132 = vst.msk [vmem:[#allocation2] sm:$0xff] %vm22_vm2, %v128_v12 }
  0xd8   :  { %v117_v16 = vpop.f32.mrf.mxu0 }
  0xd9   :  { %v129_v17 = vadd.f32 %v117_v16, %v28_v14 }
  0xdb   :  { %133 = vst.msk [vmem:[#allocation2 + $0x8] sm:$0xff] %vm22_vm2, %v129_v17 }
  0xdc   :  { %v141_v21 = vld [vmem:[#allocation2 + $0x10] sm:$0xf] }
  0xdd   :  { %v151_v22 = vadd.f32 %v190_v18, %v141_v21 }
  0xde   :  { %v139_v24 = vld [vmem:[#allocation2] sm:$0xff] }
  0xdf   :  { %v160_v25 = vadd.f32 %v157_v20, %v151_v22  ;;  %v149_v26 = vadd.f32 %v190_v18, %v139_v24 }
  0xe1   :  { %v196_v27 = vpack.c.bf16 %v160_v25, %v160_v25  ;;  %v158_v28 = vadd.f32 %v199_v23, %v149_v26 }
  0xe2   :  { %v140_v30 = vld [vmem:[#allocation2 + $0x8] sm:$0xff] }
  0xe3   :  { %177 = vst.msk [vmem:[%s300_s4 + $0x8] sm:$0x3] %vm176_vm3, %v196_v27  ;;  %v194_v31 = vpack.c.bf16 %v158_v28, %v158_v28  ;;  %v150_v32 = vadd.f32 %v190_v18, %v140_v30 }
  0xe5   :  { %174 = vst.msk [vmem:[%s300_s4] sm:$0xf] %vm25_vm0, %v194_v31  ;;  %v159_v33 = vadd.f32 %v200_v29, %v150_v32 }
  0xe7   :  { %v195_v34 = vpack.c.bf16 %v159_v33, %v159_v33 }
  0xe9   :  { %175 = vst.msk [vmem:[%s300_s4 + $0x4] sm:$0xf] %vm25_vm0, %v195_v34 }

// kernel: _lambda_.55
= control target key start
LH: loop header
LB: loop body
LE: loop exit
PB: predicated region body
PF: predicated region fallthrough
CT: control target
= control target key end

     0   :  { %vm10_vm0 = vcmask 125952   ;;  %s40_s0 = inlined_call_operand.vmem [shape: f32[4,16], index: 0, kind: input, shape index: {}]   ;;  %s41_s1 = inlined_call_operand.vmem [shape: f32[4,16], index: 1, kind: output, shape index: {}]  }
   0x1   :  { %v8_v0 = vld [vmem:[%s40_s0] sm:$0xf] }
   0x2   :  { %v9_v1 = vmul.f32 %v8_v0, %v8_v0 }
   0x4   :  { %v11_v2 = vsel %vm10_vm0, %v9_v1, 0.0 }
   0x5   :  { %12 = vadd.xlane.f32.xlu0 %v11_v2 }
  0x8e   :  { %v13_v3 = vpop.xlane.xlu0 %12 }
  0x8f   :  { %v14_v4 = vadd.f32 1e-12, %v13_v3 }
  0x91   :  { %22 = vrsqrt.f32 %v14_v4 }
  0x9e   :  { %v23_v5 = vpop.eup %22 }
  0x9f   :  { %v16_v6 = vmul.f32 %v23_v5, %v8_v0 }
  0xa1   :  { %17 = vst.msk [vmem:[%s41_s1] sm:$0xf] %vm10_vm0, %v16_v6 }

// kernel: _lambda_.56
= control target key start
LH: loop header
LB: loop body
LE: loop exit
PB: predicated region body
PF: predicated region fallthrough
CT: control target
= control target key end

     0   :  { %vm11_vm0 = vcmask 123904   ;;  %s118_s0 = inlined_call_operand.vmem [shape: f32[2,2,16], index: 0, kind: input, shape index: {}]   ;;  %s119_s1 = inlined_call_operand.hbm [shape: f32[2,16], index: 1, kind: output, shape index: {}]  }
   0x1   :  { %v9_v0 = vld [vmem:[%s118_s0] sm:$0x3]  ;;  %v10_v1 = vld [vmem:[%s118_s0 + $0x2] sm:$0x3] }
   0x2   :  { %v12_v2 = vsel %vm11_vm0, %v9_v0, 0.0  ;;  %v19_v3 = vsel %vm11_vm0, %v10_v1, 0.0 }
   0x3   :  { %6 = vsyncpa [#allocation3], 0  ;;  %v13_v4 = vrot.slane %v12_v2, 4  ;;  %v20_v5 = vrot.slane %v19_v3, 4  ;;  %vm33_vm1 = vcmask 1041409   ;;  %s92_s0 = smov [#allocation2]  }
   0x4   :  { %s59_s10 = sshll.u32 %s92_s0, 4  ;;  %s60_s10 = int_to_ptr.vmem [resolvable:$true] %s59_s10 }
   0x5   :  { %v14_v6 = vadd.f32 %v13_v4, %v12_v2  ;;  %v21_v7 = vadd.f32 %v20_v5, %v19_v3  ;;  %s70_s11 = scalar_lea.vmem %s60_s10, 32  ;;  %p75_p1 = scmp.lt.s32.totalorder %s60_s10, %s60_s10 }
   0x6   :  { %p71_p0 = scmp.ne.s32.totalorder %s60_s10, %s70_s11  ;;  %p76_p2 = scmp.lt.s32.totalorder %s70_s11, %s70_s11 }
   0x7   :  { %v15_v8 = vrot.slane %v14_v6, 2  ;;  %v22_v9 = vrot.slane %v21_v7, 2 }
   0x8   :  { %p77_p3 = por %p76_p2, %p75_p1 }
   0x9   :  { %v16_v10 = vadd.f32 %v15_v8, %v14_v6  ;;  %v23_v11 = vadd.f32 %v22_v9, %v21_v7 }
   0xa   :  { %p78_p4 = pnand %p77_p3, %p71_p0 }
   0xb   :  { %v17_v12 = vrot.slane %v16_v10, 1  ;;  %v24_v13 = vrot.slane %v23_v11, 1 }
   0xd   :  { %v18_v14 = vadd.f32 %v17_v12, %v16_v10  ;;  %v25_v15 = vadd.f32 %v24_v13, %v23_v11 }
   0xf   :  { %v27_v16 = vmul.f32 0.5, %v18_v14  ;;  %v28_v17 = vmul.f32 0.5, %v25_v15 }
  0x11   :  { %v29_v18 = vmul.f32 %v27_v16, %v27_v16  ;;  %v30_v19 = vmul.f32 %v28_v17, %v28_v17 }
  0x13   :  { %v34_v20 = vsel %vm33_vm1, %v30_v19, %v29_v18 }
  0x14   :  { %v36_v21 = vsel %vm11_vm0, %v34_v20, 0.0 }
  0x15   :  { %37 = vadd.xlane.f32.xlu0 %v36_v21 }
  0x9e   :  { %v38_v22 = vpop.xlane.xlu0 %37 }
  0x9f   :  { %v39_v23 = vadd.f32 1e-12, %v38_v22 }
  0xa1   :  { %68 = vrsqrt.f32 %v39_v23 }
  0xae   :  { %v69_v24 = vpop.eup %68 }
  0xaf   :  { %v42_v25 = vrot.slane %v69_v24, 1  ;;  %v45_v27 = vmul.f32 %v69_v24, %v27_v16 }
  0xb1   :  { %v46_v26 = vmul.f32 %v42_v25, %v28_v17 }
  0xb3   :  { %v49_v28 = vrot.slane %v46_v26, 7 }
  0xb5   :  { %v50_v29 = vsel %vm33_vm1, %v49_v28, %v45_v27 }
  0xb6   :  { %52 = vst.msk [vmem:[#allocation2] sm:$0x3] %vm11_vm0, %v50_v29 }
  0xb7   :  { %81 = shalt.err (!%p78_p4)
}
  0xb8   :  { %62 = dma.vmem_to_hbm [thread:$0]  %s60_s10, 32, %s119_s1, [#allocation3]  }
  0xb9   :  { %90 = dma.done.wait [#allocation3], 32  }
  0xba   :  { %91 = vsyncadd [#allocation3], 4294967264 }
  0xbb   :  { %66 = vsyncpa [#allocation3], 1 }

// kernel: _lambda_.53
= control target key start
LH: loop header
LB: loop body
LE: loop exit
PB: predicated region body
PF: predicated region fallthrough
CT: control target
= control target key end

     0   :  { %vm16_vm0 = vcmask 257024   ;;  %vm48_vm1 = vcmask 254976   ;;  %s90_s0 = inlined_call_operand.vmem [shape: bf16[4,32], index: 0, kind: input, shape index: {}]   ;;  %s91_s1 = inlined_call_operand.vmem [shape: f32[1,32], index: 1, kind: input, shape index: {}]   ;;  %s92_s2 = inlined_call_operand.vmem [shape: f32[1,32], index: 2, kind: input, shape index: {}]   ;;  %s93_s3 = inlined_call_operand.vmem [shape: bf16[4,32], index: 3, kind: output, shape index: {}]  }
   0x1   :  { %v14_v0 = vld [vmem:[%s90_s0] sm:$0x3] }
   0x2   :  { %v15_v1 = vunpack.c.l.bf16 %v14_v0  ;;  %v54_v12 = vld [vmem:[%s91_s1] ss:$0 sm:$0xff] }
   0x3   :  { %v55_v14 = vld [vmem:[%s92_s2] ss:$0 sm:$0xff] }
   0x4   :  { %v17_v2 = vsel %vm16_vm0, %v15_v1, 0.0 }
   0x5   :  { %18 = vadd.xlane.f32.xlu0 %v17_v2 }
  0x8e   :  { %v19_v3 = vpop.xlane.xlu0 %18 }
  0x8f   :  { %v21_v4 = vmul.f32 0.03125, %v19_v3 }
  0x91   :  { %v22_v5 = vsub.f32 %v15_v1, %v21_v4 }
  0x93   :  { %v23_v6 = vmul.f32 %v22_v5, %v22_v5 }
  0x95   :  { %v24_v7 = vsel %vm16_vm0, %v23_v6, 0.0 }
  0x96   :  { %25 = vadd.xlane.f32.xlu0 %v24_v7 }
 0x11f   :  { %v26_v8 = vpop.xlane.xlu0 %25 }
 0x120   :  { %v27_v9 = vmul.f32 0.03125, %v26_v8 }
 0x122   :  { %v28_v10 = vadd.f32 1e-05, %v27_v9 }
 0x124   :  { %56 = vrsqrt.f32 %v28_v10 }
 0x131   :  { %v57_v11 = vpop.eup %56 }
 0x132   :  { %v30_v13 = vmul.f32 %v57_v11, %v22_v5 }
 0x134   :  { %v38_v15 = vmul.f32 %v54_v12, %v30_v13 }
 0x136   :  { %v46_v16 = vadd.f32 %v55_v14, %v38_v15 }
 0x138   :  { %v47_v17 = vpack.c.bf16 %v46_v16, %v46_v16 }
 0x13a   :  { %49 = vst.msk [vmem:[%s93_s3] sm:$0x3] %vm48_vm1, %v47_v17 }

// kernel: _lambda_.54
= control target key start
LH: loop header
LB: loop body
LE: loop exit
PB: predicated region body
PF: predicated region fallthrough
CT: control target
= control target key end

     0   :  { %vm19_vm0 = vcmask 125952   ;;  %v122_v0 = vmov 0.0   ;;  %vm123_vm1 = vmmov 0   ;;  %vm39_vm2 = vcmask 261120   ;;  %s162_s1 = inlined_call_operand.vmem [shape: bf16[32,16], index: 1, kind: input, shape index: {}]   ;;  %s163_s0 = inlined_call_operand.vmem [shape: bf16[4,32], index: 0, kind: input, shape index: {}]   ;;  %s164_s2 = inlined_call_operand.vmem [shape: f32[1,16], index: 2, kind: input, shape index: {}]   ;;  %s165_s3 = inlined_call_operand.vmem [shape: f32[4,16], index: 3, kind: output, shape index: {}]  }
   0x1   :  { %20 = vst.msk [vmem:[#allocation2] sm:$0xf] %vm19_vm0, %v122_v0  ;;  %110 = vmatprep.subr.bf16.mxu0 %v122_v0  ;;  %v120_v1 = vld [vmem:[%s162_s1 + $0x8] sm:$0xff]   ;;  %114 = vmatprep.mubr.msk.bf16.mxu0 %vm123_vm1, %v122_v0  ;;  %v121_v2 = vld [vmem:[%s162_s1] sm:$0xff]  }
   0x2   :  { %111 = vmatpush3.bf16.msra.mxu0 %v120_v1  ;;  %v22_v3 = vld [vmem:[%s163_s0] sm:$0x3] }
   0x3   :  { %112 = vmatprep.subr.bf16.mxu0 %v122_v0  ;;  %v106_v10 = vld [vmem:[%s164_s2] ss:$0 sm:$0xff] }
   0x6   :  { %113 = vmatpush3.bf16.msra.mxu0 %v121_v2 }
   0x8   :  { %v21_v4 = vld [vmem:[#allocation2] sm:$0xf] }
   0x9   :  { %115 = vmatmul.mubr.msk.bf16.vlgmr.msra.gmra.mxu0 %vm39_vm2, %v22_v3 }
  0xc9   :  { %v77_v5 = vpop.f32.mrf.mxu0 }
  0xca   :  { %v83_v6 = vadd.f32 %v77_v5, %v21_v4 }
  0xcb   :  { %v116_v7 = vpop.f32.mrf.mxu0 }
  0xcc   :  { %85 = vst.msk [vmem:[#allocation2] sm:$0xf] %vm19_vm0, %v83_v6 }
  0xcd   :  { %v80_v8 = vpop.f32.mrf.mxu0 }
  0xcf   :  { %v117_v9 = vpop.f32.mrf.mxu0 }
  0xd3   :  { %v89_v11 = vld [vmem:[#allocation2] sm:$0xf] }
  0xd4   :  { %v97_v12 = vadd.f32 %v106_v10, %v89_v11 }
  0xd6   :  { %98 = vst.msk [vmem:[%s165_s3] sm:$0xf] %vm19_vm0, %v97_v12 }

</bundles_post_ra>
